<compile_context>
chip_gen: v7x
topology: tpu7x:2x2x1
jax: 0.10.0
libtpu: 0.0.40
codegen_flags: <defaults>
</compile_context>

<pallas_src>
import functools

import jax
import jax.numpy as jnp
from jax import lax
from jax.experimental import pallas as pl
from jax.experimental.pallas import tpu as pltpu


# ---------------------------------------------------------------------------
# Kernel 1: per-point MLP (conv1->bn1->relu, conv2->bn2->relu, conv3->bn3->relu)
#           + running max over points.  Grid = (batch, N tiles).
#           BN scale is pre-folded into the weights; only additive shifts remain.
# ---------------------------------------------------------------------------
def _mlp_max_kernel(x_ref,
                    w1_ref, t1_ref,
                    w2_ref, t2_ref,
                    w3_ref, t3_ref,
                    o_ref, *, rem):
    n = pl.program_id(1)

    # Output block (1, 1024, 1) has a constant block index over the N-tile axis,
    # so it stays VMEM-resident: accumulate the running max directly in it.
    @pl.when(n == 0)
    def _init():
        o_ref[0] = jnp.full_like(o_ref[0], -jnp.inf)

    # x tile in native PyTorch channels-first layout (k, TILE_N);
    # bf16 operands, f32 accumulation on the MXU.
    x = x_ref[0].astype(jnp.bfloat16)                                     # (k, TILE_N)
    h = jnp.dot(w1_ref[...], x, preferred_element_type=jnp.float32)       # (64, TILE_N)
    h = jnp.maximum(h + t1_ref[...], 0.0)
    h = jnp.dot(w2_ref[...], h.astype(jnp.bfloat16),
                preferred_element_type=jnp.float32)                       # (128, TILE_N)
    h = jnp.maximum(h + t2_ref[...], 0.0)
    h = jnp.dot(w3_ref[...], h.astype(jnp.bfloat16),
                preferred_element_type=jnp.float32)                       # (1024, TILE_N)
    h = jnp.maximum(h + t3_ref[...], 0.0)

    # Running max over points (torch.max(x, 2)).  The -inf ragged-tail mask is
    # only emitted when N % TILE_N != 0, and only executed on the last tile.
    if rem == 0:
        o_ref[0] = jnp.maximum(o_ref[0], jnp.max(h, axis=1, keepdims=True))
    else:
        last = pl.num_programs(1) - 1

        @pl.when(n != last)
        def _dense_tile():
            o_ref[0] = jnp.maximum(o_ref[0], jnp.max(h, axis=1, keepdims=True))

        @pl.when(n == last)
        def _ragged_tile():
            # Columns >= rem were DMA'd past N (undefined data); mask them with
            # -inf *before* the max so they can never win the reduction.
            col = lax.broadcasted_iota(jnp.int32, h.shape, 1)
            hm = jnp.where(col < rem, h, -jnp.inf)
            o_ref[0] = jnp.maximum(o_ref[0], jnp.max(hm, axis=1, keepdims=True))


# ---------------------------------------------------------------------------
# Kernel 2: FC head (fc1->bn4->relu, fc2->bn5->relu, fc3) + (identity + b6).
# BN scales pre-folded into w4/w5.  Whole (small) batch in one invocation.
# ---------------------------------------------------------------------------
def _head_kernel(g_ref,
                 w4_ref, t4_ref,
                 w5_ref, t5_ref,
                 w6_ref, iden_ref,
                 o_ref):
    g = g_ref[...].astype(jnp.bfloat16)                                   # (B, 1024)
    y = jnp.dot(g, w4_ref[...], preferred_element_type=jnp.float32)       # (B, 512)
    y = jnp.maximum(y + t4_ref[...], 0.0)
    y = jnp.dot(y.astype(jnp.bfloat16), w5_ref[...],
                preferred_element_type=jnp.float32)                       # (B, 256)
    y = jnp.maximum(y + t5_ref[...], 0.0)
    y = jnp.dot(y.astype(jnp.bfloat16), w6_ref[...],
                preferred_element_type=jnp.float32)                       # (B, k*k)
    o_ref[...] = (y + iden_ref[...]).astype(o_ref.dtype)


# ---------------------------------------------------------------------------
# Parameter preparation: fold BN scale into weights (in f32, then cast bf16),
# fold conv/fc biases into the BN shift, fold fc3 bias into the identity term.
# ---------------------------------------------------------------------------
def prepare_params(params, *, k, eps=1e-5):
    prep = {}
    # Conv layers 1-3: channels-first, weights in PyTorch (Cout, Cin) layout.
    # w' = s[:,None] * w  (f32 fold -> bf16 cast), shift t' = beta + s*(b - mean).
    for i, c in zip((1, 2, 3), (64, 128, 1024)):
        s = params[f"gamma{i}"] / jnp.sqrt(params[f"var{i}"] + eps)
        t = params[f"beta{i}"] + s * (params[f"b{i}"] - params[f"mean{i}"])
        w = s[:, None] * params[f"w{i}"].astype(jnp.float32)              # (Cout, Cin)
        prep[f"w{i}"] = w.astype(jnp.bfloat16)
        prep[f"t{i}"] = t.reshape(c, 1).astype(jnp.float32)
    # FC layers 4-5: row-major head, weights transposed to (Cin, Cout) with the
    # BN scale folded into the output columns; shift as (1, C).
    for i, c in zip((4, 5), (512, 256)):
        s = params[f"gamma{i}"] / jnp.sqrt(params[f"var{i}"] + eps)
        t = params[f"beta{i}"] + s * (params[f"b{i}"] - params[f"mean{i}"])
        w = params[f"w{i}"].astype(jnp.float32).T * s[None, :]            # (Cin, Cout)
        prep[f"w{i}"] = w.astype(jnp.bfloat16)
        prep[f"t{i}"] = t.reshape(1, c).astype(jnp.float32)
    # fc3: bias + flattened identity folded into one additive term.
    prep["w6"] = params["w6"].T.astype(jnp.bfloat16)                      # (256, k*k)
    prep["iden_b6"] = (params["b6"]
                       + jnp.eye(k, dtype=jnp.float32).reshape(-1)
                       ).reshape(1, k * k).astype(jnp.float32)
    return prep


def _mlp_vmem_bytes(k, tile_n):
    """Rough per-tile VMEM footprint of the MLP/max kernel (bytes)."""
    f32, bf16 = 4, 2
    x_blk = 2 * k * tile_n * f32                                # double-buffered x tile
    weights = 2 * (64 * k + 128 * 64 + 1024 * 128) * bf16       # bf16 weights (x2 buf)
    shifts = 2 * (64 + 128 + 1024) * 128 * f32                  # (C,1) pads to (C,128)
    acts = tile_n * ((64 + 128 + 1024) * f32                    # f32 intermediates
                     + (k + 64 + 128 + 1024) * bf16)            # bf16 matmul operands
    out = 2 * 1024 * 128 * f32                                  # (1024,1) output pad
    return x_blk + weights + shifts + acts + out


# ---------------------------------------------------------------------------
# Wrapper
# ---------------------------------------------------------------------------
def stnkd_forward(x_bkn, params, *, k, tile_n=2048, eps=1e-5):
    """x_bkn: (B, k, N) float32, same layout as the PyTorch module input."""
    B, kk, N = x_bkn.shape
    assert kk == k
    x = x_bkn.astype(jnp.float32)
    p = prepare_params(params, k=k, eps=eps)

    # Tile the point dimension; TILE_N must be a multiple of 128 (lane dim)
    # unless it covers the whole point axis.
    TILE_N = N if N <= tile_n else tile_n
    if TILE_N < N:
        assert TILE_N % 128 == 0, "tile_n must be a multiple of 128 when tiling N"
    n_tiles = pl.cdiv(N, TILE_N)
    rem = N - (n_tiles - 1) * TILE_N
    rem = 0 if rem == TILE_N else rem        # 0 => every tile is dense, skip masking

    # VMEM limit derived from the actual footprint (important on v7x: 64 MiB/TC).
    vmem_limit = max(min(int(1.5 * _mlp_vmem_bytes(k, TILE_N)) + (4 << 20), 48 << 20),
                     16 << 20)

    mats = [p["w1"], p["t1"],
            p["w2"], p["t2"],
            p["w3"], p["t3"]]

    in_specs = [pl.BlockSpec((1, k, TILE_N), lambda b, n: (b, 0, n))]
    in_specs += [pl.BlockSpec(m.shape, lambda b, n: (0, 0)) for m in mats]

    gmax = pl.pallas_call(
        functools.partial(_mlp_max_kernel, rem=rem),
        out_shape=jax.ShapeDtypeStruct((B, 1024, 1), jnp.float32),
        grid=(B, n_tiles),
        in_specs=in_specs,
        out_specs=pl.BlockSpec((1, 1024, 1), lambda b, n: (b, 0, 0)),
        compiler_params=pltpu.CompilerParams(
            dimension_semantics=("parallel", "arbitrary"),
            vmem_limit_bytes=vmem_limit),
    )(x, *mats)

    g = gmax.reshape(B, 1024)                                             # x.view(-1, 1024)

    head_inputs = [g,
                   p["w4"], p["t4"],
                   p["w5"], p["t5"],
                   p["w6"], p["iden_b6"]]
    out = pl.pallas_call(
        _head_kernel,
        out_shape=jax.ShapeDtypeStruct((B, k * k), jnp.float32),
        in_specs=[pl.BlockSpec(memory_space=pltpu.MemorySpace.VMEM)] * len(head_inputs),
        out_specs=pl.BlockSpec(memory_space=pltpu.MemorySpace.VMEM),
    )(*head_inputs)

    return out.reshape(B, k, k)                                           # x.view(-1, k, k)


# ---------------------------------------------------------------------------
# Deterministic synthetic parameters (PyTorch-like layout: W (Cout, Cin), b (Cout,))
# ---------------------------------------------------------------------------
def init_params(key, k):
    def dense(kw, fan_in, fan_out):
        k1, k2 = jax.random.split(kw)
        w = jax.random.normal(k1, (fan_out, fan_in), jnp.float32) / jnp.sqrt(float(fan_in))
        b = 0.01 * jax.random.normal(k2, (fan_out,), jnp.float32)
        return w, b

    def bn(kb, c):
        k1, k2, k3, k4 = jax.random.split(kb, 4)
        gamma = 1.0 + 0.1 * jax.random.normal(k1, (c,), jnp.float32)
        beta = 0.05 * jax.random.normal(k2, (c,), jnp.float32)
        mean = 0.02 * jax.random.normal(k3, (c,), jnp.float32)
        var = 1.0 + 0.1 * jnp.abs(jax.random.normal(k4, (c,), jnp.float32))
        return gamma, beta, mean, var

    keys = jax.random.split(key, 11)
    p = {}
    dims = [(k, 64), (64, 128), (128, 1024), (1024, 512), (512, 256), (256, k * k)]
    for i, (fi, fo) in enumerate(dims, start=1):
        p[f"w{i}"], p[f"b{i}"] = dense(keys[i - 1], fi, fo)
    for i, c in enumerate([64, 128, 1024, 512, 256], start=1):
        p[f"gamma{i}"], p[f"beta{i}"], p[f"mean{i}"], p[f"var{i}"] = bn(keys[5 + i], c)
    return p


# ---------------------------------------------------------------------------
# Pure-JAX f32 reference mirroring the PyTorch module (eval-mode BN).
# ---------------------------------------------------------------------------
def reference_forward(x_bkn, params, *, k, eps=1e-5):
    B = x_bkn.shape[0]
    h = x_bkn.astype(jnp.float32)                                         # (B, k, N)

    def conv_bn_relu(h, i):
        y = jnp.einsum("oc,bcn->bon", params[f"w{i}"], h) + params[f"b{i}"][None, :, None]
        s = params[f"gamma{i}"] / jnp.sqrt(params[f"var{i}"] + eps)
        y = s[None, :, None] * (y - params[f"mean{i}"][None, :, None]) \
            + params[f"beta{i}"][None, :, None]
        return jnp.maximum(y, 0.0)

    def fc_bn_relu(g, i):
        y = g @ params[f"w{i}"].T + params[f"b{i}"]
        s = params[f"gamma{i}"] / jnp.sqrt(params[f"var{i}"] + eps)
        y = s * (y - params[f"mean{i}"]) + params[f"beta{i}"]
        return jnp.maximum(y, 0.0)

    h = conv_bn_relu(h, 1)
    h = conv_bn_relu(h, 2)
    h = conv_bn_relu(h, 3)
    g = jnp.max(h, axis=2)                                                # (B, 1024)
    g = fc_bn_relu(g, 4)
    g = fc_bn_relu(g, 5)
    g = g @ params["w6"].T + params["b6"]
    g = g + jnp.eye(k, dtype=jnp.float32).reshape(1, k * k)
    return g.reshape(B, k, k)


if __name__ == "__main__":
    B, k, N = 2, 8, 16  # small shapes: batch=2, k=8 transform dim, 16 points
    key = jax.random.PRNGKey(0)
    kx, kp = jax.random.split(key)
    params = init_params(kp, k)

    # Check 1: single N-tile path (no masking emitted).
    x = jax.random.normal(kx, (B, k, N), dtype=jnp.float32)               # (B, k, N)
    fwd = jax.jit(functools.partial(stnkd_forward, k=k))
    out = jax.block_until_ready(fwd(x, params))
    ref = reference_forward(x, params, k=k)
    assert out.shape == (B, k, k), out.shape
    tol = 5e-2 * (1.0 + float(jnp.max(jnp.abs(ref))))
    err = float(jnp.max(jnp.abs(out - ref)))
    assert err < tol, (err, tol)   # bf16-operand / f32-accumulate tolerance

    # Check 2: multi-tile path with a ragged (masked) tail tile.
    N2 = 200
    x2 = jax.random.normal(jax.random.PRNGKey(1), (B, k, N2), dtype=jnp.float32)
    fwd2 = jax.jit(functools.partial(stnkd_forward, k=k, tile_n=128))
    out2 = jax.block_until_ready(fwd2(x2, params))
    ref2 = reference_forward(x2, params, k=k)
    tol2 = 5e-2 * (1.0 + float(jnp.max(jnp.abs(ref2))))
    err2 = float(jnp.max(jnp.abs(out2 - ref2)))
    assert err2 < tol2, (err2, tol2)

    print("KERNEL_OK")
</pallas_src>

<mosaic_0001>
module attributes {stable_mosaic.version = 11 : i64} {
  func.func @_mlp_max_kernel(%arg0: i32, %arg1: i32, %arg2: memref<1x8x16xf32, #tpu.memory_space<vmem>>, %arg3: memref<64x8xbf16, #tpu.memory_space<vmem>>, %arg4: memref<64x1xf32, #tpu.memory_space<vmem>>, %arg5: memref<128x64xbf16, #tpu.memory_space<vmem>>, %arg6: memref<128x1xf32, #tpu.memory_space<vmem>>, %arg7: memref<1024x128xbf16, #tpu.memory_space<vmem>>, %arg8: memref<1024x1xf32, #tpu.memory_space<vmem>>, %arg9: memref<1x1024x1xf32, #tpu.memory_space<vmem>>) attributes {dimension_semantics = [#tpu.dimension_semantics<parallel>, #tpu.dimension_semantics<arbitrary>], iteration_bounds = array<i64: 2, 1>, scalar_prefetch = 0 : i64, scratch_operands = 0 : i64, tpu.core_type = #tpu.core_type<tc>, window_params = [{transform_indices = @transform_0, window_bounds = array<i64: 1, 8, 16>}, {pipeline_mode = #tpu.pipeline_mode<synchronous>, transform_indices = @transform_1, window_bounds = array<i64: 64, 8>}, {pipeline_mode = #tpu.pipeline_mode<synchronous>, transform_indices = @transform_2, window_bounds = array<i64: 64, 1>}, {pipeline_mode = #tpu.pipeline_mode<synchronous>, transform_indices = @transform_3, window_bounds = array<i64: 128, 64>}, {pipeline_mode = #tpu.pipeline_mode<synchronous>, transform_indices = @transform_4, window_bounds = array<i64: 128, 1>}, {pipeline_mode = #tpu.pipeline_mode<synchronous>, transform_indices = @transform_5, window_bounds = array<i64: 1024, 128>}, {pipeline_mode = #tpu.pipeline_mode<synchronous>, transform_indices = @transform_6, window_bounds = array<i64: 1024, 1>}, {transform_indices = @transform_7, window_bounds = array<i64: 1, 1024, 1>}]} {
    %c0_i32 = arith.constant 0 : i32
    %0 = arith.cmpi eq, %arg1, %c0_i32 : i32
    %1 = arith.extui %0 : i1 to i32
    %c0_i32_0 = arith.constant 0 : i32
    %2 = arith.cmpi ne, %1, %c0_i32_0 : i32
    scf.if %2 {
      %cst_27 = arith.constant 0xFF800000 : f32
      %37 = vector.broadcast %cst_27 : f32 to vector<1024x1xf32>
      %c0_28 = arith.constant 0 : index
      %c0_29 = arith.constant 0 : index
      %c0_30 = arith.constant 0 : index
      %38 = vector.load %arg9[%c0_28, %c0_29, %c0_30] : memref<1x1024x1xf32, #tpu.memory_space<vmem>>, vector<1x1024x1xf32>
      %39 = vector.shape_cast %38 : vector<1x1024x1xf32> to vector<1024x1xf32>
      %40 = vector.shape_cast %37 : vector<1024x1xf32> to vector<1x1024x1xf32>
      tpu.vector_store %arg9[%c0_28, %c0_29, %c0_30], %40 {strides = array<i32>} : memref<1x1024x1xf32, #tpu.memory_space<vmem>>, vector<1x1024x1xf32>,
    } else {
    }
    %c0 = arith.constant 0 : index
    %c0_1 = arith.constant 0 : index
    %c0_2 = arith.constant 0 : index
    %3 = vector.load %arg2[%c0, %c0_1, %c0_2] : memref<1x8x16xf32, #tpu.memory_space<vmem>>, vector<1x8x16xf32>
    %4 = vector.shape_cast %3 : vector<1x8x16xf32> to vector<8x16xf32>
    %5 = arith.truncf %4 : vector<8x16xf32> to vector<8x16xbf16>
    %c0_3 = arith.constant 0 : index
    %c0_4 = arith.constant 0 : index
    %6 = vector.load %arg3[%c0_3, %c0_4] : memref<64x8xbf16, #tpu.memory_space<vmem>>, vector<64x8xbf16>
    %cst = arith.constant dense<0.000000e+00> : vector<64x16xf32>
    %7 = tpu.matmul %6, %5, %cst {dimension_numbers = #tpu.dot_dimension_numbers<[1], [0], [0], [1], [0, 0, 1, 1], [], []>} : vector<64x8xbf16>, vector<8x16xbf16>, vector<64x16xf32> -> vector<64x16xf32>
    %c0_5 = arith.constant 0 : index
    %c0_6 = arith.constant 0 : index
    %8 = vector.load %arg4[%c0_5, %c0_6] : memref<64x1xf32, #tpu.memory_space<vmem>>, vector<64x1xf32>
    %9 = vector.broadcast %8 : vector<64x1xf32> to vector<64x16xf32>
    %10 = arith.addf %7, %9 : vector<64x16xf32>
    %cst_7 = arith.constant 0.000000e+00 : f32
    %11 = vector.broadcast %cst_7 : f32 to vector<64x16xf32>
    %12 = arith.maximumf %10, %11 : vector<64x16xf32>
    %c0_8 = arith.constant 0 : index
    %c0_9 = arith.constant 0 : index
    %13 = vector.load %arg5[%c0_8, %c0_9] : memref<128x64xbf16, #tpu.memory_space<vmem>>, vector<128x64xbf16>
    %14 = arith.truncf %12 : vector<64x16xf32> to vector<64x16xbf16>
    %cst_10 = arith.constant dense<0.000000e+00> : vector<128x16xf32>
    %15 = tpu.matmul %13, %14, %cst_10 {dimension_numbers = #tpu.dot_dimension_numbers<[1], [0], [0], [1], [0, 0, 1, 1], [], []>} : vector<128x64xbf16>, vector<64x16xbf16>, vector<128x16xf32> -> vector<128x16xf32>
    %c0_11 = arith.constant 0 : index
    %c0_12 = arith.constant 0 : index
    %16 = vector.load %arg6[%c0_11, %c0_12] : memref<128x1xf32, #tpu.memory_space<vmem>>, vector<128x1xf32>
    %17 = vector.broadcast %16 : vector<128x1xf32> to vector<128x16xf32>
    %18 = arith.addf %15, %17 : vector<128x16xf32>
    %cst_13 = arith.constant 0.000000e+00 : f32
    %19 = vector.broadcast %cst_13 : f32 to vector<128x16xf32>
    %20 = arith.maximumf %18, %19 : vector<128x16xf32>
    %c0_14 = arith.constant 0 : index
    %c0_15 = arith.constant 0 : index
    %21 = vector.load %arg7[%c0_14, %c0_15] : memref<1024x128xbf16, #tpu.memory_space<vmem>>, vector<1024x128xbf16>
    %22 = arith.truncf %20 : vector<128x16xf32> to vector<128x16xbf16>
    %cst_16 = arith.constant dense<0.000000e+00> : vector<1024x16xf32>
    %23 = tpu.matmul %21, %22, %cst_16 {dimension_numbers = #tpu.dot_dimension_numbers<[1], [0], [0], [1], [0, 0, 1, 1], [], []>} : vector<1024x128xbf16>, vector<128x16xbf16>, vector<1024x16xf32> -> vector<1024x16xf32>
    %c0_17 = arith.constant 0 : index
    %c0_18 = arith.constant 0 : index
    %24 = vector.load %arg8[%c0_17, %c0_18] : memref<1024x1xf32, #tpu.memory_space<vmem>>, vector<1024x1xf32>
    %25 = vector.broadcast %24 : vector<1024x1xf32> to vector<1024x16xf32>
    %26 = arith.addf %23, %25 : vector<1024x16xf32>
    %cst_19 = arith.constant 0.000000e+00 : f32
    %27 = vector.broadcast %cst_19 : f32 to vector<1024x16xf32>
    %28 = arith.maximumf %26, %27 : vector<1024x16xf32>
    %c0_20 = arith.constant 0 : index
    %c0_21 = arith.constant 0 : index
    %c0_22 = arith.constant 0 : index
    %29 = vector.load %arg9[%c0_20, %c0_21, %c0_22] : memref<1x1024x1xf32, #tpu.memory_space<vmem>>, vector<1x1024x1xf32>
    %30 = vector.shape_cast %29 : vector<1x1024x1xf32> to vector<1024x1xf32>
    %cst_23 = arith.constant dense<0xFF800000> : vector<1024xf32>
    %31 = vector.multi_reduction <maximumf>, %28, %cst_23 [1] : vector<1024x16xf32> to vector<1024xf32>
    %32 = vector.shape_cast %31 : vector<1024xf32> to vector<1024x1xf32>
    %33 = arith.maximumf %30, %32 : vector<1024x1xf32>
    %c0_24 = arith.constant 0 : index
    %c0_25 = arith.constant 0 : index
    %c0_26 = arith.constant 0 : index
    %34 = vector.load %arg9[%c0_24, %c0_25, %c0_26] : memref<1x1024x1xf32, #tpu.memory_space<vmem>>, vector<1x1024x1xf32>
    %35 = vector.shape_cast %34 : vector<1x1024x1xf32> to vector<1024x1xf32>
    %36 = vector.shape_cast %33 : vector<1024x1xf32> to vector<1x1024x1xf32>
    tpu.vector_store %arg9[%c0_24, %c0_25, %c0_26], %36 {strides = array<i32>} : memref<1x1024x1xf32, #tpu.memory_space<vmem>>, vector<1x1024x1xf32>,
    return
  }
  func.func @transform_0(%arg0: i32, %arg1: i32) -> (i32, i32, i32) {
    %c0_i32 = arith.constant 0 : i32
    %c0_i32_0 = arith.constant 0 : i32
    return %arg0, %c0_i32, %arg1 : i32, i32, i32
  }
  func.func @transform_1(%arg0: i32, %arg1: i32) -> (i32, i32) {
    %c0_i32 = arith.constant 0 : i32
    %c0_i32_0 = arith.constant 0 : i32
    %c0_i32_1 = arith.constant 0 : i32
    return %c0_i32, %c0_i32_0 : i32, i32
  }
  func.func @transform_2(%arg0: i32, %arg1: i32) -> (i32, i32) {
    %c0_i32 = arith.constant 0 : i32
    %c0_i32_0 = arith.constant 0 : i32
    %c0_i32_1 = arith.constant 0 : i32
    return %c0_i32, %c0_i32_0 : i32, i32
  }
  func.func @transform_3(%arg0: i32, %arg1: i32) -> (i32, i32) {
    %c0_i32 = arith.constant 0 : i32
    %c0_i32_0 = arith.constant 0 : i32
    %c0_i32_1 = arith.constant 0 : i32
    return %c0_i32, %c0_i32_0 : i32, i32
  }
  func.func @transform_4(%arg0: i32, %arg1: i32) -> (i32, i32) {
    %c0_i32 = arith.constant 0 : i32
    %c0_i32_0 = arith.constant 0 : i32
    %c0_i32_1 = arith.constant 0 : i32
    return %c0_i32, %c0_i32_0 : i32, i32
  }
  func.func @transform_5(%arg0: i32, %arg1: i32) -> (i32, i32) {
    %c0_i32 = arith.constant 0 : i32
    %c0_i32_0 = arith.constant 0 : i32
    %c0_i32_1 = arith.constant 0 : i32
    return %c0_i32, %c0_i32_0 : i32, i32
  }
  func.func @transform_6(%arg0: i32, %arg1: i32) -> (i32, i32) {
    %c0_i32 = arith.constant 0 : i32
    %c0_i32_0 = arith.constant 0 : i32
    %c0_i32_1 = arith.constant 0 : i32
    return %c0_i32, %c0_i32_0 : i32, i32
  }
  func.func @transform_7(%arg0: i32, %arg1: i32) -> (i32, i32, i32) {
    %c0_i32 = arith.constant 0 : i32
    %c0_i32_0 = arith.constant 0 : i32
    %c0_i32_1 = arith.constant 0 : i32
    return %arg0, %c0_i32, %c0_i32_0 : i32, i32, i32
  }
}

module attributes {stable_mosaic.version = 11 : i64} {
  func.func @_head_kernel(%arg0: memref<2x1024xf32, #tpu.memory_space<vmem>>, %arg1: memref<1024x512xbf16, #tpu.memory_space<vmem>>, %arg2: memref<1x512xf32, #tpu.memory_space<vmem>>, %arg3: memref<512x256xbf16, #tpu.memory_space<vmem>>, %arg4: memref<1x256xf32, #tpu.memory_space<vmem>>, %arg5: memref<256x64xbf16, #tpu.memory_space<vmem>>, %arg6: memref<1x64xf32, #tpu.memory_space<vmem>>, %arg7: memref<2x64xf32, #tpu.memory_space<vmem>>) attributes {dimension_semantics = [], scalar_prefetch = 0 : i64, scratch_operands = 0 : i64, tpu.core_type = #tpu.core_type<tc>} {
    %c0 = arith.constant 0 : index
    %c0_0 = arith.constant 0 : index
    %0 = vector.load %arg0[%c0, %c0_0] : memref<2x1024xf32, #tpu.memory_space<vmem>>, vector<2x1024xf32>
    %1 = arith.truncf %0 : vector<2x1024xf32> to vector<2x1024xbf16>
    %c0_1 = arith.constant 0 : index
    %c0_2 = arith.constant 0 : index
    %2 = vector.load %arg1[%c0_1, %c0_2] : memref<1024x512xbf16, #tpu.memory_space<vmem>>, vector<1024x512xbf16>
    %cst = arith.constant dense<0.000000e+00> : vector<2x512xf32>
    %3 = tpu.matmul %1, %2, %cst {dimension_numbers = #tpu.dot_dimension_numbers<[1], [0], [0], [1], [0, 0, 1, 1], [], []>} : vector<2x1024xbf16>, vector<1024x512xbf16>, vector<2x512xf32> -> vector<2x512xf32>
    %c0_3 = arith.constant 0 : index
    %c0_4 = arith.constant 0 : index
    %4 = vector.load %arg2[%c0_3, %c0_4] : memref<1x512xf32, #tpu.memory_space<vmem>>, vector<1x512xf32>
    %5 = vector.broadcast %4 : vector<1x512xf32> to vector<2x512xf32>
    %6 = arith.addf %3, %5 : vector<2x512xf32>
    %cst_5 = arith.constant 0.000000e+00 : f32
    %7 = vector.broadcast %cst_5 : f32 to vector<2x512xf32>
    %8 = arith.maximumf %6, %7 : vector<2x512xf32>
    %9 = arith.truncf %8 : vector<2x512xf32> to vector<2x512xbf16>
    %c0_6 = arith.constant 0 : index
    %c0_7 = arith.constant 0 : index
    %10 = vector.load %arg3[%c0_6, %c0_7] : memref<512x256xbf16, #tpu.memory_space<vmem>>, vector<512x256xbf16>
    %cst_8 = arith.constant dense<0.000000e+00> : vector<2x256xf32>
    %11 = tpu.matmul %9, %10, %cst_8 {dimension_numbers = #tpu.dot_dimension_numbers<[1], [0], [0], [1], [0, 0, 1, 1], [], []>} : vector<2x512xbf16>, vector<512x256xbf16>, vector<2x256xf32> -> vector<2x256xf32>
    %c0_9 = arith.constant 0 : index
    %c0_10 = arith.constant 0 : index
    %12 = vector.load %arg4[%c0_9, %c0_10] : memref<1x256xf32, #tpu.memory_space<vmem>>, vector<1x256xf32>
    %13 = vector.broadcast %12 : vector<1x256xf32> to vector<2x256xf32>
    %14 = arith.addf %11, %13 : vector<2x256xf32>
    %cst_11 = arith.constant 0.000000e+00 : f32
    %15 = vector.broadcast %cst_11 : f32 to vector<2x256xf32>
    %16 = arith.maximumf %14, %15 : vector<2x256xf32>
    %17 = arith.truncf %16 : vector<2x256xf32> to vector<2x256xbf16>
    %c0_12 = arith.constant 0 : index
    %c0_13 = arith.constant 0 : index
    %18 = vector.load %arg5[%c0_12, %c0_13] : memref<256x64xbf16, #tpu.memory_space<vmem>>, vector<256x64xbf16>
    %cst_14 = arith.constant dense<0.000000e+00> : vector<2x64xf32>
    %19 = tpu.matmul %17, %18, %cst_14 {dimension_numbers = #tpu.dot_dimension_numbers<[1], [0], [0], [1], [0, 0, 1, 1], [], []>} : vector<2x256xbf16>, vector<256x64xbf16>, vector<2x64xf32> -> vector<2x64xf32>
    %c0_15 = arith.constant 0 : index
    %c0_16 = arith.constant 0 : index
    %20 = vector.load %arg6[%c0_15, %c0_16] : memref<1x64xf32, #tpu.memory_space<vmem>>, vector<1x64xf32>
    %21 = vector.broadcast %20 : vector<1x64xf32> to vector<2x64xf32>
    %22 = arith.addf %19, %21 : vector<2x64xf32>
    %c0_17 = arith.constant 0 : index
    %c0_18 = arith.constant 0 : index
    %23 = vector.load %arg7[%c0_17, %c0_18] : memref<2x64xf32, #tpu.memory_space<vmem>>, vector<2x64xf32>
    tpu.vector_store %arg7[%c0_17, %c0_18], %22 {strides = array<i32>} : memref<2x64xf32, #tpu.memory_space<vmem>>, vector<2x64xf32>,
    return
  }
}

</mosaic_0001>

<bundles_post_ra>
// kernel: stnkd_forward.2
= control target key start
LH: loop header
LB: loop body
LE: loop exit
PB: predicated region body
PF: predicated region fallthrough
CT: control target
= control target key end

     0   :  { %12 = vsyncpa [#allocation3], 0  ;;  %s6874_s0 = inlined_call_operand.hbm [shape: f32[2,8,16], index: 0, kind: input, shape index: {}]   ;;  %s6875_s1 = inlined_call_operand.vmem [shape: bf16[64,8], index: 1, kind: input, shape index: {}]   ;;  %s6876_s2 = inlined_call_operand.vmem [shape: f32[64,1], index: 2, kind: input, shape index: {}]   ;;  %s6877_s3 = inlined_call_operand.vmem [shape: bf16[128,64], index: 3, kind: input, shape index: {}]   ;;  %s6878_s4 = inlined_call_operand.vmem [shape: f32[128,1], index: 4, kind: input, shape index: {}]   ;;  %s6879_s5 = inlined_call_operand.vmem [shape: bf16[1024,128], index: 5, kind: input, shape index: {}]   ;;  %s6880_s6 = inlined_call_operand.vmem [shape: f32[1024,1], index: 6, kind: input, shape index: {}]   ;;  %s6881_s7 = inlined_call_operand.vmem [shape: f32[2,1024,1], index: 7, kind: output, shape index: {}]  }
   0x1   :  { %14 = vsyncpa [#allocation3 + $0x1], 0  ;;  %s4359_s24 = smov 0   ;;  %s4361_s25 = smov 0  }
   0x2   :  { %s4363_s26 = smov 0   ;;  %s4365_s27 = smov 0  }
   0x3   :  { %s4367_s28 = smov 0   ;;  %s4369_s29 = smov 0  }
   0x4 LB: > { %s3714_s30 = sadd.s32 4294967295, %s4314_s29   ;;  %s32_s8 = sadd.s32 1, %s4310_s28  ;;  %s4314_s29 = sphi %s4369_s29, %s20_s29   ;;  %s4310_s28 = sphi %s4367_s28, %s7061_s28   ;;  %s4306_s27 = sphi %s4365_s27, %s7060_s27   ;;  %s4302_s26 = sphi %s4363_s26, %s7059_s26   ;;  %s4298_s25 = sphi %s4361_s25, %s7058_s25   ;;  %s4294_s24 = sphi %s4359_s24, %s7057_s24  }
   0x5   : > { %p34_p0 = scmp.ge.s32.totalorder %s32_s8, 2  ;;  %s41_s9 = sadd.s32 1, %s4302_s26 }
   0x6   : > { %p48_p1 = scmp.ne.s32.totalorder %s4302_s26, %s4298_s25  ;;  %p49_p2 = scmp.eq.s32.totalorder %s4314_s29, 0 }
   0x7   : > { %s7063_s8 = smov (%p34_p0, %s32_s8), 0  ;;  %p54_p4 = scmp.ne.s32.totalorder %s4298_s25, %s4294_s24 }
   0x8   : > { %p4395_p3 = por %p49_p2, %p48_p1  ;;  %s36_s11 = ssub.s32 %s4310_s28, %s7063_s8 }
   0x9   : > { %p55_p5 = scmp.eq.s32.totalorder %s3714_s30, 0  ;;  %p39_p6 = scmp.eq.s32.totalorder %s36_s11, 0 }
   0xa   : > { %p4105_p8 = scmp.lt.s32.totalorder %s4314_s29, 2  ;;  %s248_s14 = sand.u32 1, %s4302_s26  }
   0xb   : > { %p4402_p7 = por %p55_p5, %p54_p4  ;;  %s3719_s15 = sshll.u32 %s4310_s28, 7 }
   0xc   : > { %s4408_s13 = scalar_select %p39_p6, %s4302_s26, %s41_s9  }
   0xd   : > { %s3718_s16 = sshll.u32 %s248_s14, 3  ;;  %s4415_s19 = scalar_lea.hbm %s6874_s0, %s3719_s15 }
   0xe   : > { %s252_s20 = scalar_lea.vmem [#allocation2], %s3718_s16  ;;  %p4419_p9 = pnand %p4105_p8, %p4395_p3 }
   0xf   : > { %s260_s21 = sshll.u32 %s252_s20, 4  ;;  %s249_s23 = scalar_lea.sflag [#allocation3], %s248_s14  ;;  %s4423_s21 = int_to_ptr.vmem [resolvable:$true] %s260_s21 }
  0x10   : > { %s4234_s24 = scalar_lea.hbm %s4415_s19, 128  ;;  %p4236_p13 = pneg %p4419_p9 }
  0x11   : > { %p4235_p12 = scmp.ne.s32.totalorder %s4415_s19, %s4234_s24  ;;  %s4239_s10 = scalar_lea.hbm %s6874_s0, 256 }
  0x12   : > { %p4240_p2 = scmp.lt.u32.totalorder %s4415_s19, %s6874_s0  ;;  %p4241_p3 = scmp.lt.u32.totalorder %s4239_s10, %s4234_s24 }
  0x13   : > { %p4237_p0 = pnand %p4236_p13, %p4235_p12  ;;  %p4243_p5 = scmp.lt.u32.totalorder %s4234_s24, %s4415_s19 }
  0x14   : > { %p4242_p4 = por %p4241_p3, %p4240_p2 }
  0x15   : > { %p4238_p1 = pneg %p4237_p0 }
  0x16   : > { %p4244_p6 = por %p4243_p5, %p4242_p4 }
  0x18   : > { %p4245_p8 = pnand %p4244_p6, %p4238_p1 }
  0x1a   : > { %4248 = shalt.err (!%p4245_p8)
}
  0x1b   : > { %s4249_s14 = scalar_lea.vmem %s4423_s21, 128  ;;  %s4316_s16 = smov [#allocation2]  }
  0x1c   : > { %p4250_p12 = scmp.ne.s32.totalorder %s4423_s21, %s4249_s14  ;;  %s4254_s17 = sshll.u32 %s4316_s16, 4  ;;  %s4255_s17 = int_to_ptr.vmem [resolvable:$false] %s4254_s17 }
  0x1d   : > { %s4256_s18 = scalar_lea.vmem %s4255_s17, 256  ;;  %p4257_p11 = scmp.lt.s32.totalorder %s4423_s21, %s4255_s17 }
  0x1e   : > { %p4252_p0 = pnand %p4250_p12, %p4236_p13  ;;  %p4258_p2 = scmp.lt.s32.totalorder %s4256_s18, %s4249_s14 }
  0x20   : > { %p4253_p10 = pneg %p4252_p0  ;;  %p4259_p3 = por %p4258_p2, %p4257_p11 }
  0x22   : > { %p4260_p4 = pnand %p4259_p3, %p4253_p10 }
  0x24   : > { %4263 = shalt.err (!%p4260_p4)
}
  0x25   : > { %4104 = dma.hbm_to_vmem [thread:$0]  (!%p4419_p9), %s4415_s19, 128, %s4423_s21, %s249_s23  }
  0x26   : > { %p6885_p1 = scmp.lt.s32.totalorder %s4314_s29, 3  ;;  %p6886_p5 = scmp.ge.s32.totalorder %s4314_s29, 1 }
  0x28   : > { %p266_p13 = pnand %p6886_p5, %p6885_p1 }
  0x2a   : > { %269 = sbr.rel (%p266_p13) target bundleno = 1211 (0x4bb), region = 48 }
  0x31   : > { %s271_s20 = sand.u32 1, %s4298_s25  }
  0x32   : > { %s3721_s24 = sshll.u32 %s271_s20, 3  ;;  %s272_s30 = scalar_lea.sflag [#allocation3], %s271_s20 }
  0x33   : > { %s275_s9 = scalar_lea.vmem [#allocation2], %s3721_s24 }
  0x34   : > { %4289 = dma.done.wait (%p4402_p7), %s272_s30, 128  }
  0x35   : > { %4291 = vsyncadd (%p4402_p7), %s272_s30, 4294967168  ;;  %v4317_v0 = vmov 0   ;;  %v457_v1 = vld [vmem:[%s6876_s2 + $0x10] sm:$0xff]  ;;  %v455_v2 = vld [vmem:[%s6876_s2] sm:$0xff]  ;;  %vm536_vm0 = vcmask 1043456   ;;  %vm523_vm1 = vcmask 64512  }
  0x36   : > { %4157 = vset.pattern.permute.xlu1 %v4317_v0  ;;  %4156 = vset.pattern.permute.xlu0 %v4317_v0  ;;  %v445_v3 = vld [vmem:[%s275_s9] sm:$0xff]  ;;  %v458_v5 = vld [vmem:[%s6876_s2 + $0x18] sm:$0xff]  ;;  %v4160_v11 = vld [vmem:[%s6875_s1 + $0x10] sm:$0xff]   ;;  %vm769_vm2 = vcmask 523264   ;;  %vm2996_vm3 = vcmask 130048   ;;  %p306_p7 = scmp.lt.s32.totalorder %s4306_s27, 1 }
  0x37   : > { %475 = vperm.xlu1 %4157, %v457_v1   ;;  %465 = vperm.xlu0 %4156, %v455_v2   ;;  %v446_v4 = vpack.c.bf16 %v445_v3, %v445_v3  ;;  %v456_v6 = vld [vmem:[%s6876_s2 + $0x8] sm:$0xff]  ;;  %v4158_v7 = vld [vmem:[%s6875_s1] sm:$0xff]   ;;  %v462_v13 = vld [vmem:[%s6876_s2 + $0x38] sm:$0xff]  ;;  %vm316_vm4 = vcmask 7168  }
  0x38   : > { %v4159_v9 = vld [vmem:[%s6875_s1 + $0x8] sm:$0xff]   ;;  %3906 = vmatprep.mubr.msk.bf16.mxu0 %vm523_vm1, %v4158_v7  ;;  %v459_v12 = vld [vmem:[%s6876_s2 + $0x20] sm:$0xff]  ;;  %v461_v14 = vld [vmem:[%s6876_s2 + $0x30] sm:$0xff]  ;;  %s7065_s27 = smov (!%p306_p7, %s4306_s27), 1 }
  0x39   : > { %4098 = vmatprep.subr.msk.bf16.mxu0 %vm536_vm0, %v446_v4  ;;  %v538_v8 = vsel %vm536_vm0, %v446_v4, 0  ;;  %v460_v10 = vld [vmem:[%s6876_s2 + $0x28] sm:$0xff]  ;;  %v4161_v15 = vld [vmem:[%s6875_s1 + $0x18] sm:$0xff]   ;;  %v633_v17 = vld [vmem:[%s6878_s4] sm:$0xff]  ;;  %s3814_s14 = sshll.u32 %s7065_s27, 10 }
  0x3a   : > { %3905 = vmatpush3.bf16.msra.mxu0 %v538_v8  ;;  %v634_v16 = vld [vmem:[%s6878_s4 + $0x8] sm:$0xff]  ;;  %v636_v18 = vld [vmem:[%s6878_s4 + $0x18] sm:$0xff]  ;;  %v635_v19 = vld [vmem:[%s6878_s4 + $0x10] sm:$0xff]  ;;  %s5454_s27 = scalar_lea.vmem %s6881_s7, %s3814_s14 }
  0x3b   : > { %480 = vperm.xlu1 %4157, %v458_v5   ;;  %470 = vperm.xlu0 %4156, %v456_v6   ;;  %v638_v20 = vld [vmem:[%s6878_s4 + $0x28] sm:$0xff]  ;;  %v637_v21 = vld [vmem:[%s6878_s4 + $0x20] sm:$0xff]  ;;  %v640_v22 = vld [vmem:[%s6878_s4 + $0x38] sm:$0xff] }
  0x3c   : > { %v639_v23 = vld [vmem:[%s6878_s4 + $0x30] sm:$0xff]  ;;  %v642_v24 = vld [vmem:[%s6878_s4 + $0x48] sm:$0xff]  ;;  %v641_v25 = vld [vmem:[%s6878_s4 + $0x40] sm:$0xff] }
  0x3d   : > { %3907 = vmatmul.mubr.msk.bf16.vlgmr.msra.gmra.mrb[0].mxu0 %vm523_vm1, %v4159_v9  ;;  %v644_v26 = vld [vmem:[%s6878_s4 + $0x58] sm:$0xff]  ;;  %v643_v27 = vld [vmem:[%s6878_s4 + $0x50] sm:$0xff]  ;;  %v646_v28 = vld [vmem:[%s6878_s4 + $0x68] sm:$0xff] }
  0x3e   : > { %3910 = vmatprep.mubr.msk.bf16.mxu0 %vm523_vm1, %v4160_v11  ;;  %v645_v29 = vld [vmem:[%s6878_s4 + $0x60] sm:$0xff]  ;;  %v648_v30 = vld [vmem:[%s6878_s4 + $0x78] sm:$0xff]  ;;  %v647_v31 = vld [vmem:[%s6878_s4 + $0x70] sm:$0xff] }
  0x3f   : > { %490 = vperm.xlu1 %4157, %v460_v10   ;;  %485 = vperm.xlu0 %4156, %v459_v12   ;;  %v1044_v32 = vld [vmem:[%s6880_s6 + $0x8] sm:$0xff]  ;;  %v1043_v33 = vld [vmem:[%s6880_s6] sm:$0xff]  ;;  %v1046_v34 = vld [vmem:[%s6880_s6 + $0x18] sm:$0xff] }
  0x40   : > { %v1045_v35 = vld [vmem:[%s6880_s6 + $0x10] sm:$0xff]  ;;  %v1048_v36 = vld [vmem:[%s6880_s6 + $0x28] sm:$0xff]  ;;  %v1047_v37 = vld [vmem:[%s6880_s6 + $0x20] sm:$0xff] }
  0x41   : > { %v1050_v38 = vld [vmem:[%s6880_s6 + $0x38] sm:$0xff]  ;;  %v1049_v39 = vld [vmem:[%s6880_s6 + $0x30] sm:$0xff]  ;;  %v1052_v40 = vld [vmem:[%s6880_s6 + $0x48] sm:$0xff] }
  0x42   : > { %v1051_v41 = vld [vmem:[%s6880_s6 + $0x40] sm:$0xff]  ;;  %v1054_v42 = vld [vmem:[%s6880_s6 + $0x58] sm:$0xff]  ;;  %v1053_v43 = vld [vmem:[%s6880_s6 + $0x50] sm:$0xff] }
  0x43   : > { %500 = vperm.xlu1 %4157, %v462_v13   ;;  %495 = vperm.xlu0 %4156, %v461_v14   ;;  %v1056_v44 = vld [vmem:[%s6880_s6 + $0x68] sm:$0xff]  ;;  %v1055_v45 = vld [vmem:[%s6880_s6 + $0x60] sm:$0xff]  ;;  %v1058_v46 = vld [vmem:[%s6880_s6 + $0x78] sm:$0xff] }
  0x44   : > { %v1057_v47 = vld [vmem:[%s6880_s6 + $0x70] sm:$0xff]  ;;  %v1060_v48 = vld [vmem:[%s6880_s6 + $0x88] sm:$0xff]  ;;  %v1059_v49 = vld [vmem:[%s6880_s6 + $0x80] sm:$0xff] }
  0x45   : > { %3911 = vmatmul.mubr.msk.bf16.gmra.mrb[4].mxu0 %vm523_vm1, %v4161_v15  ;;  %v1062_v50 = vld [vmem:[%s6880_s6 + $0x98] sm:$0xff]  ;;  %v1061_v51 = vld [vmem:[%s6880_s6 + $0x90] sm:$0xff]  ;;  %v1064_v52 = vld [vmem:[%s6880_s6 + $0xa8] sm:$0xff] }
  0x46   : > { %v1063_v53 = vld [vmem:[%s6880_s6 + $0xa0] sm:$0xff]  ;;  %v1066_v54 = vld [vmem:[%s6880_s6 + $0xb8] sm:$0xff]  ;;  %v1065_v55 = vld [vmem:[%s6880_s6 + $0xb0] sm:$0xff] }
  0x47   : > { %656 = vperm.xlu1 %4157, %v634_v16   ;;  %651 = vperm.xlu0 %4156, %v633_v17   ;;  %v1068_v56 = vld [vmem:[%s6880_s6 + $0xc8] sm:$0xff]  ;;  %v1067_v57 = vld [vmem:[%s6880_s6 + $0xc0] sm:$0xff]  ;;  %v1070_v58 = vld [vmem:[%s6880_s6 + $0xd8] sm:$0xff] }
  0x48   : > { %v1069_v59 = vld [vmem:[%s6880_s6 + $0xd0] sm:$0xff]  ;;  %v1072_v60 = vld [vmem:[%s6880_s6 + $0xe8] sm:$0xff]  ;;  %v1071_v61 = vld [vmem:[%s6880_s6 + $0xe0] sm:$0xff] }
  0x49   : > { %v1074_v62 = vld [vmem:[%s6880_s6 + $0xf8] sm:$0xff]  ;;  %v1073_v63 = vld [vmem:[%s6880_s6 + $0xf0] sm:$0xff]  ;;  %v1076_v0 = vld [vmem:[%s6880_s6 + $0x108] sm:$0xff] }
  0x4a   : > { %v1075_v1 = vld [vmem:[%s6880_s6 + $0x100] sm:$0xff]  ;;  %v1078_v2 = vld [vmem:[%s6880_s6 + $0x118] sm:$0xff]  ;;  %v1077_v3 = vld [vmem:[%s6880_s6 + $0x110] sm:$0xff] }
  0x4b   : > { %666 = vperm.xlu1 %4157, %v636_v18   ;;  %661 = vperm.xlu0 %4156, %v635_v19   ;;  %v4162_v4 = vld [vmem:[%s6877_s3] sm:$0xff]   ;;  %v1080_v5 = vld [vmem:[%s6880_s6 + $0x128] sm:$0xff]  ;;  %v1082_v7 = vld [vmem:[%s6880_s6 + $0x138] sm:$0xff] }
  0x4c   : > { %3922 = vmatprep.mubr.msk.bf16.mxu1 %vm769_vm2, %v4162_v4  ;;  %v1079_v6 = vld [vmem:[%s6880_s6 + $0x120] sm:$0xff]  ;;  %v1081_v8 = vld [vmem:[%s6880_s6 + $0x130] sm:$0xff]  ;;  %v1084_v9 = vld [vmem:[%s6880_s6 + $0x148] sm:$0xff] }
  0x4d   : > { %v1083_v10 = vld [vmem:[%s6880_s6 + $0x140] sm:$0xff]  ;;  %v1086_v11 = vld [vmem:[%s6880_s6 + $0x158] sm:$0xff]  ;;  %v1085_v12 = vld [vmem:[%s6880_s6 + $0x150] sm:$0xff] }
  0x4e   : > { %v1088_v13 = vld [vmem:[%s6880_s6 + $0x168] sm:$0xff]  ;;  %v1087_v14 = vld [vmem:[%s6880_s6 + $0x160] sm:$0xff]  ;;  %v1090_v15 = vld [vmem:[%s6880_s6 + $0x178] sm:$0xff] }
  0x4f   : > { %676 = vperm.xlu1 %4157, %v638_v20   ;;  %671 = vperm.xlu0 %4156, %v637_v21   ;;  %v1089_v16 = vld [vmem:[%s6880_s6 + $0x170] sm:$0xff]  ;;  %v1092_v17 = vld [vmem:[%s6880_s6 + $0x188] sm:$0xff]  ;;  %v1091_v18 = vld [vmem:[%s6880_s6 + $0x180] sm:$0xff] }
  0x50   : > { %v1094_v21 = vld [vmem:[%s6880_s6 + $0x198] sm:$0xff]  ;;  %v1121_v4 = vld [vmem:[%s6880_s6 + $0x270] sm:$0xff] }
  0x53   : > { %686 = vperm.xlu1 %4157, %v640_v22   ;;  %681 = vperm.xlu0 %4156, %v639_v23   ;;  %v1093_v22 = vld [vmem:[%s6880_s6 + $0x190] sm:$0xff]  ;;  %v1096_v23 = vld [vmem:[%s6880_s6 + $0x1a8] sm:$0xff] }
  0x57   : > { %696 = vperm.xlu1 %4157, %v642_v24   ;;  %691 = vperm.xlu0 %4156, %v641_v25   ;;  %v1095_v24 = vld [vmem:[%s6880_s6 + $0x1a0] sm:$0xff] }
  0x5b   : > { %706 = vperm.xlu1 %4157, %v644_v26   ;;  %701 = vperm.xlu0 %4156, %v643_v27   ;;  %v1098_v27 = vld [vmem:[%s6880_s6 + $0x1b8] sm:$0xff] }
  0x5f   : > { %716 = vperm.xlu1 %4157, %v646_v28   ;;  %711 = vperm.xlu0 %4156, %v645_v29   ;;  %v1097_v28 = vld [vmem:[%s6880_s6 + $0x1b0] sm:$0xff] }
  0x63   : > { %726 = vperm.xlu1 %4157, %v648_v30   ;;  %721 = vperm.xlu0 %4156, %v647_v31   ;;  %v1100_v31 = vld [vmem:[%s6880_s6 + $0x1c8] sm:$0xff] }
  0x67   : > { %1178 = vperm.xlu1 %4157, %v1044_v32   ;;  %1173 = vperm.xlu0 %4156, %v1043_v33   ;;  %v1099_v32 = vld [vmem:[%s6880_s6 + $0x1c0] sm:$0xff]  ;;  %v1102_v33 = vld [vmem:[%s6880_s6 + $0x1d8] sm:$0xff] }
  0x6b   : > { %1188 = vperm.xlu1 %4157, %v1046_v34   ;;  %1183 = vperm.xlu0 %4156, %v1045_v35   ;;  %v1101_v34 = vld [vmem:[%s6880_s6 + $0x1d0] sm:$0xff] }
  0x6f   : > { %1198 = vperm.xlu1 %4157, %v1048_v36   ;;  %1193 = vperm.xlu0 %4156, %v1047_v37   ;;  %v1104_v37 = vld [vmem:[%s6880_s6 + $0x1e8] sm:$0xff] }
  0x73   : > { %1208 = vperm.xlu1 %4157, %v1050_v38   ;;  %1203 = vperm.xlu0 %4156, %v1049_v39   ;;  %v1103_v38 = vld [vmem:[%s6880_s6 + $0x1e0] sm:$0xff] }
  0x77   : > { %1218 = vperm.xlu1 %4157, %v1052_v40   ;;  %1213 = vperm.xlu0 %4156, %v1051_v41   ;;  %v1106_v41 = vld [vmem:[%s6880_s6 + $0x1f8] sm:$0xff] }
  0x7b   : > { %1228 = vperm.xlu1 %4157, %v1054_v42   ;;  %1223 = vperm.xlu0 %4156, %v1053_v43   ;;  %v1105_v42 = vld [vmem:[%s6880_s6 + $0x1f0] sm:$0xff]  ;;  %v1108_v43 = vld [vmem:[%s6880_s6 + $0x208] sm:$0xff] }
  0x7f   : > { %1238 = vperm.xlu1 %4157, %v1056_v44   ;;  %1233 = vperm.xlu0 %4156, %v1055_v45   ;;  %v1107_v44 = vld [vmem:[%s6880_s6 + $0x200] sm:$0xff] }
  0x83   : > { %1248 = vperm.xlu1 %4157, %v1058_v46   ;;  %1243 = vperm.xlu0 %4156, %v1057_v47   ;;  %v1110_v47 = vld [vmem:[%s6880_s6 + $0x218] sm:$0xff] }
  0x87   : > { %1258 = vperm.xlu1 %4157, %v1060_v48   ;;  %1253 = vperm.xlu0 %4156, %v1059_v49   ;;  %v1109_v48 = vld [vmem:[%s6880_s6 + $0x210] sm:$0xff] }
  0x8b   : > { %1268 = vperm.xlu1 %4157, %v1062_v50   ;;  %1263 = vperm.xlu0 %4156, %v1061_v51   ;;  %v1112_v51 = vld [vmem:[%s6880_s6 + $0x228] sm:$0xff] }
  0x8f   : > { %1278 = vperm.xlu1 %4157, %v1064_v52   ;;  %1273 = vperm.xlu0 %4156, %v1063_v53   ;;  %v1111_v52 = vld [vmem:[%s6880_s6 + $0x220] sm:$0xff]  ;;  %v1114_v53 = vld [vmem:[%s6880_s6 + $0x238] sm:$0xff] }
  0x93   : > { %1288 = vperm.xlu1 %4157, %v1066_v54   ;;  %1283 = vperm.xlu0 %4156, %v1065_v55   ;;  %v1113_v54 = vld [vmem:[%s6880_s6 + $0x230] sm:$0xff] }
  0x97   : > { %1298 = vperm.xlu1 %4157, %v1068_v56   ;;  %1293 = vperm.xlu0 %4156, %v1067_v57   ;;  %v1116_v57 = vld [vmem:[%s6880_s6 + $0x248] sm:$0xff] }
  0x9b   : > { %1308 = vperm.xlu1 %4157, %v1070_v58   ;;  %1303 = vperm.xlu0 %4156, %v1069_v59   ;;  %v1115_v58 = vld [vmem:[%s6880_s6 + $0x240] sm:$0xff] }
  0x9f   : > { %1318 = vperm.xlu1 %4157, %v1072_v60   ;;  %1313 = vperm.xlu0 %4156, %v1071_v61   ;;  %v1118_v61 = vld [vmem:[%s6880_s6 + $0x258] sm:$0xff] }
  0xa3   : > { %1328 = vperm.xlu1 %4157, %v1074_v62   ;;  %1323 = vperm.xlu0 %4156, %v1073_v63   ;;  %v1117_v62 = vld [vmem:[%s6880_s6 + $0x250] sm:$0xff]  ;;  %v1120_v63 = vld [vmem:[%s6880_s6 + $0x268] sm:$0xff] }
  0xa7   : > { %1338 = vperm.xlu1 %4157, %v1076_v0   ;;  %1333 = vperm.xlu0 %4156, %v1075_v1   ;;  %v1119_v0 = vld [vmem:[%s6880_s6 + $0x260] sm:$0xff] }
  0xab   : > { %1348 = vperm.xlu1 %4157, %v1078_v2   ;;  %1343 = vperm.xlu0 %4156, %v1077_v3   ;;  %v1122_v3 = vld [vmem:[%s6880_s6 + $0x278] sm:$0xff] }
  0xaf   : > { %1358 = vperm.xlu1 %4157, %v1080_v5   ;;  %1353 = vperm.xlu0 %4156, %v1079_v6  }
  0xb3   : > { %1368 = vperm.xlu1 %4157, %v1082_v7   ;;  %1363 = vperm.xlu0 %4156, %v1081_v8   ;;  %v1124_v7 = vld [vmem:[%s6880_s6 + $0x288] sm:$0xff]  ;;  %v1123_v8 = vld [vmem:[%s6880_s6 + $0x280] sm:$0xff] }
  0xb6   : > { %v4703_v19 = vpop.permute.xlu1 %475  ;;  %v4705_v20 = vpop.permute.xlu0 %465 }
  0xb7   : > { %1378 = vperm.xlu1 %4157, %v1084_v9   ;;  %1373 = vperm.xlu0 %4156, %v1083_v10   ;;  %v1126_v9 = vld [vmem:[%s6880_s6 + $0x298] sm:$0xff]  ;;  %v1125_v10 = vld [vmem:[%s6880_s6 + $0x290] sm:$0xff] }
  0xba   : > { %v4719_v25 = vpop.permute.xlu1 %480  ;;  %v4721_v26 = vpop.permute.xlu0 %470 }
  0xbb   : > { %1388 = vperm.xlu1 %4157, %v1086_v11   ;;  %1383 = vperm.xlu0 %4156, %v1085_v12  }
  0xbe   : > { %v4729_v29 = vpop.permute.xlu1 %490  ;;  %v4731_v30 = vpop.permute.xlu0 %485 }
  0xbf   : > { %1398 = vperm.xlu1 %4157, %v1088_v13   ;;  %1393 = vperm.xlu0 %4156, %v1087_v14   ;;  %v1128_v13 = vld [vmem:[%s6880_s6 + $0x2a8] sm:$0xff]  ;;  %v1127_v14 = vld [vmem:[%s6880_s6 + $0x2a0] sm:$0xff] }
  0xc2   : > { %v4745_v35 = vpop.permute.xlu1 %500  ;;  %v4747_v36 = vpop.permute.xlu0 %495 }
  0xc3   : > { %1408 = vperm.xlu1 %4157, %v1090_v15   ;;  %1403 = vperm.xlu0 %4156, %v1089_v16  }
  0xc6   : > { %v4755_v39 = vpop.permute.xlu1 %656  ;;  %v4757_v40 = vpop.permute.xlu0 %651 }
  0xc7   : > { %1418 = vperm.xlu1 %4157, %v1092_v17   ;;  %1413 = vperm.xlu0 %4156, %v1091_v18   ;;  %v1130_v18 = vld [vmem:[%s6880_s6 + $0x2b8] sm:$0xff] }
  0xca   : > { %v4771_v45 = vpop.permute.xlu1 %666  ;;  %v4773_v46 = vpop.permute.xlu0 %661 }
  0xcb   : > { %1428 = vperm.xlu1 %4157, %v1094_v21   ;;  %1423 = vperm.xlu0 %4156, %v1093_v22   ;;  %v1129_v21 = vld [vmem:[%s6880_s6 + $0x2b0] sm:$0xff] }
  0xce   : > { %v4781_v49 = vpop.permute.xlu1 %676  ;;  %v4783_v50 = vpop.permute.xlu0 %671 }
  0xcf   : > { %1438 = vperm.xlu1 %4157, %v1096_v23   ;;  %1433 = vperm.xlu0 %4156, %v1095_v24  }
  0xd2   : > { %v4797_v55 = vpop.permute.xlu1 %686  ;;  %v4799_v56 = vpop.permute.xlu0 %681 }
  0xd3   : > { %1448 = vperm.xlu1 %4157, %v1098_v27   ;;  %1443 = vperm.xlu0 %4156, %v1097_v28  }
  0xd6   : > { %v4807_v59 = vpop.permute.xlu1 %696  ;;  %v4809_v60 = vpop.permute.xlu0 %691 }
  0xd7   : > { %1458 = vperm.xlu1 %4157, %v1100_v31   ;;  %1453 = vperm.xlu0 %4156, %v1099_v32   ;;  %v1132_v32 = vld [vmem:[%s6880_s6 + $0x2c8] sm:$0xff] }
  0xda   : > { %v4823_v1 = vpop.permute.xlu1 %706  ;;  %v4825_v2 = vpop.permute.xlu0 %701 }
  0xdb   : > { %1468 = vperm.xlu1 %4157, %v1102_v33   ;;  %1463 = vperm.xlu0 %4156, %v1101_v34   ;;  %v1131_v33 = vld [vmem:[%s6880_s6 + $0x2c0] sm:$0xff] }
  0xde   : > { %v4833_v5 = vpop.permute.xlu1 %716  ;;  %v4835_v6 = vpop.permute.xlu0 %711 }
  0xdf   : > { %1478 = vperm.xlu1 %4157, %v1104_v37   ;;  %1473 = vperm.xlu0 %4156, %v1103_v38  }
  0xe2   : > { %v4849_v11 = vpop.permute.xlu1 %726  ;;  %v4851_v12 = vpop.permute.xlu0 %721 }
  0xe3   : > { %1488 = vperm.xlu1 %4157, %v1106_v41   ;;  %1483 = vperm.xlu0 %4156, %v1105_v42  }
  0xe6   : > { %v4859_v15 = vpop.permute.xlu1 %1178  ;;  %v4861_v16 = vpop.permute.xlu0 %1173 }
  0xe7   : > { %1498 = vperm.xlu1 %4157, %v1108_v43   ;;  %1493 = vperm.xlu0 %4156, %v1107_v44   ;;  %v1134_v44 = vld [vmem:[%s6880_s6 + $0x2d8] sm:$0xff] }
  0xea   : > { %v4878_v34 = vpop.permute.xlu1 %1188  ;;  %v4881_v37 = vpop.permute.xlu0 %1183 }
  0xeb   : > { %1508 = vperm.xlu1 %4157, %v1110_v47   ;;  %1503 = vperm.xlu0 %4156, %v1109_v48  }
  0xef   : > { %1518 = vperm.xlu1 %4157, %v1112_v51   ;;  %1513 = vperm.xlu0 %4156, %v1111_v52   ;;  %v4890_v52 = vpop.permute.xlu1 %1198 }
  0xf3   : > { %1528 = vperm.xlu1 %4157, %v1114_v53   ;;  %1523 = vperm.xlu0 %4156, %v1113_v54  }
  0xf7   : > { %1538 = vperm.xlu1 %4157, %v1116_v57   ;;  %1533 = vperm.xlu0 %4156, %v1115_v58   ;;  %v4893_v57 = vpop.permute.xlu0 %1193 }
  0xfb   : > { %1548 = vperm.xlu1 %4157, %v1118_v61   ;;  %1543 = vperm.xlu0 %4156, %v1117_v62   ;;  %v1136_v62 = vld [vmem:[%s6880_s6 + $0x2e8] sm:$0xff] }
  0xff   : > { %1558 = vperm.xlu1 %4157, %v1120_v63   ;;  %1553 = vperm.xlu0 %4156, %v1119_v0  }
 0x103   : > { %1568 = vperm.xlu1 %4157, %v1122_v3   ;;  %1563 = vperm.xlu0 %4156, %v1121_v4  }
 0x107   : > { %1578 = vperm.xlu1 %4157, %v1124_v7   ;;  %1573 = vperm.xlu0 %4156, %v1123_v8   ;;  %v1138_v7 = vld [vmem:[%s6880_s6 + $0x2f8] sm:$0xff]  ;;  %v4906_v8 = vpop.permute.xlu1 %1208 }
 0x10b   : > { %1588 = vperm.xlu1 %4157, %v1126_v9   ;;  %1583 = vperm.xlu0 %4156, %v1125_v10   ;;  %v1137_v9 = vld [vmem:[%s6880_s6 + $0x2f0] sm:$0xff]  ;;  %v4911_v10 = vpop.permute.xlu0 %1203 }
 0x10f   : > { %1598 = vperm.xlu1 %4157, %v1128_v13   ;;  %1593 = vperm.xlu0 %4156, %v1127_v14   ;;  %v1140_v13 = vld [vmem:[%s6880_s6 + $0x308] sm:$0xff]  ;;  %v1139_v14 = vld [vmem:[%s6880_s6 + $0x300] sm:$0xff] }
 0x110   : > { %v3908_v17 = vpop.f32.mrb[0].mxu0 }
 0x111   : > { %v574_v22 = vpop.f32.mrb[1].mxu0  ;;  %v583_v23 = vadd.f32 %v3908_v17, %v4703_v19  ;;  %v4919_v17 = vpop.permute.xlu1 %1218 }
 0x112   : > { %v575_v24 = vadd.f32 %v574_v22, %v4705_v20  ;;  %v3909_v27 = vpop.f32.mrb[2].mxu0  ;;  %v1142_v22 = vld [vmem:[%s6880_s6 + $0x318] sm:$0xff] }
 0x113   : > { %1608 = vperm.xlu1 %4157, %v1130_v18   ;;  %1603 = vperm.xlu0 %4156, %v1129_v21   ;;  %v586_v28 = vadd.f32 %v3909_v27, %v4719_v25  ;;  %v577_v31 = vpop.f32.mrb[3].mxu0  ;;  %v607_v20 = vmax.f32 %v583_v23, 0.0  ;;  %v4163_v18 = vld [vmem:[%s6877_s3 + $0x8] sm:$0xff]   ;;  %v4924_v21 = vpop.permute.xlu0 %1213  ;;  %v4164_v23 = vld [vmem:[%s6877_s3 + $0x10] sm:$0xff]  }
 0x114   : > { %v578_v19 = vadd.f32 %v577_v31, %v4721_v26  ;;  %v605_v41 = vmax.f32 %v575_v24, 0.0  ;;  %v1133_v26 = vld [vmem:[%s6880_s6 + $0x2d0] sm:$0xff]  ;;  %v1144_v27 = vld [vmem:[%s6880_s6 + $0x328] sm:$0xff]  ;;  %v1143_v31 = vld [vmem:[%s6880_s6 + $0x320] sm:$0xff] }
 0x115   : > { %v608_v38 = vmax.f32 %v586_v28, 0.0  ;;  %v1141_v24 = vld [vmem:[%s6880_s6 + $0x310] sm:$0xff]  ;;  %v4940_v28 = vpop.permute.xlu1 %1228 }
 0x116   : > { %v606_v42 = vmax.f32 %v578_v19, 0.0  ;;  %v1146_v19 = vld [vmem:[%s6880_s6 + $0x338] sm:$0xff] }
 0x117   : > { %1618 = vperm.xlu1 %4157, %v1132_v32   ;;  %1613 = vperm.xlu0 %4156, %v1131_v33   ;;  %v630_v25 = vpack.c.bf16 %v608_v38, %v607_v20  ;;  %v4945_v32 = vpop.permute.xlu0 %1223  ;;  %v4165_v33 = vld [vmem:[%s6877_s3 + $0x18] sm:$0xff]   ;;  %v4166_v20 = vld [vmem:[%s6877_s3 + $0x20] sm:$0xff]   ;;  %v1145_v38 = vld [vmem:[%s6880_s6 + $0x330] sm:$0xff] }
 0x118   : > { %v3912_v43 = vpop.f32.mrb[4].mxu0  ;;  %v629_v48 = vpack.c.bf16 %v606_v42, %v605_v41 }
 0x119   : > { %v590_v47 = vpop.f32.mrb[5].mxu0  ;;  %v599_v51 = vadd.f32 %v3912_v43, %v4747_v36  ;;  %v4959_v41 = vpop.permute.xlu1 %1238  ;;  %v1147_v43 = vld [vmem:[%s6880_s6 + $0x340] sm:$0xff] }
 0x11a   : > { %v591_v53 = vadd.f32 %v590_v47, %v4731_v30  ;;  %v3913_v54 = vpop.f32.mrb[6].mxu0  ;;  %3914 = vmatprep.subr.bf16.mxu1 %v629_v48  ;;  %v1135_v30 = vld [vmem:[%s6880_s6 + $0x2e0] sm:$0xff]  ;;  %v1150_v47 = vld [vmem:[%s6880_s6 + $0x358] sm:$0xff] }
 0x11b   : > { %1628 = vperm.xlu1 %4157, %v1134_v44   ;;  %v602_v58 = vadd.f32 %v3913_v54, %v4745_v35  ;;  %1623 = vperm.xlu0 %4156, %v1133_v26   ;;  %v593_v61 = vpop.f32.mrb[7].mxu0  ;;  %v611_v63 = vmax.f32 %v599_v51, 0.0  ;;  %v4962_v42 = vpop.permute.xlu0 %1233  ;;  %v4167_v44 = vld [vmem:[%s6877_s3 + $0x28] sm:$0xff]   ;;  %v1149_v51 = vld [vmem:[%s6880_s6 + $0x350] sm:$0xff] }
 0x11c   : > { %3915 = vmatpush3.bf16.msra.mxu1 %v629_v48  ;;  %v594_v36 = vadd.f32 %v593_v61, %v4729_v29  ;;  %v609_v3 = vmax.f32 %v591_v53, 0.0  ;;  %v4168_v48 = vld [vmem:[%s6877_s3 + $0x30] sm:$0xff]   ;;  %v1152_v54 = vld [vmem:[%s6880_s6 + $0x368] sm:$0xff] }
 0x11d   : > { %3916 = vmatprep.subr.bf16.mxu1 %v630_v25  ;;  %v612_v0 = vmax.f32 %v602_v58, 0.0  ;;  %v4980_v26 = vpop.permute.xlu1 %1248  ;;  %v1151_v58 = vld [vmem:[%s6880_s6 + $0x360] sm:$0xff] }
 0x11e   : > { %v610_v4 = vmax.f32 %v594_v36, 0.0 }
 0x11f   : > { %1638 = vperm.xlu1 %4157, %v1136_v62   ;;  %v632_v35 = vpack.c.bf16 %v612_v0, %v611_v63  ;;  %1633 = vperm.xlu0 %4156, %v1135_v30   ;;  %v4985_v53 = vpop.permute.xlu0 %1243  ;;  %v4169_v62 = vld [vmem:[%s6877_s3 + $0x38] sm:$0xff]   ;;  %v1153_v63 = vld [vmem:[%s6880_s6 + $0x370] sm:$0xff]  ;;  %v1156_v0 = vld [vmem:[%s6880_s6 + $0x388] sm:$0xff] }
 0x120   : > { %3917 = vmatpush3.bf16.msra.mxu1 %v630_v25  ;;  %v631_v29 = vpack.c.bf16 %v610_v4, %v609_v3  ;;  %v1148_v25 = vld [vmem:[%s6880_s6 + $0x348] sm:$0xff]  ;;  %v1154_v30 = vld [vmem:[%s6880_s6 + $0x378] sm:$0xff]  ;;  %v1155_v4 = vld [vmem:[%s6880_s6 + $0x380] sm:$0xff] }
 0x121   : > { %v4995_v61 = vpop.permute.xlu1 %1258 }
 0x122   : > { %3918 = vmatprep.subr.bf16.mxu1 %v631_v29 }
 0x123   : > { %1648 = vperm.xlu1 %4157, %v1138_v7   ;;  %1643 = vperm.xlu0 %4156, %v1137_v9   ;;  %v5000_v36 = vpop.permute.xlu0 %1253  ;;  %v1158_v7 = vld [vmem:[%s6880_s6 + $0x398] sm:$0xff] }
 0x124   : > { %3919 = vmatpush3.bf16.msra.mxu1 %v631_v29  ;;  %v1157_v29 = vld [vmem:[%s6880_s6 + $0x390] sm:$0xff] }
 0x125   : > { %3920 = vmatprep.subr.bf16.mxu1 %v632_v35  ;;  %v5012_v3 = vpop.permute.xlu1 %1268 }
 0x127   : > { %1658 = vperm.xlu1 %4157, %v1140_v13   ;;  %1653 = vperm.xlu0 %4156, %v1139_v14   ;;  %v1160_v14 = vld [vmem:[%s6880_s6 + $0x3a8] sm:$0xff] }
 0x128   : > { %3921 = vmatpush3.bf16.msra.mxu1 %v632_v35  ;;  %v5017_v35 = vpop.permute.xlu0 %1263 }
 0x129   : > { %v5025_v9 = vpop.permute.xlu1 %1278 }
 0x12b   : > { %3923 = vmatmul.mubr.msk.bf16.vlgmr.msra.gmra.mrb[0].mxu1 %vm769_vm2, %v4163_v18  ;;  %1668 = vperm.xlu1 %4157, %v1142_v22   ;;  %v1159_v18 = vld [vmem:[%s6880_s6 + $0x3a0] sm:$0xff]  ;;  %v1162_v22 = vld [vmem:[%s6880_s6 + $0x3b8] sm:$0xff] }
 0x12c   : > { %1663 = vperm.xlu0 %4156, %v1141_v24   ;;  %3926 = vmatprep.mubr.msk.bf16.mxu1 %vm769_vm2, %v4164_v23  ;;  %v5027_v13 = vpop.permute.xlu0 %1273  ;;  %v1161_v24 = vld [vmem:[%s6880_s6 + $0x3b0] sm:$0xff] }
 0x12d   : > { %v5038_v23 = vpop.permute.xlu1 %1288 }
 0x12f   : > { %1678 = vperm.xlu1 %4157, %v1144_v27  }
 0x130   : > { %1673 = vperm.xlu0 %4156, %v1143_v31   ;;  %v5043_v27 = vpop.permute.xlu0 %1283  ;;  %v1164_v31 = vld [vmem:[%s6880_s6 + $0x3c8] sm:$0xff] }
 0x133   : > { %3927 = vmatmul.mubr.msk.bf16.gmra.mrb[4].mxu1 %vm769_vm2, %v4165_v33  ;;  %1688 = vperm.xlu1 %4157, %v1146_v19   ;;  %v1163_v33 = vld [vmem:[%s6880_s6 + $0x3c0] sm:$0xff]  ;;  %v5051_v19 = vpop.permute.xlu1 %1298 }
 0x134   : > { %1683 = vperm.xlu0 %4156, %v1145_v38   ;;  %3930 = vmatprep.mubr.msk.bf16.mxu1 %vm769_vm2, %v4166_v20  ;;  %6887 = vst [vmem:[#allocation5_spill] sm:$0xff] %v5051_v19  ;;  %v5053_v20 = vpop.permute.xlu0 %1293  ;;  %v1166_v38 = vld [vmem:[%s6880_s6 + $0x3d8] sm:$0xff] }
 0x135   : > { %6888 = vst [vmem:[#allocation6_spill] sm:$0xff] %v5053_v20 }
 0x137   : > { %1698 = vperm.xlu1 %4157, %v1148_v25   ;;  %v1165_v25 = vld [vmem:[%s6880_s6 + $0x3d0] sm:$0xff] }
 0x138   : > { %1693 = vperm.xlu0 %4156, %v1147_v43   ;;  %v1168_v43 = vld [vmem:[%s6880_s6 + $0x3e8] sm:$0xff] }
 0x13b   : > { %3931 = vmatmul.mubr.msk.bf16.gmra.mrb[8].mxu1 %vm769_vm2, %v4167_v44  ;;  %1708 = vperm.xlu1 %4157, %v1150_v47   ;;  %v5064_v44 = vpop.permute.xlu1 %1308  ;;  %v1167_v47 = vld [vmem:[%s6880_s6 + $0x3e0] sm:$0xff] }
 0x13c   : > { %1703 = vperm.xlu0 %4156, %v1149_v51   ;;  %3934 = vmatprep.mubr.msk.bf16.mxu1 %vm769_vm2, %v4168_v48  ;;  %6889 = vst [vmem:[#allocation7_spill] sm:$0xff] %v5064_v44  ;;  %v5069_v48 = vpop.permute.xlu0 %1303  ;;  %v1170_v51 = vld [vmem:[%s6880_s6 + $0x3f8] sm:$0xff] }
 0x13d   : > { %6890 = vst [vmem:[#allocation8_spill] sm:$0xff] %v5069_v48 }
 0x13f   : > { %1718 = vperm.xlu1 %4157, %v1152_v54   ;;  %v1169_v54 = vld [vmem:[%s6880_s6 + $0x3f0] sm:$0xff] }
 0x140   : > { %1713 = vperm.xlu0 %4156, %v1151_v58   ;;  %v5077_v58 = vpop.permute.xlu1 %1318 }
 0x141   : > { %6891 = vst [vmem:[#allocation9_spill] sm:$0xff] %v5077_v58 }
 0x143   : > { %3935 = vmatmul.mubr.msk.bf16.gmra.mrb[12].mxu1 %vm769_vm2, %v4169_v62  ;;  %1728 = vperm.xlu1 %4157, %v1154_v30   ;;  %v5079_v62 = vpop.permute.xlu0 %1313  ;;  %v4170_v30 = vld [vmem:[%s6879_s5] sm:$0xff]  }
 0x144   : > { %1723 = vperm.xlu0 %4156, %v1153_v63   ;;  %6892 = vst [vmem:[#allocation10_spill] sm:$0xff] %v5079_v62  ;;  %v4171_v63 = vld [vmem:[%s6879_s5 + $0x110] sm:$0xff]   ;;  %3954 = vmatprep.mubr.bf16.mxu0 %v4170_v30 }
 0x145   : > { %4022 = vmatprep.mubr.bf16.mxu1 %v4171_v63 }
 0x147   : > { %1738 = vperm.xlu1 %4157, %v1156_v0  }
 0x148   : > { %1733 = vperm.xlu0 %4156, %v1155_v4  }
 0x14b   : > { %1748 = vperm.xlu1 %4157, %v1158_v7  }
 0x14c   : > { %1743 = vperm.xlu0 %4156, %v1157_v29  }
 0x14f   : > { %1758 = vperm.xlu1 %4157, %v1160_v14  }
 0x150   : > { %1753 = vperm.xlu0 %4156, %v1159_v18  }
 0x153   : > { %1768 = vperm.xlu1 %4157, %v1162_v22  }
 0x154   : > { %1763 = vperm.xlu0 %4156, %v1161_v24  }
 0x157   : > { %1778 = vperm.xlu1 %4157, %v1164_v31  }
 0x158   : > { %1773 = vperm.xlu0 %4156, %v1163_v33  }
 0x15b   : > { %1788 = vperm.xlu1 %4157, %v1166_v38  }
 0x15c   : > { %1783 = vperm.xlu0 %4156, %v1165_v25  }
 0x15f   : > { %1798 = vperm.xlu1 %4157, %v1168_v43  }
 0x160   : > { %1793 = vperm.xlu0 %4156, %v1167_v47  }
 0x163   : > { %1808 = vperm.xlu1 %4157, %v1170_v51  }
 0x164   : > { %1803 = vperm.xlu0 %4156, %v1169_v54  }
 0x1fe   : > { %v3924_v0 = vpop.f32.mrb[0].mxu1 }
 0x1ff   : > { %v837_v4 = vadd.f32 %v3924_v0, %v4773_v46  ;;  %v828_v7 = vpop.f32.mrb[1].mxu1 }
 0x200   : > { %v829_v29 = vadd.f32 %v828_v7, %v4757_v40  ;;  %v3925_v14 = vpop.f32.mrb[2].mxu1 }
 0x201   : > { %v840_v18 = vadd.f32 %v3925_v14, %v4771_v45  ;;  %v831_v22 = vpop.f32.mrb[3].mxu1  ;;  %v893_v31 = vmax.f32 %v837_v4, 0.0 }
 0x202   : > { %v832_v24 = vadd.f32 %v831_v22, %v4755_v39  ;;  %v891_v38 = vmax.f32 %v829_v29, 0.0 }
 0x203   : > { %v894_v33 = vmax.f32 %v840_v18, 0.0 }
 0x204   : > { %v892_v25 = vmax.f32 %v832_v24, 0.0 }
 0x205   : > { %v1036_v43 = vpack.c.bf16 %v894_v33, %v893_v31 }
 0x206   : > { %v1035_v47 = vpack.c.bf16 %v892_v25, %v891_v38  ;;  %v3928_v51 = vpop.f32.mrb[4].mxu1 }
 0x207   : > { %v853_v54 = vadd.f32 %v3928_v51, %v4799_v56  ;;  %v844_v30 = vpop.f32.mrb[5].mxu1 }
 0x208   : > { %v845_v46 = vadd.f32 %v844_v30, %v4783_v50  ;;  %v3929_v63 = vpop.f32.mrb[6].mxu1  ;;  %3938 = vmatprep.subr.bf16.mxu0 %v1035_v47  ;;  %4082 = vmatprep.subr.bf16.mxu1 %v1035_v47 }
 0x209   : > { %v856_v40 = vadd.f32 %v3929_v63, %v4797_v55  ;;  %v847_v45 = vpop.f32.mrb[7].mxu1  ;;  %3939 = vmatpush3.bf16.msra.mxu0 %v1035_v47  ;;  %4090 = vmatpush3.bf16.msra.mxu1 %v1035_v47  ;;  %v897_v0 = vmax.f32 %v853_v54, 0.0 }
 0x20a   : > { %v848_v39 = vadd.f32 %v847_v45, %v4781_v49  ;;  %3940 = vmatprep.subr.bf16.mxu0 %v1036_v43  ;;  %4083 = vmatprep.subr.bf16.mxu1 %v1036_v43  ;;  %v895_v7 = vmax.f32 %v845_v46, 0.0 }
 0x20b   : > { %v898_v4 = vmax.f32 %v856_v40, 0.0 }
 0x20c   : > { %v896_v29 = vmax.f32 %v848_v39, 0.0 }
 0x20d   : > { %v1038_v56 = vpack.c.bf16 %v898_v4, %v897_v0  ;;  %3941 = vmatpush3.bf16.msra.mxu0 %v1036_v43  ;;  %4091 = vmatpush3.bf16.msra.mxu1 %v1036_v43 }
 0x20e   : > { %v1037_v50 = vpack.c.bf16 %v896_v29, %v895_v7  ;;  %v3932_v14 = vpop.f32.mrb[8].mxu1  ;;  %v4174_v7 = vld [vmem:[%s6879_s5 + $0x10] sm:$0xff]   ;;  %v4175_v29 = vld [vmem:[%s6879_s5 + $0x120] sm:$0xff]  }
 0x20f   : > { %v869_v18 = vadd.f32 %v3932_v14, %v4825_v2  ;;  %v860_v22 = vpop.f32.mrb[9].mxu1  ;;  %v4178_v14 = vld [vmem:[%s6879_s5 + $0x20] sm:$0xff]  }
 0x210   : > { %v861_v55 = vadd.f32 %v860_v22, %v4809_v60  ;;  %v3933_v24 = vpop.f32.mrb[10].mxu1  ;;  %3942 = vmatprep.subr.bf16.mxu0 %v1037_v50  ;;  %4084 = vmatprep.subr.bf16.mxu1 %v1037_v50  ;;  %v4180_v22 = vld [vmem:[%s6879_s5 + $0x28] sm:$0xff]  }
 0x211   : > { %v872_v49 = vadd.f32 %v3933_v24, %v4823_v1  ;;  %v863_v31 = vpop.f32.mrb[11].mxu1  ;;  %3943 = vmatpush3.bf16.msra.mxu0 %v1037_v50  ;;  %4092 = vmatpush3.bf16.msra.mxu1 %v1037_v50  ;;  %v901_v38 = vmax.f32 %v869_v18, 0.0  ;;  %v4177_v50 = vld [vmem:[%s6879_s5 + $0x128] sm:$0xff]   ;;  %v4179_v18 = vld [vmem:[%s6879_s5 + $0x130] sm:$0xff]  }
 0x212   : > { %v864_v33 = vadd.f32 %v863_v31, %v4807_v59  ;;  %3944 = vmatprep.subr.bf16.mxu0 %v1038_v56  ;;  %4085 = vmatprep.subr.bf16.mxu1 %v1038_v56  ;;  %v899_v43 = vmax.f32 %v861_v55, 0.0  ;;  %v4181_v55 = vld [vmem:[%s6879_s5 + $0x138] sm:$0xff]   ;;  %v4182_v24 = vld [vmem:[%s6879_s5 + $0x30] sm:$0xff]   ;;  %v5139_v31 = vpop.permute.xlu0 %1323 }
 0x213   : > { %v902_v25 = vmax.f32 %v872_v49, 0.0  ;;  %v4183_v49 = vld [vmem:[%s6879_s5 + $0x140] sm:$0xff]   ;;  %6893 = vst [vmem:[#allocation11_spill] sm:$0xff] %v5139_v31 }
 0x214   : > { %v900_v47 = vmax.f32 %v864_v33, 0.0  ;;  %v4184_v33 = vld [vmem:[%s6879_s5 + $0x38] sm:$0xff]  }
 0x215   : > { %v1040_v2 = vpack.c.bf16 %v902_v25, %v901_v38  ;;  %3945 = vmatpush3.bf16.msra.mxu0 %v1038_v56  ;;  %4093 = vmatpush3.bf16.msra.mxu1 %v1038_v56  ;;  %v4176_v56 = vld [vmem:[%s6879_s5 + $0x18] sm:$0xff]   ;;  %v4185_v38 = vld [vmem:[%s6879_s5 + $0x148] sm:$0xff]   ;;  %v4186_v25 = vld [vmem:[%s6879_s5 + $0x40] sm:$0xff]  }
 0x216   : > { %v1039_v60 = vpack.c.bf16 %v900_v47, %v899_v43  ;;  %v3936_v51 = vpop.f32.mrb[12].mxu1  ;;  %v4187_v43 = vld [vmem:[%s6879_s5 + $0x150] sm:$0xff]   ;;  %v5153_v47 = vpop.permute.xlu1 %1328 }
 0x217   : > { %v885_v54 = vadd.f32 %v3936_v51, %v4851_v12  ;;  %v876_v30 = vpop.f32.mrb[13].mxu1  ;;  %6894 = vst [vmem:[#allocation12_spill] sm:$0xff] %v5153_v47  ;;  %v4189_v51 = vld [vmem:[%s6879_s5 + $0x158] sm:$0xff]  }
 0x218   : > { %v877_v1 = vadd.f32 %v876_v30, %v4835_v6  ;;  %v3937_v46 = vpop.f32.mrb[14].mxu1  ;;  %3946 = vmatprep.subr.bf16.mxu0 %v1039_v60  ;;  %4086 = vmatprep.subr.bf16.mxu1 %v1039_v60  ;;  %v4191_v30 = vld [vmem:[%s6879_s5 + $0x160] sm:$0xff]  }
 0x219   : > { %v888_v59 = vadd.f32 %v3937_v46, %v4849_v11  ;;  %v879_v63 = vpop.f32.mrb[15].mxu1  ;;  %3947 = vmatpush3.bf16.msra.mxu0 %v1039_v60  ;;  %4094 = vmatpush3.bf16.msra.mxu1 %v1039_v60  ;;  %v905_v45 = vmax.f32 %v885_v54, 0.0  ;;  %v4173_v11 = vld [vmem:[%s6879_s5 + $0x118] sm:$0xff]   ;;  %v4188_v60 = vld [vmem:[%s6879_s5 + $0x48] sm:$0xff]   ;;  %v4190_v54 = vld [vmem:[%s6879_s5 + $0x50] sm:$0xff]  }
 0x21a   : > { %v880_v40 = vadd.f32 %v879_v63, %v4833_v5  ;;  %3948 = vmatprep.subr.bf16.mxu0 %v1040_v2  ;;  %4087 = vmatprep.subr.bf16.mxu1 %v1040_v2  ;;  %v903_v0 = vmax.f32 %v877_v1, 0.0  ;;  %v4172_v5 = vld [vmem:[%s6879_s5 + $0x8] sm:$0xff]   ;;  %v5169_v1 = vpop.permute.xlu1 %1338 }
 0x21b   : > { %v906_v39 = vmax.f32 %v888_v59, 0.0  ;;  %6896 = vst [vmem:[#allocation14_spill] sm:$0xff] %v5169_v1 }
 0x21c   : > { %v904_v4 = vmax.f32 %v880_v40, 0.0  ;;  %v4192_v40 = vld [vmem:[%s6879_s5 + $0x58] sm:$0xff]  }
 0x21d   : > { %v1042_v12 = vpack.c.bf16 %v906_v39, %v905_v45  ;;  %3949 = vmatpush3.bf16.msra.mxu0 %v1040_v2  ;;  %4095 = vmatpush3.bf16.msra.mxu1 %v1040_v2  ;;  %v5155_v2 = vpop.permute.xlu0 %1333  ;;  %v4193_v45 = vld [vmem:[%s6879_s5 + $0x168] sm:$0xff]   ;;  %v4194_v39 = vld [vmem:[%s6879_s5 + $0x60] sm:$0xff]  }
 0x21e   : > { %v1041_v6 = vpack.c.bf16 %v904_v4, %v903_v0  ;;  %6895 = vst [vmem:[#allocation13_spill] sm:$0xff] %v5155_v2  ;;  %v5173_v59 = vpop.permute.xlu1 %1348  ;;  %v4195_v0 = vld [vmem:[%s6879_s5 + $0x170] sm:$0xff]  }
 0x21f   : > { %6898 = vst [vmem:[#allocation16_spill] sm:$0xff] %v5173_v59 }
 0x220   : > { %3950 = vmatprep.subr.bf16.mxu0 %v1041_v6  ;;  %4088 = vmatprep.subr.bf16.mxu1 %v1041_v6 }
 0x221   : > { %3951 = vmatpush3.bf16.msra.mxu0 %v1041_v6  ;;  %4096 = vmatpush3.bf16.msra.mxu1 %v1041_v6  ;;  %v5171_v46 = vpop.permute.xlu0 %1343  ;;  %v4196_v6 = vld [vmem:[%s6879_s5 + $0x68] sm:$0xff]  }
 0x222   : > { %3952 = vmatprep.subr.bf16.mxu0 %v1042_v12  ;;  %4089 = vmatprep.subr.bf16.mxu1 %v1042_v12  ;;  %6897 = vst [vmem:[#allocation15_spill] sm:$0xff] %v5171_v46  ;;  %v5189_v4 = vpop.permute.xlu1 %1358 }
 0x223   : > { %6900 = vst [vmem:[#allocation18_spill] sm:$0xff] %v5189_v4 }
 0x225   : > { %3953 = vmatpush3.bf16.msra.mxu0 %v1042_v12  ;;  %4097 = vmatpush3.bf16.msra.mxu1 %v1042_v12  ;;  %v5175_v63 = vpop.permute.xlu0 %1353 }
 0x226   : > { %6899 = vst [vmem:[#allocation17_spill] sm:$0xff] %v5175_v63 }
 0x228   : > { %3955 = vmatmul.mubr.bf16.vlgmr.msra.gmra.mrb[8].mxu0 %v4172_v5  ;;  %4023 = vmatmul.mubr.bf16.vlgmr.msra.gmra.mrb[16].mxu1 %v4173_v11  ;;  %v4197_v5 = vld [vmem:[%s6879_s5 + $0x178] sm:$0xff]   ;;  %v4198_v11 = vld [vmem:[%s6879_s5 + $0x70] sm:$0xff]  }
 0x229   : > { %3958 = vmatprep.mubr.bf16.mxu0 %v4174_v7  ;;  %4026 = vmatprep.mubr.bf16.mxu1 %v4175_v29  ;;  %v5191_v12 = vpop.permute.xlu0 %1363  ;;  %v4199_v7 = vld [vmem:[%s6879_s5 + $0x180] sm:$0xff]   ;;  %v5205_v29 = vpop.permute.xlu1 %1368 }
 0x22a   : > { %6901 = vst [vmem:[#allocation19_spill] sm:$0xff] %v5191_v12  ;;  %6902 = vst [vmem:[#allocation20_spill] sm:$0xff] %v5205_v29 }
 0x230   : > { %3959 = vmatmul.mubr.bf16.gmra.mrb[12].mxu0 %v4176_v56  ;;  %4027 = vmatmul.mubr.bf16.gmra.mrb[20].mxu1 %v4177_v50  ;;  %v5207_v56 = vpop.permute.xlu0 %1373  ;;  %v4200_v50 = vld [vmem:[%s6879_s5 + $0x78] sm:$0xff]  }
 0x231   : > { %3962 = vmatprep.mubr.bf16.mxu0 %v4178_v14  ;;  %4030 = vmatprep.mubr.bf16.mxu1 %v4179_v18  ;;  %6903 = vst [vmem:[#allocation21_spill] sm:$0xff] %v5207_v56  ;;  %v4201_v14 = vld [vmem:[%s6879_s5 + $0x188] sm:$0xff]   ;;  %v4202_v18 = vld [vmem:[%s6879_s5 + $0x80] sm:$0xff]  }
 0x238   : > { %3963 = vmatmul.mubr.bf16.gmra.mrb[16].mxu0 %v4180_v22  ;;  %4031 = vmatmul.mubr.bf16.gmra.mrb[24].mxu1 %v4181_v55  ;;  %v4203_v22 = vld [vmem:[%s6879_s5 + $0x190] sm:$0xff]   ;;  %v5221_v55 = vpop.permute.xlu1 %1378 }
 0x239   : > { %3966 = vmatprep.mubr.bf16.mxu0 %v4182_v24  ;;  %4034 = vmatprep.mubr.bf16.mxu1 %v4183_v49  ;;  %6904 = vst [vmem:[#allocation22_spill] sm:$0xff] %v5221_v55  ;;  %v5223_v24 = vpop.permute.xlu0 %1383 }
 0x23a   : > { %6905 = vst [vmem:[#allocation23_spill] sm:$0xff] %v5223_v24 }
 0x23c   : > { %v5225_v49 = vpop.permute.xlu1 %1388 }
 0x23d   : > { %6906 = vst [vmem:[#allocation24_spill] sm:$0xff] %v5225_v49 }
 0x240   : > { %3967 = vmatmul.mubr.bf16.gmra.mrb[20].mxu0 %v4184_v33  ;;  %4035 = vmatmul.mubr.bf16.gmra.mrb[28].mxu1 %v4185_v38  ;;  %v5227_v33 = vpop.permute.xlu0 %1393  ;;  %v4204_v38 = vld [vmem:[%s6879_s5 + $0x88] sm:$0xff]  }
 0x241   : > { %3970 = vmatprep.mubr.bf16.mxu0 %v4186_v25  ;;  %4038 = vmatprep.mubr.bf16.mxu1 %v4187_v43  ;;  %6907 = vst [vmem:[#allocation25_spill] sm:$0xff] %v5227_v33  ;;  %v4205_v25 = vld [vmem:[%s6879_s5 + $0x198] sm:$0xff]   ;;  %v4206_v43 = vld [vmem:[%s6879_s5 + $0x90] sm:$0xff]  }
 0x248   : > { %3971 = vmatmul.mubr.bf16.gmra.mrb[24].mxu0 %v4188_v60  ;;  %4039 = vmatmul.mubr.bf16.gmra.mrb[32].mxu1 %v4189_v51  ;;  %v4207_v60 = vld [vmem:[%s6879_s5 + $0x1a0] sm:$0xff]   ;;  %v5241_v51 = vpop.permute.xlu1 %1398 }
 0x249   : > { %3974 = vmatprep.mubr.bf16.mxu0 %v4190_v54  ;;  %4042 = vmatprep.mubr.bf16.mxu1 %v4191_v30  ;;  %6908 = vst [vmem:[#allocation26_spill] sm:$0xff] %v5241_v51  ;;  %v5243_v54 = vpop.permute.xlu0 %1403  ;;  %v4208_v30 = vld [vmem:[%s6879_s5 + $0x98] sm:$0xff]  }
 0x24a   : > { %6909 = vst [vmem:[#allocation27_spill] sm:$0xff] %v5243_v54 }
 0x250   : > { %3975 = vmatmul.mubr.bf16.gmra.mrb[28].mxu0 %v4192_v40  ;;  %4043 = vmatmul.mubr.bf16.gmra.mrb[36].mxu1 %v4193_v45  ;;  %v4209_v40 = vld [vmem:[%s6879_s5 + $0x1a8] sm:$0xff]   ;;  %v4210_v45 = vld [vmem:[%s6879_s5 + $0xa0] sm:$0xff]  }
 0x251   : > { %3978 = vmatprep.mubr.bf16.mxu0 %v4194_v39  ;;  %4046 = vmatprep.mubr.bf16.mxu1 %v4195_v0  ;;  %v4211_v39 = vld [vmem:[%s6879_s5 + $0x1b0] sm:$0xff]   ;;  %v5257_v0 = vpop.permute.xlu1 %1408 }
 0x252   : > { %6910 = vst [vmem:[#allocation28_spill] sm:$0xff] %v5257_v0 }
 0x258   : > { %3979 = vmatmul.mubr.bf16.gmra.mrb[32].mxu0 %v4196_v6  ;;  %4047 = vmatmul.mubr.bf16.gmra.mrb[40].mxu1 %v4197_v5  ;;  %v5259_v6 = vpop.permute.xlu0 %1413  ;;  %v4212_v5 = vld [vmem:[%s6879_s5 + $0xa8] sm:$0xff]  }
 0x259   : > { %3982 = vmatprep.mubr.bf16.mxu0 %v4198_v11  ;;  %4050 = vmatprep.mubr.bf16.mxu1 %v4199_v7  ;;  %6911 = vst [vmem:[#allocation29_spill] sm:$0xff] %v5259_v6  ;;  %v4213_v11 = vld [vmem:[%s6879_s5 + $0x1b8] sm:$0xff]   ;;  %v4214_v7 = vld [vmem:[%s6879_s5 + $0xb0] sm:$0xff]  }
 0x260   : > { %3983 = vmatmul.mubr.bf16.gmra.mrb[36].mxu0 %v4200_v50  ;;  %4051 = vmatmul.mubr.bf16.gmra.mrb[44].mxu1 %v4201_v14  ;;  %v4215_v50 = vld [vmem:[%s6879_s5 + $0x1c0] sm:$0xff]   ;;  %v5273_v14 = vpop.permute.xlu1 %1418 }
 0x261   : > { %3986 = vmatprep.mubr.bf16.mxu0 %v4202_v18  ;;  %4054 = vmatprep.mubr.bf16.mxu1 %v4203_v22  ;;  %6912 = vst [vmem:[#allocation30_spill] sm:$0xff] %v5273_v14  ;;  %v5275_v18 = vpop.permute.xlu0 %1423 }
 0x262   : > { %6913 = vst [vmem:[#allocation31_spill] sm:$0xff] %v5275_v18 }
 0x264   : > { %v5277_v22 = vpop.permute.xlu1 %1428 }
 0x265   : > { %6914 = vst [vmem:[#allocation32_spill] sm:$0xff] %v5277_v22 }
 0x268   : > { %3987 = vmatmul.mubr.bf16.gmra.mrb[40].mxu0 %v4204_v38  ;;  %4055 = vmatmul.mubr.bf16.gmra.mrb[48].mxu1 %v4205_v25  ;;  %v5279_v38 = vpop.permute.xlu0 %1433  ;;  %v4216_v25 = vld [vmem:[%s6879_s5 + $0xb8] sm:$0xff]  }
 0x269   : > { %3990 = vmatprep.mubr.bf16.mxu0 %v4206_v43  ;;  %4058 = vmatprep.mubr.bf16.mxu1 %v4207_v60  ;;  %6915 = vst [vmem:[#allocation33_spill] sm:$0xff] %v5279_v38  ;;  %v4217_v43 = vld [vmem:[%s6879_s5 + $0x1c8] sm:$0xff]   ;;  %v4218_v60 = vld [vmem:[%s6879_s5 + $0xc0] sm:$0xff]  }
 0x270   : > { %3991 = vmatmul.mubr.bf16.gmra.mrb[44].mxu0 %v4208_v30  ;;  %4059 = vmatmul.mubr.bf16.gmra.mrb[52].mxu1 %v4209_v40  ;;  %v4219_v30 = vld [vmem:[%s6879_s5 + $0x1d0] sm:$0xff]   ;;  %v5293_v40 = vpop.permute.xlu1 %1438 }
 0x271   : > { %3994 = vmatprep.mubr.bf16.mxu0 %v4210_v45  ;;  %4062 = vmatprep.mubr.bf16.mxu1 %v4211_v39  ;;  %6916 = vst [vmem:[#allocation34_spill] sm:$0xff] %v5293_v40  ;;  %v5295_v45 = vpop.permute.xlu0 %1443  ;;  %v4220_v39 = vld [vmem:[%s6879_s5 + $0xc8] sm:$0xff]  }
 0x272   : > { %6917 = vst [vmem:[#allocation35_spill] sm:$0xff] %v5295_v45  ;;  %v4228_v40 = vld [vmem:[%s6879_s5 + $0xe8] sm:$0xff]  }
 0x278   : > { %3995 = vmatmul.mubr.bf16.gmra.mrb[48].mxu0 %v4212_v5  ;;  %4063 = vmatmul.mubr.bf16.gmra.mrb[56].mxu1 %v4213_v11  ;;  %v4221_v5 = vld [vmem:[%s6879_s5 + $0x1d8] sm:$0xff]   ;;  %v4222_v11 = vld [vmem:[%s6879_s5 + $0xd0] sm:$0xff]  }
 0x279   : > { %3998 = vmatprep.mubr.bf16.mxu0 %v4214_v7  ;;  %4066 = vmatprep.mubr.bf16.mxu1 %v4215_v50  ;;  %v4223_v7 = vld [vmem:[%s6879_s5 + $0x1e0] sm:$0xff]   ;;  %v5309_v50 = vpop.permute.xlu1 %1448 }
 0x27a   : > { %6918 = vst [vmem:[#allocation36_spill] sm:$0xff] %v5309_v50  ;;  %v4229_v50 = vld [vmem:[%s6879_s5 + $0x1f8] sm:$0xff]  }
 0x280   : > { %3999 = vmatmul.mubr.bf16.gmra.mrb[52].mxu0 %v4216_v25  ;;  %4067 = vmatmul.mubr.bf16.gmra.mrb[60].mxu1 %v4217_v43  ;;  %v5311_v25 = vpop.permute.xlu0 %1453  ;;  %v4224_v43 = vld [vmem:[%s6879_s5 + $0xd8] sm:$0xff]  }
 0x281   : > { %4002 = vmatprep.mubr.bf16.mxu0 %v4218_v60  ;;  %4070 = vmatprep.mubr.bf16.mxu1 %v4219_v30  ;;  %6919 = vst [vmem:[#allocation37_spill] sm:$0xff] %v5311_v25  ;;  %v4225_v60 = vld [vmem:[%s6879_s5 + $0x1e8] sm:$0xff]   ;;  %v4226_v30 = vld [vmem:[%s6879_s5 + $0xe0] sm:$0xff]   ;;  %v4227_v25 = vld [vmem:[%s6879_s5 + $0x1f0] sm:$0xff]  }
 0x288   : > { %4003 = vmatmul.mubr.bf16.gmra.mrb[56].mxu0 %v4220_v39  ;;  %4071 = vmatmul.mubr.bf16.gmra.mrb[64].mxu1 %v4221_v5  ;;  %v5325_v39 = vpop.permute.xlu1 %1458  ;;  %v5327_v5 = vpop.permute.xlu0 %1463 }
 0x289   : > { %4006 = vmatprep.mubr.bf16.mxu0 %v4222_v11  ;;  %4074 = vmatprep.mubr.bf16.mxu1 %v4223_v7  ;;  %6920 = vst [vmem:[#allocation38_spill] sm:$0xff] %v5325_v39  ;;  %6921 = vst [vmem:[#allocation39_spill] sm:$0xff] %v5327_v5  ;;  %v4230_v39 = vld [vmem:[%s6879_s5 + $0xf0] sm:$0xff]  }
 0x28c   : > { %v5329_v11 = vpop.permute.xlu1 %1468  ;;  %v5331_v7 = vpop.permute.xlu0 %1473 }
 0x28d   : > { %6922 = vst [vmem:[#allocation40_spill] sm:$0xff] %v5329_v11  ;;  %6923 = vst [vmem:[#allocation41_spill] sm:$0xff] %v5331_v7 }
 0x290   : > { %4007 = vmatmul.mubr.bf16.gmra.mrb[60].mxu0 %v4224_v43  ;;  %4075 = vmatmul.mubr.bf16.gmra.mrb[68].mxu1 %v4225_v60  ;;  %v5344_v43 = vpop.permute.xlu0 %1483  ;;  %v4231_v60 = vld [vmem:[%s6879_s5 + $0xf8] sm:$0xff]  }
 0x291   : > { %4010 = vmatprep.mubr.bf16.mxu0 %v4226_v30  ;;  %4078 = vmatprep.mubr.bf16.mxu1 %v4227_v25  ;;  %v5342_v25 = vpop.permute.xlu1 %1478  ;;  %6925 = vst [vmem:[#allocation43_spill] sm:$0xff] %v5344_v43  ;;  %v4232_v30 = vld [vmem:[%s6879_s5 + $0x100] sm:$0xff]  }
 0x292   : > { %6924 = vst [vmem:[#allocation42_spill] sm:$0xff] %v5342_v25 }
 0x294   : > { %v5354_v11 = vpop.permute.xlu0 %1493 }
 0x295   : > { %v5352_v7 = vpop.permute.xlu1 %1488  ;;  %6927 = vst [vmem:[#allocation45_spill] sm:$0xff] %v5354_v11 }
 0x296   : > { %6926 = vst [vmem:[#allocation44_spill] sm:$0xff] %v5352_v7 }
 0x298   : > { %4011 = vmatmul.mubr.bf16.gmra.mrb[64].mxu0 %v4228_v40  ;;  %4079 = vmatmul.mubr.bf16.gmra.mrb[72].mxu1 %v4229_v50  ;;  %v4233_v40 = vld [vmem:[%s6879_s5 + $0x108] sm:$0xff]  }
 0x299   : > { %4014 = vmatprep.mubr.bf16.mxu0 %v4230_v39  ;;  %v5359_v50 = vpop.permute.xlu1 %1498  ;;  %v5361_v39 = vpop.permute.xlu0 %1503 }
 0x29a   : > { %6928 = vst [vmem:[#allocation46_spill] sm:$0xff] %v5359_v50  ;;  %6929 = vst [vmem:[#allocation47_spill] sm:$0xff] %v5361_v39 }
 0x29d   : > { %v5363_v25 = vpop.permute.xlu1 %1508  ;;  %v1514_v43 = vpop.permute.xlu0 %1513 }
 0x29e   : > { %6930 = vst [vmem:[#allocation48_spill] sm:$0xff] %v5363_v25 }
 0x2a0   : > { %4015 = vmatmul.mubr.bf16.gmra.mrb[68].mxu0 %v4231_v60 }
 0x2a1   : > { %4018 = vmatprep.mubr.bf16.mxu0 %v4232_v30  ;;  %v5365_v5 = vpop.permute.xlu1 %1518  ;;  %v1524_v38 = vpop.permute.xlu0 %1523 }
 0x2a5   : > { %v1529_v7 = vpop.permute.xlu1 %1528  ;;  %v5367_v45 = vpop.permute.xlu0 %1533 }
 0x2a8   : > { %4019 = vmatmul.mubr.bf16.gmra.mrb[72].mxu0 %v4233_v40 }
 0x2a9   : > { %v5369_v60 = vpop.permute.xlu1 %1538  ;;  %v5371_v30 = vpop.permute.xlu0 %1543 }
 0x2ad   : > { %v5373_v11 = vpop.permute.xlu1 %1548  ;;  %v5375_v14 = vpop.permute.xlu0 %1553 }
 0x2b1   : > { %v5377_v50 = vpop.permute.xlu1 %1558  ;;  %v5379_v40 = vpop.permute.xlu0 %1563 }
 0x2b5   : > { %v5381_v25 = vpop.permute.xlu1 %1568  ;;  %v5383_v39 = vpop.permute.xlu0 %1573 }
 0x2b9   : > { %v5385_v22 = vpop.permute.xlu1 %1578  ;;  %v5387_v6 = vpop.permute.xlu0 %1583 }
 0x2bd   : > { %v5389_v18 = vpop.permute.xlu1 %1588  ;;  %v5391_v51 = vpop.permute.xlu0 %1593 }
 0x2c1   : > { %v5393_v0 = vpop.permute.xlu1 %1598  ;;  %v5395_v33 = vpop.permute.xlu0 %1603 }
 0x2c5   : > { %v5397_v54 = vpop.permute.xlu1 %1608  ;;  %v5399_v55 = vpop.permute.xlu0 %1613 }
 0x2c9   : > { %v5401_v49 = vpop.permute.xlu1 %1618  ;;  %v5403_v56 = vpop.permute.xlu0 %1623 }
 0x2ca   : > { %6931 = vst [vmem:[#allocation49_spill] sm:$0xff] %v5401_v49 }
 0x2cd   : > { %v5405_v24 = vpop.permute.xlu1 %1628  ;;  %v5407_v4 = vpop.permute.xlu0 %1633 }
 0x2ce   : > { %6932 = vst [vmem:[#allocation50_spill] sm:$0xff] %v5407_v4 }
 0x2d1   : > { %v5409_v29 = vpop.permute.xlu1 %1638  ;;  %v5411_v63 = vpop.permute.xlu0 %1643 }
 0x2d2   : > { %6933 = vst [vmem:[#allocation51_spill] sm:$0xff] %v5409_v29  ;;  %6934 = vst [vmem:[#allocation52_spill] sm:$0xff] %v5411_v63 }
 0x2fb   : > { %v3956_v12 = vpop.f32.mrb[8].mxu0  ;;  %v4024_v1 = vpop.f32.mrb[16].mxu1 }
 0x2fc   : > { %v2238_v59 = vadd.f32 %v3956_v12, %v4881_v37  ;;  %v2510_v2 = vadd.f32 %v4024_v1, %v1524_v38  ;;  %v2229_v46 = vpop.f32.mrb[9].mxu0  ;;  %v2501_v58 = vpop.f32.mrb[17].mxu1 }
 0x2fd   : > { %v2230_v47 = vadd.f32 %v2229_v46, %v4861_v16  ;;  %v2502_v62 = vadd.f32 %v2501_v58, %v1514_v43  ;;  %v3957_v31 = vpop.f32.mrb[10].mxu0  ;;  %v4025_v19 = vpop.f32.mrb[18].mxu1 }
 0x2fe   : > { %v2742_v44 = vmax.f32 %v2238_v59, 0.0  ;;  %v2810_v4 = vmax.f32 %v2510_v2, 0.0  ;;  %v2232_v20 = vpop.f32.mrb[11].mxu0  ;;  %v2504_v29 = vpop.f32.mrb[19].mxu1  ;;  %v2241_v49 = vadd.f32 %v3957_v31, %v4878_v34  ;;  %v2513_v59 = vadd.f32 %v4025_v19, %v1529_v7 }
 0x2ff   : > { %v2740_v63 = vmax.f32 %v2230_v47, 0.0  ;;  %v2808_v48 = vmax.f32 %v2502_v62, 0.0  ;;  %v2233_v37 = vadd.f32 %v2232_v20, %v4859_v15  ;;  %v5420_v58 = vpop.permute.xlu1 %1648  ;;  %v5422_v46 = vpop.permute.xlu0 %1653  ;;  %v5443_v7 = vadd.f32 %v2504_v29, %v5365_v5 }
 0x300   : > { %v3207_v1 = vsel %vm2996_vm3, %v2810_v4, -inf  ;;  %v3003_v16 = vsel %vm2996_vm3, %v2742_v44, -inf  ;;  %6935 = vst [vmem:[#allocation53_spill] sm:$0xff] %v5422_v46  ;;  %v2743_v2 = vmax.f32 %v2241_v49, 0.0 }
 0x301   : > { %3208 = vmax.xlane.f32.xlu1 %v3207_v1  ;;  %3004 = vmax.xlane.f32.xlu0 %v3003_v16  ;;  %v2741_v34 = vmax.f32 %v2233_v37, 0.0  ;;  %v3201_v44 = vsel %vm2996_vm3, %v2808_v48, -inf  ;;  %v2997_v31 = vsel %vm2996_vm3, %v2740_v63, -inf }
 0x302   : > { %v3006_v37 = vsel %vm2996_vm3, %v2743_v2, -inf }
 0x303   : > { %v3960_v12 = vpop.f32.mrb[12].mxu0  ;;  %v4028_v47 = vpop.f32.mrb[20].mxu1  ;;  %v3000_v63 = vsel %vm2996_vm3, %v2741_v34, -inf }
 0x304   : > { %v5426_v62 = vadd.f32 %v3960_v12, %v4911_v10  ;;  %v5428_v15 = vpop.f32.mrb[13].mxu0  ;;  %v5430_v20 = vpop.f32.mrb[21].mxu1  ;;  %v2811_v10 = vmax.f32 %v2513_v59, 0.0  ;;  %v5447_v48 = vadd.f32 %v4028_v47, %v5371_v30  ;;  %v2809_v30 = vmax.f32 %v5443_v7, 0.0 }
 0x305   : > { %v5434_v4 = vpop.f32.mrb[22].mxu1  ;;  %3202 = vmax.xlane.f32.xlu1 %v3201_v44  ;;  %v5436_v49 = vpop.f32.mrb[14].mxu0  ;;  %2998 = vmax.xlane.f32.xlu0 %v2997_v31  ;;  %v4318_v59 = vmov -inf   ;;  %v2246_v47 = vadd.f32 %v5428_v15, %v4893_v57  ;;  %v2518_v57 = vadd.f32 %v5430_v20, %v5367_v45 }
 0x306   : > { %v5438_v19 = vpop.f32.mrb[15].mxu0  ;;  %v5440_v38 = vpop.f32.mrb[23].mxu1  ;;  %v2746_v43 = vmax.f32 %v5426_v62, 0.0  ;;  %v5466_v2 = vsel %vm2996_vm3, %v2811_v10, -inf  ;;  %387 = vst.msk [vmem:[%s5454_s27 + $0x230] sm:$0xff] %vm316_vm4, %v4318_v59  ;;  %317 = vst.msk [vmem:[%s5454_s27] sm:$0xff] %vm316_vm4, %v4318_v59  ;;  %v2257_v34 = vadd.f32 %v5436_v49, %v4906_v8  ;;  %v2529_v62 = vadd.f32 %v5434_v4, %v5373_v11 }
 0x307   : > { %v5456_v29 = vpop.permute.xlu1 %1658  ;;  %v5458_v5 = vpop.permute.xlu0 %1663  ;;  %318 = vst.msk [vmem:[%s5454_s27 + $0x8] sm:$0xff] %vm316_vm4, %v4318_v59  ;;  %319 = vst.msk [vmem:[%s5454_s27 + $0x10] sm:$0xff] %vm316_vm4, %v4318_v59  ;;  %v2814_v12 = vmax.f32 %v5447_v48, 0.0  ;;  %v3204_v8 = vsel %vm2996_vm3, %v2809_v30, -inf  ;;  %v2744_v15 = vmax.f32 %v2246_v47, 0.0  ;;  %v2249_v45 = vadd.f32 %v5438_v19, %v4890_v52 }
 0x308   : > { %6936 = vst [vmem:[#allocation54_spill] sm:$0xff] %v5456_v29  ;;  %320 = vst.msk [vmem:[%s5454_s27 + $0x18] sm:$0xff] %vm316_vm4, %v4318_v59  ;;  %v3015_v10 = vsel %vm2996_vm3, %v2746_v43, -inf  ;;  %v2747_v49 = vmax.f32 %v2257_v34, 0.0  ;;  %v2812_v29 = vmax.f32 %v2518_v57, 0.0  ;;  %v2815_v30 = vmax.f32 %v2529_v62, 0.0 }
 0x309   : > { %3001 = vmax.xlane.f32.xlu1 %v3000_v63  ;;  %3007 = vmax.xlane.f32.xlu0 %v3006_v37  ;;  %321 = vst.msk [vmem:[%s5454_s27 + $0x20] sm:$0xff] %vm316_vm4, %v4318_v59  ;;  %322 = vst.msk [vmem:[%s5454_s27 + $0x28] sm:$0xff] %vm316_vm4, %v4318_v59  ;;  %v3219_v43 = vsel %vm2996_vm3, %v2814_v12, -inf  ;;  %v3009_v47 = vsel %vm2996_vm3, %v2744_v15, -inf  ;;  %v2745_v62 = vmax.f32 %v2249_v45, 0.0 }
 0x30a   : > { %323 = vst.msk [vmem:[%s5454_s27 + $0x30] sm:$0xff] %vm316_vm4, %v4318_v59  ;;  %324 = vst.msk [vmem:[%s5454_s27 + $0x38] sm:$0xff] %vm316_vm4, %v4318_v59  ;;  %v3018_v34 = vsel %vm2996_vm3, %v2747_v49, -inf  ;;  %v3213_v49 = vsel %vm2996_vm3, %v2812_v29, -inf }
 0x30b   : > { %v5461_v1 = vpop.f32.mrb[16].mxu0  ;;  %v5463_v16 = vpop.f32.mrb[24].mxu1  ;;  %325 = vst.msk [vmem:[%s5454_s27 + $0x40] sm:$0xff] %vm316_vm4, %v4318_v59  ;;  %326 = vst.msk [vmem:[%s5454_s27 + $0x48] sm:$0xff] %vm316_vm4, %v4318_v59 }
 0x30c   : > { %327 = vst.msk [vmem:[%s5454_s27 + $0x50] sm:$0xff] %vm316_vm4, %v4318_v59  ;;  %328 = vst.msk [vmem:[%s5454_s27 + $0x58] sm:$0xff] %vm316_vm4, %v4318_v59  ;;  %v2261_v44 = vpop.f32.mrb[17].mxu0  ;;  %v2533_v31 = vpop.f32.mrb[25].mxu1  ;;  %v2270_v11 = vadd.f32 %v5461_v1, %v4945_v32  ;;  %v2521_v32 = vadd.f32 %v5440_v38, %v5369_v60  ;;  %v2542_v15 = vadd.f32 %v5463_v16, %v5379_v40  ;;  %v3012_v60 = vsel %vm2996_vm3, %v2745_v62, -inf }
 0x30d   : > { %329 = vst.msk [vmem:[%s5454_s27 + $0x60] sm:$0xff] %vm316_vm4, %v4318_v59  ;;  %330 = vst.msk [vmem:[%s5454_s27 + $0x68] sm:$0xff] %vm316_vm4, %v4318_v59  ;;  %v3965_v63 = vpop.f32.mrb[18].mxu0  ;;  %v4033_v37 = vpop.f32.mrb[26].mxu1  ;;  %3016 = vmax.xlane.f32.xlu1 %v3015_v10  ;;  %3211 = vmax.xlane.f32.xlu0 %v5466_v2  ;;  %v2262_v40 = vadd.f32 %v2261_v44, %v4924_v21  ;;  %v2534_v21 = vadd.f32 %v2533_v31, %v5375_v14 }
 0x30e   : > { %331 = vst.msk [vmem:[%s5454_s27 + $0x70] sm:$0xff] %vm316_vm4, %v4318_v59  ;;  %332 = vst.msk [vmem:[%s5454_s27 + $0x78] sm:$0xff] %vm316_vm4, %v4318_v59  ;;  %v5863_v48 = vpop.f32.mrb[27].mxu1  ;;  %v5873_v2 = vpop.permute.xlu1 %1668  ;;  %v2750_v1 = vmax.f32 %v2270_v11, 0.0  ;;  %v2818_v38 = vmax.f32 %v2542_v15, 0.0  ;;  %v2273_v29 = vadd.f32 %v3965_v63, %v4940_v28  ;;  %v2545_v15 = vadd.f32 %v4033_v37, %v5381_v25 }
 0x30f   : > { %333 = vst.msk [vmem:[%s5454_s27 + $0x80] sm:$0xff] %vm316_vm4, %v4318_v59  ;;  %334 = vst.msk [vmem:[%s5454_s27 + $0x88] sm:$0xff] %vm316_vm4, %v4318_v59  ;;  %v5875_v10 = vpop.permute.xlu0 %1673  ;;  %v2748_v44 = vmax.f32 %v2262_v40, 0.0 }
 0x310   : > { %335 = vst.msk [vmem:[%s5454_s27 + $0x90] sm:$0xff] %vm316_vm4, %v4318_v59  ;;  %336 = vst.msk [vmem:[%s5454_s27 + $0x98] sm:$0xff] %vm316_vm4, %v4318_v59  ;;  %v3027_v11 = vsel %vm2996_vm3, %v2750_v1, -inf  ;;  %v2751_v63 = vmax.f32 %v2273_v29, 0.0  ;;  %v3231_v1 = vsel %vm2996_vm3, %v2818_v38, -inf  ;;  %v2819_v31 = vmax.f32 %v2545_v15, 0.0 }
 0x311   : > { %337 = vst.msk [vmem:[%s5454_s27 + $0xa0] sm:$0xff] %vm316_vm4, %v4318_v59  ;;  %338 = vst.msk [vmem:[%s5454_s27 + $0xa8] sm:$0xff] %vm316_vm4, %v4318_v59  ;;  %3220 = vmax.xlane.f32.xlu1 %v3219_v43  ;;  %3205 = vmax.xlane.f32.xlu0 %v3204_v8  ;;  %v3222_v43 = vsel %vm2996_vm3, %v2815_v30, -inf  ;;  %v3021_v38 = vsel %vm2996_vm3, %v2748_v44, -inf }
 0x312   : > { %339 = vst.msk [vmem:[%s5454_s27 + $0xb0] sm:$0xff] %vm316_vm4, %v4318_v59  ;;  %340 = vst.msk [vmem:[%s5454_s27 + $0xb8] sm:$0xff] %vm316_vm4, %v4318_v59  ;;  %v3030_v40 = vsel %vm2996_vm3, %v2751_v63, -inf  ;;  %v3234_v15 = vsel %vm2996_vm3, %v2819_v31, -inf }
 0x313   : > { %341 = vst.msk [vmem:[%s5454_s27 + $0xc0] sm:$0xff] %vm316_vm4, %v4318_v59  ;;  %342 = vst.msk [vmem:[%s5454_s27 + $0xc8] sm:$0xff] %vm316_vm4, %v4318_v59  ;;  %v5879_v7 = vpop.f32.mrb[28].mxu1 }
 0x314   : > { %343 = vst.msk [vmem:[%s5454_s27 + $0xd0] sm:$0xff] %vm316_vm4, %v4318_v59  ;;  %344 = vst.msk [vmem:[%s5454_s27 + $0xd8] sm:$0xff] %vm316_vm4, %v4318_v59  ;;  %v5885_v12 = vpop.f32.mrb[29].mxu1  ;;  %v2558_v44 = vadd.f32 %v5879_v7, %v5387_v6 }
 0x315   : > { %345 = vst.msk [vmem:[%s5454_s27 + $0xe0] sm:$0xff] %vm316_vm4, %v4318_v59  ;;  %346 = vst.msk [vmem:[%s5454_s27 + $0xe8] sm:$0xff] %vm316_vm4, %v4318_v59  ;;  %v5891_v57 = vpop.f32.mrb[30].mxu1  ;;  %3010 = vmax.xlane.f32.xlu1 %v3009_v47  ;;  %3019 = vmax.xlane.f32.xlu0 %v3018_v34  ;;  %v5903_v47 = vpop.permute.xlu1 %1678 }
 0x316   : > { %347 = vst.msk [vmem:[%s5454_s27 + $0xf0] sm:$0xff] %vm316_vm4, %v4318_v59  ;;  %348 = vst.msk [vmem:[%s5454_s27 + $0xf8] sm:$0xff] %vm316_vm4, %v4318_v59  ;;  %v5895_v19 = vpop.f32.mrb[31].mxu1  ;;  %v5905_v34 = vpop.permute.xlu0 %1683 }
 0x317   : > { %349 = vst.msk [vmem:[%s5454_s27 + $0x100] sm:$0xff] %vm316_vm4, %v4318_v59  ;;  %350 = vst.msk [vmem:[%s5454_s27 + $0x108] sm:$0xff] %vm316_vm4, %v4318_v59 }
 0x318   : > { %351 = vst.msk [vmem:[%s5454_s27 + $0x110] sm:$0xff] %vm316_vm4, %v4318_v59  ;;  %352 = vst.msk [vmem:[%s5454_s27 + $0x118] sm:$0xff] %vm316_vm4, %v4318_v59 }
 0x319   : > { %353 = vst.msk [vmem:[%s5454_s27 + $0x120] sm:$0xff] %vm316_vm4, %v4318_v59  ;;  %354 = vst.msk [vmem:[%s5454_s27 + $0x128] sm:$0xff] %vm316_vm4, %v4318_v59  ;;  %3214 = vmax.xlane.f32.xlu1 %v3213_v49  ;;  %3223 = vmax.xlane.f32.xlu0 %v3222_v43 }
 0x31a   : > { %355 = vst.msk [vmem:[%s5454_s27 + $0x130] sm:$0xff] %vm316_vm4, %v4318_v59  ;;  %356 = vst.msk [vmem:[%s5454_s27 + $0x138] sm:$0xff] %vm316_vm4, %v4318_v59 }
 0x31b   : > { %357 = vst.msk [vmem:[%s5454_s27 + $0x140] sm:$0xff] %vm316_vm4, %v4318_v59  ;;  %358 = vst.msk [vmem:[%s5454_s27 + $0x148] sm:$0xff] %vm316_vm4, %v4318_v59  ;;  %v5909_v45 = vpop.f32.mrb[32].mxu1 }
 0x31c   : > { %359 = vst.msk [vmem:[%s5454_s27 + $0x150] sm:$0xff] %vm316_vm4, %v4318_v59  ;;  %360 = vst.msk [vmem:[%s5454_s27 + $0x158] sm:$0xff] %vm316_vm4, %v4318_v59  ;;  %v5916_v30 = vpop.f32.mrb[33].mxu1 }
 0x31d   : > { %361 = vst.msk [vmem:[%s5454_s27 + $0x160] sm:$0xff] %vm316_vm4, %v4318_v59  ;;  %362 = vst.msk [vmem:[%s5454_s27 + $0x168] sm:$0xff] %vm316_vm4, %v4318_v59  ;;  %3028 = vmax.xlane.f32.xlu1 %v3027_v11  ;;  %3013 = vmax.xlane.f32.xlu0 %v3012_v60  ;;  %v5933_v11 = vpop.permute.xlu0 %1693  ;;  %v2816_v60 = vmax.f32 %v2534_v21, 0.0 }
 0x31e   : > { %363 = vst.msk [vmem:[%s5454_s27 + $0x170] sm:$0xff] %vm316_vm4, %v4318_v59  ;;  %364 = vst.msk [vmem:[%s5454_s27 + $0x178] sm:$0xff] %vm316_vm4, %v4318_v59 }
 0x31f   : > { %365 = vst.msk [vmem:[%s5454_s27 + $0x180] sm:$0xff] %vm316_vm4, %v4318_v59  ;;  %366 = vst.msk [vmem:[%s5454_s27 + $0x188] sm:$0xff] %vm316_vm4, %v4318_v59  ;;  %v3225_v63 = vsel %vm2996_vm3, %v2816_v60, -inf }
 0x320   : > { %367 = vst.msk [vmem:[%s5454_s27 + $0x190] sm:$0xff] %vm316_vm4, %v4318_v59  ;;  %368 = vst.msk [vmem:[%s5454_s27 + $0x198] sm:$0xff] %vm316_vm4, %v4318_v59 }
 0x321   : > { %369 = vst.msk [vmem:[%s5454_s27 + $0x1a0] sm:$0xff] %vm316_vm4, %v4318_v59  ;;  %370 = vst.msk [vmem:[%s5454_s27 + $0x1a8] sm:$0xff] %vm316_vm4, %v4318_v59  ;;  %3232 = vmax.xlane.f32.xlu1 %v3231_v1 }
 0x322   : > { %371 = vst.msk [vmem:[%s5454_s27 + $0x1b0] sm:$0xff] %vm316_vm4, %v4318_v59  ;;  %372 = vst.msk [vmem:[%s5454_s27 + $0x1b8] sm:$0xff] %vm316_vm4, %v4318_v59 }
 0x323   : > { %373 = vst.msk [vmem:[%s5454_s27 + $0x1c0] sm:$0xff] %vm316_vm4, %v4318_v59  ;;  %374 = vst.msk [vmem:[%s5454_s27 + $0x1c8] sm:$0xff] %vm316_vm4, %v4318_v59 }
 0x324   : > { %375 = vst.msk [vmem:[%s5454_s27 + $0x1d0] sm:$0xff] %vm316_vm4, %v4318_v59  ;;  %376 = vst.msk [vmem:[%s5454_s27 + $0x1d8] sm:$0xff] %vm316_vm4, %v4318_v59 }
 0x325   : > { %377 = vst.msk [vmem:[%s5454_s27 + $0x1e0] sm:$0xff] %vm316_vm4, %v4318_v59  ;;  %378 = vst.msk [vmem:[%s5454_s27 + $0x1e8] sm:$0xff] %vm316_vm4, %v4318_v59  ;;  %3022 = vmax.xlane.f32.xlu1 %v3021_v38  ;;  %v5964_v38 = vpop.permute.xlu0 %1703 }
 0x326   : > { %379 = vst.msk [vmem:[%s5454_s27 + $0x1f0] sm:$0xff] %vm316_vm4, %v4318_v59  ;;  %380 = vst.msk [vmem:[%s5454_s27 + $0x1f8] sm:$0xff] %vm316_vm4, %v4318_v59 }
 0x327   : > { %381 = vst.msk [vmem:[%s5454_s27 + $0x200] sm:$0xff] %vm316_vm4, %v4318_v59  ;;  %382 = vst.msk [vmem:[%s5454_s27 + $0x208] sm:$0xff] %vm316_vm4, %v4318_v59 }
 0x328   : > { %383 = vst.msk [vmem:[%s5454_s27 + $0x210] sm:$0xff] %vm316_vm4, %v4318_v59  ;;  %384 = vst.msk [vmem:[%s5454_s27 + $0x218] sm:$0xff] %vm316_vm4, %v4318_v59 }
 0x329   : > { %385 = vst.msk [vmem:[%s5454_s27 + $0x220] sm:$0xff] %vm316_vm4, %v4318_v59  ;;  %386 = vst.msk [vmem:[%s5454_s27 + $0x228] sm:$0xff] %vm316_vm4, %v4318_v59  ;;  %3226 = vmax.xlane.f32.xlu1 %v3225_v63 }
 0x32a   : > { %388 = vst.msk [vmem:[%s5454_s27 + $0x238] sm:$0xff] %vm316_vm4, %v4318_v59  ;;  %389 = vst.msk [vmem:[%s5454_s27 + $0x240] sm:$0xff] %vm316_vm4, %v4318_v59 }
 0x32b   : > { %390 = vst.msk [vmem:[%s5454_s27 + $0x248] sm:$0xff] %vm316_vm4, %v4318_v59  ;;  %391 = vst.msk [vmem:[%s5454_s27 + $0x250] sm:$0xff] %vm316_vm4, %v4318_v59 }
 0x32c   : > { %392 = vst.msk [vmem:[%s5454_s27 + $0x258] sm:$0xff] %vm316_vm4, %v4318_v59  ;;  %393 = vst.msk [vmem:[%s5454_s27 + $0x260] sm:$0xff] %vm316_vm4, %v4318_v59 }
 0x32d   : > { %394 = vst.msk [vmem:[%s5454_s27 + $0x268] sm:$0xff] %vm316_vm4, %v4318_v59  ;;  %395 = vst.msk [vmem:[%s5454_s27 + $0x270] sm:$0xff] %vm316_vm4, %v4318_v59 }
 0x32e   : > { %396 = vst.msk [vmem:[%s5454_s27 + $0x278] sm:$0xff] %vm316_vm4, %v4318_v59  ;;  %397 = vst.msk [vmem:[%s5454_s27 + $0x280] sm:$0xff] %vm316_vm4, %v4318_v59 }
 0x32f   : > { %398 = vst.msk [vmem:[%s5454_s27 + $0x288] sm:$0xff] %vm316_vm4, %v4318_v59  ;;  %399 = vst.msk [vmem:[%s5454_s27 + $0x290] sm:$0xff] %vm316_vm4, %v4318_v59 }
 0x330   : > { %400 = vst.msk [vmem:[%s5454_s27 + $0x298] sm:$0xff] %vm316_vm4, %v4318_v59  ;;  %401 = vst.msk [vmem:[%s5454_s27 + $0x2a0] sm:$0xff] %vm316_vm4, %v4318_v59 }
 0x331   : > { %402 = vst.msk [vmem:[%s5454_s27 + $0x2a8] sm:$0xff] %vm316_vm4, %v4318_v59  ;;  %403 = vst.msk [vmem:[%s5454_s27 + $0x2b0] sm:$0xff] %vm316_vm4, %v4318_v59 }
 0x332   : > { %404 = vst.msk [vmem:[%s5454_s27 + $0x2b8] sm:$0xff] %vm316_vm4, %v4318_v59  ;;  %405 = vst.msk [vmem:[%s5454_s27 + $0x2c0] sm:$0xff] %vm316_vm4, %v4318_v59 }
 0x333   : > { %406 = vst.msk [vmem:[%s5454_s27 + $0x2c8] sm:$0xff] %vm316_vm4, %v4318_v59  ;;  %407 = vst.msk [vmem:[%s5454_s27 + $0x2d0] sm:$0xff] %vm316_vm4, %v4318_v59 }
 0x334   : > { %408 = vst.msk [vmem:[%s5454_s27 + $0x2d8] sm:$0xff] %vm316_vm4, %v4318_v59  ;;  %409 = vst.msk [vmem:[%s5454_s27 + $0x2e0] sm:$0xff] %vm316_vm4, %v4318_v59 }
 0x335   : > { %410 = vst.msk [vmem:[%s5454_s27 + $0x2e8] sm:$0xff] %vm316_vm4, %v4318_v59  ;;  %411 = vst.msk [vmem:[%s5454_s27 + $0x2f0] sm:$0xff] %vm316_vm4, %v4318_v59 }
 0x336   : > { %412 = vst.msk [vmem:[%s5454_s27 + $0x2f8] sm:$0xff] %vm316_vm4, %v4318_v59  ;;  %413 = vst.msk [vmem:[%s5454_s27 + $0x300] sm:$0xff] %vm316_vm4, %v4318_v59 }
 0x337   : > { %414 = vst.msk [vmem:[%s5454_s27 + $0x308] sm:$0xff] %vm316_vm4, %v4318_v59  ;;  %415 = vst.msk [vmem:[%s5454_s27 + $0x310] sm:$0xff] %vm316_vm4, %v4318_v59 }
 0x338   : > { %416 = vst.msk [vmem:[%s5454_s27 + $0x318] sm:$0xff] %vm316_vm4, %v4318_v59  ;;  %417 = vst.msk [vmem:[%s5454_s27 + $0x320] sm:$0xff] %vm316_vm4, %v4318_v59 }
 0x339   : > { %418 = vst.msk [vmem:[%s5454_s27 + $0x328] sm:$0xff] %vm316_vm4, %v4318_v59  ;;  %419 = vst.msk [vmem:[%s5454_s27 + $0x330] sm:$0xff] %vm316_vm4, %v4318_v59 }
 0x33a   : > { %420 = vst.msk [vmem:[%s5454_s27 + $0x338] sm:$0xff] %vm316_vm4, %v4318_v59  ;;  %421 = vst.msk [vmem:[%s5454_s27 + $0x340] sm:$0xff] %vm316_vm4, %v4318_v59 }
 0x33b   : > { %422 = vst.msk [vmem:[%s5454_s27 + $0x348] sm:$0xff] %vm316_vm4, %v4318_v59  ;;  %423 = vst.msk [vmem:[%s5454_s27 + $0x350] sm:$0xff] %vm316_vm4, %v4318_v59 }
 0x33c   : > { %424 = vst.msk [vmem:[%s5454_s27 + $0x358] sm:$0xff] %vm316_vm4, %v4318_v59  ;;  %425 = vst.msk [vmem:[%s5454_s27 + $0x360] sm:$0xff] %vm316_vm4, %v4318_v59 }
 0x33d   : > { %426 = vst.msk [vmem:[%s5454_s27 + $0x368] sm:$0xff] %vm316_vm4, %v4318_v59  ;;  %427 = vst.msk [vmem:[%s5454_s27 + $0x370] sm:$0xff] %vm316_vm4, %v4318_v59 }
 0x33e   : > { %428 = vst.msk [vmem:[%s5454_s27 + $0x378] sm:$0xff] %vm316_vm4, %v4318_v59  ;;  %429 = vst.msk [vmem:[%s5454_s27 + $0x380] sm:$0xff] %vm316_vm4, %v4318_v59 }
 0x33f   : > { %430 = vst.msk [vmem:[%s5454_s27 + $0x388] sm:$0xff] %vm316_vm4, %v4318_v59  ;;  %431 = vst.msk [vmem:[%s5454_s27 + $0x390] sm:$0xff] %vm316_vm4, %v4318_v59 }
 0x340   : > { %432 = vst.msk [vmem:[%s5454_s27 + $0x398] sm:$0xff] %vm316_vm4, %v4318_v59  ;;  %433 = vst.msk [vmem:[%s5454_s27 + $0x3a0] sm:$0xff] %vm316_vm4, %v4318_v59 }
 0x341   : > { %434 = vst.msk [vmem:[%s5454_s27 + $0x3a8] sm:$0xff] %vm316_vm4, %v4318_v59  ;;  %435 = vst.msk [vmem:[%s5454_s27 + $0x3b0] sm:$0xff] %vm316_vm4, %v4318_v59 }
 0x342   : > { %436 = vst.msk [vmem:[%s5454_s27 + $0x3b8] sm:$0xff] %vm316_vm4, %v4318_v59  ;;  %437 = vst.msk [vmem:[%s5454_s27 + $0x3c0] sm:$0xff] %vm316_vm4, %v4318_v59 }
 0x343   : > { %438 = vst.msk [vmem:[%s5454_s27 + $0x3c8] sm:$0xff] %vm316_vm4, %v4318_v59  ;;  %439 = vst.msk [vmem:[%s5454_s27 + $0x3d0] sm:$0xff] %vm316_vm4, %v4318_v59 }
 0x344   : > { %440 = vst.msk [vmem:[%s5454_s27 + $0x3d8] sm:$0xff] %vm316_vm4, %v4318_v59  ;;  %441 = vst.msk [vmem:[%s5454_s27 + $0x3e0] sm:$0xff] %vm316_vm4, %v4318_v59 }
 0x345   : > { %442 = vst.msk [vmem:[%s5454_s27 + $0x3e8] sm:$0xff] %vm316_vm4, %v4318_v59  ;;  %443 = vst.msk [vmem:[%s5454_s27 + $0x3f0] sm:$0xff] %vm316_vm4, %v4318_v59 }
 0x346   : > { %444 = vst.msk [vmem:[%s5454_s27 + $0x3f8] sm:$0xff] %vm316_vm4, %v4318_v59  ;;  %v5861_v59 = vpop.f32.mrb[19].mxu0  ;;  %6937 = vst [vmem:[#allocation55_spill] sm:$0xff] %v5873_v2 }
 0x347   : > { %6938 = vst [vmem:[#allocation56_spill] sm:$0xff] %v5875_v10  ;;  %v3968_v20 = vpop.f32.mrb[20].mxu0  ;;  %6939 = vst [vmem:[#allocation57_spill] sm:$0xff] %v5903_v47  ;;  %v2813_v10 = vmax.f32 %v2521_v32, 0.0  ;;  %v5921_v32 = vpop.f32.mrb[34].mxu1 }
 0x348   : > { %v5883_v4 = vpop.f32.mrb[21].mxu0  ;;  %6940 = vst [vmem:[#allocation58_spill] sm:$0xff] %v5905_v34  ;;  %v5925_v62 = vpop.f32.mrb[35].mxu1  ;;  %6941 = vst [vmem:[#allocation59_spill] sm:$0xff] %v5933_v11  ;;  %v2265_v34 = vadd.f32 %v5861_v59, %v4919_v17 }
 0x349   : > { %v5889_v8 = vpop.f32.mrb[22].mxu0  ;;  %v3216_v28 = vsel %vm2996_vm3, %v2813_v10, -inf  ;;  %v5931_v47 = vpop.permute.xlu1 %1688  ;;  %v2286_v10 = vadd.f32 %v3968_v20, %v4985_v53  ;;  %v2537_v53 = vadd.f32 %v5863_v48, %v5377_v50  ;;  %6943 = vst [vmem:[#allocation61_spill] sm:$0xff] %v5964_v38  ;;  %v2822_v48 = vmax.f32 %v2558_v44, 0.0 }
 0x34a   : > { %v5893_v52 = vpop.f32.mrb[23].mxu0  ;;  %3217 = vmax.xlane.f32.xlu0 %v3216_v28  ;;  %v5939_v14 = vpop.f32.mrb[36].mxu1  ;;  %v2749_v28 = vmax.f32 %v2265_v34, 0.0  ;;  %v2278_v6 = vadd.f32 %v5883_v4, %v4962_v42  ;;  %v2289_v7 = vadd.f32 %v5889_v8, %v4980_v26  ;;  %v2550_v42 = vadd.f32 %v5885_v12, %v5383_v39 }
 0x34b   : > { %v5907_v2 = vpop.f32.mrb[24].mxu0  ;;  %v5944_v37 = vpop.f32.mrb[37].mxu1  ;;  %v2754_v20 = vmax.f32 %v2286_v10, 0.0  ;;  %v2281_v38 = vadd.f32 %v5893_v52, %v4959_v41 }
 0x34c   : > { %v5914_v16 = vpop.f32.mrb[25].mxu0  ;;  %v5950_v21 = vpop.f32.mrb[38].mxu1  ;;  %v3024_v50 = vsel %vm2996_vm3, %v2749_v28, -inf  ;;  %v2752_v4 = vmax.f32 %v2278_v6, 0.0  ;;  %v2755_v8 = vmax.f32 %v2289_v7, 0.0 }
 0x34d   : > { %v5919_v49 = vpop.f32.mrb[26].mxu0  ;;  %v5954_v59 = vpop.f32.mrb[39].mxu1  ;;  %v3039_v10 = vsel %vm2996_vm3, %v2754_v20, -inf  ;;  %v2561_v20 = vadd.f32 %v5891_v57, %v5389_v18  ;;  %v2302_v18 = vadd.f32 %v5907_v2, %v5017_v35  ;;  %v2553_v35 = vadd.f32 %v5895_v19, %v5385_v22 }
 0x34e   : > { %v5923_v43 = vpop.f32.mrb[27].mxu0  ;;  %3031 = vmax.xlane.f32.xlu0 %v3030_v40  ;;  %v5962_v1 = vpop.permute.xlu1 %1698  ;;  %v2817_v40 = vmax.f32 %v2537_v53, 0.0  ;;  %3040 = vmax.xlane.f32.xlu1 %v3039_v10  ;;  %v3033_v6 = vsel %vm2996_vm3, %v2752_v4, -inf  ;;  %v3042_v7 = vsel %vm2996_vm3, %v2755_v8, -inf  ;;  %v2574_v4 = vadd.f32 %v5909_v45, %v5395_v33 }
 0x34f   : > { %v5937_v46 = vpop.f32.mrb[28].mxu0  ;;  %6942 = vst [vmem:[#allocation60_spill] sm:$0xff] %v5962_v1  ;;  %v5968_v34 = vpop.f32.mrb[40].mxu1  ;;  %v2820_v1 = vmax.f32 %v2550_v42, 0.0  ;;  %v2758_v2 = vmax.f32 %v2302_v18, 0.0  ;;  %v2294_v33 = vadd.f32 %v5914_v16, %v5000_v36  ;;  %v2305_v45 = vadd.f32 %v5919_v49, %v5012_v3 }
 0x350   : > { %v5942_v25 = vpop.f32.mrb[29].mxu0  ;;  %v5977_v31 = vpop.f32.mrb[41].mxu1  ;;  %v3228_v26 = vsel %vm2996_vm3, %v2817_v40, -inf  ;;  %v2823_v40 = vmax.f32 %v2561_v20, 0.0  ;;  %v2753_v20 = vmax.f32 %v2281_v38, 0.0  ;;  %v2826_v19 = vmax.f32 %v2574_v4, 0.0 }
 0x351   : > { %v5948_v29 = vpop.f32.mrb[30].mxu0  ;;  %v5982_v63 = vpop.f32.mrb[42].mxu1  ;;  %v3237_v8 = vsel %vm2996_vm3, %v2820_v1, -inf  ;;  %v3051_v18 = vsel %vm2996_vm3, %v2758_v2, -inf  ;;  %v2566_v36 = vadd.f32 %v5916_v30, %v5391_v51  ;;  %v2756_v16 = vmax.f32 %v2294_v33, 0.0 }
 0x352   : > { %v5952_v17 = vpop.f32.mrb[31].mxu0  ;;  %3235 = vmax.xlane.f32.xlu0 %v3234_v15  ;;  %v5986_v44 = vpop.f32.mrb[43].mxu1  ;;  %v3243_v15 = vsel %vm2996_vm3, %v2822_v48, -inf  ;;  %v3036_v22 = vsel %vm2996_vm3, %v2753_v20, -inf  ;;  %v2759_v49 = vmax.f32 %v2305_v45, 0.0  ;;  %v2577_v2 = vadd.f32 %v5921_v32, %v5397_v54 }
 0x353   : > { %v5966_v11 = vpop.f32.mrb[32].mxu0  ;;  %3244 = vmax.xlane.f32.xlu1 %v3243_v15  ;;  %v5994_v10 = vpop.permute.xlu1 %1708  ;;  %v3246_v15 = vsel %vm2996_vm3, %v2823_v40, -inf  ;;  %v2318_v54 = vadd.f32 %v5937_v46, %v5043_v27  ;;  %v3045_v33 = vsel %vm2996_vm3, %v2756_v16, -inf  ;;  %v2569_v27 = vadd.f32 %v5925_v62, %v5393_v0 }
 0x354   : > { %v5975_v60 = vpop.f32.mrb[33].mxu0  ;;  %6944 = vst [vmem:[#allocation62_spill] sm:$0xff] %v5994_v10  ;;  %v6002_v12 = vpop.f32.mrb[44].mxu1  ;;  %v3054_v45 = vsel %vm2996_vm3, %v2759_v49, -inf  ;;  %v2590_v16 = vadd.f32 %v5939_v14, %v5403_v56  ;;  %v2310_v56 = vadd.f32 %v5942_v25, %v5027_v13  ;;  %v2321_v14 = vadd.f32 %v5948_v29, %v5038_v23 }
 0x355   : > { %v5980_v53 = vpop.f32.mrb[34].mxu0  ;;  %v6008_v48 = vpop.f32.mrb[45].mxu1  ;;  %v2762_v46 = vmax.f32 %v2318_v54, 0.0  ;;  %v2582_v13 = vadd.f32 %v5944_v37, %v5399_v55 }
 0x356   : > { %3025 = vmax.xlane.f32.xlu0 %v3024_v50  ;;  %v5984_v28 = vpop.f32.mrb[35].mxu0  ;;  %v5996_v50 = vpop.permute.xlu0 %1713  ;;  %v2830_v62 = vmax.f32 %v2590_v16, 0.0  ;;  %v2760_v25 = vmax.f32 %v2310_v56, 0.0  ;;  %v2763_v29 = vmax.f32 %v2321_v14, 0.0 }
 0x357   : > { %6945 = vst [vmem:[#allocation63_spill] sm:$0xff] %v5996_v50  ;;  %v6000_v39 = vpop.f32.mrb[36].mxu0  ;;  %3034 = vmax.xlane.f32.xlu1 %v3033_v6  ;;  %v6026_v6 = vpop.permute.xlu1 %1718  ;;  %v2821_v50 = vmax.f32 %v2553_v35, 0.0  ;;  %v3063_v54 = vsel %vm2996_vm3, %v2762_v46, -inf  ;;  %v2593_v46 = vadd.f32 %v5950_v21, %v5405_v24 }
 0x358   : > { %v6006_v57 = vpop.f32.mrb[37].mxu0  ;;  %6946 = vst [vmem:[#allocation64_spill] sm:$0xff] %v6026_v6  ;;  %v2824_v6 = vmax.f32 %v2566_v36, 0.0  ;;  %v3066_v14 = vsel %vm2996_vm3, %v2763_v29, -inf }
 0x359   : > { %v6012_v42 = vpop.f32.mrb[38].mxu0  ;;  %v3240_v3 = vsel %vm2996_vm3, %v2821_v50, -inf  ;;  %v2827_v50 = vmax.f32 %v2577_v2, 0.0  ;;  %v2831_v37 = vmax.f32 %v2593_v46, 0.0 }
 0x35a   : > { %3229 = vmax.xlane.f32.xlu0 %v3228_v26  ;;  %v6014_v26 = vpop.f32.mrb[46].mxu1  ;;  %v6016_v41 = vpop.f32.mrb[39].mxu0  ;;  %v3249_v49 = vsel %vm2996_vm3, %v2824_v6, -inf }
 0x35b   : > { %v6018_v52 = vpop.f32.mrb[47].mxu1  ;;  %3238 = vmax.xlane.f32.xlu1 %v3237_v8  ;;  %v6030_v10 = vpop.f32.mrb[40].mxu0 }
 0x35c   : > { %v6032_v38 = vpop.f32.mrb[48].mxu1  ;;  %v6039_v1 = vpop.f32.mrb[41].mxu0 }
 0x35d   : > { %v6041_v40 = vpop.f32.mrb[49].mxu1  ;;  %v6044_v35 = vpop.f32.mrb[42].mxu0 }
 0x35e   : > { %3043 = vmax.xlane.f32.xlu0 %v3042_v7  ;;  %v6028_v7 = vpop.permute.xlu0 %1723  ;;  %v6046_v8 = vpop.f32.mrb[50].mxu1 }
 0x35f   : > { %6947 = vst [vmem:[#allocation65_spill] sm:$0xff] %v6028_v7  ;;  %3052 = vmax.xlane.f32.xlu1 %v3051_v18  ;;  %v6048_v20 = vpop.f32.mrb[43].mxu0  ;;  %v6050_v4 = vpop.f32.mrb[51].mxu1  ;;  %v2297_v7 = vadd.f32 %v5923_v43, %v4995_v61 }
 0x360   : > { %v6058_v18 = vpop.permute.xlu1 %1728  ;;  %v6064_v51 = vpop.f32.mrb[44].mxu0 }
 0x361   : > { %6948 = vst [vmem:[#allocation66_spill] sm:$0xff] %v6058_v18  ;;  %v6066_v30 = vpop.f32.mrb[52].mxu1  ;;  %v6070_v32 = vpop.f32.mrb[45].mxu0  ;;  %v2757_v2 = vmax.f32 %v2297_v7, 0.0 }
 0x362   : > { %3247 = vmax.xlane.f32.xlu0 %v3246_v15  ;;  %v3255_v15 = vsel %vm2996_vm3, %v2826_v19, -inf  ;;  %v6072_v19 = vpop.f32.mrb[53].mxu1  ;;  %v6076_v36 = vpop.f32.mrb[46].mxu0 }
 0x363   : > { %3256 = vmax.xlane.f32.xlu1 %v3255_v15  ;;  %v6080_v61 = vpop.f32.mrb[47].mxu0  ;;  %v3258_v15 = vsel %vm2996_vm3, %v2827_v50, -inf  ;;  %v3048_v0 = vsel %vm2996_vm3, %v2757_v2, -inf }
 0x364   : > { %v6094_v18 = vpop.f32.mrb[48].mxu0 }
 0x365   : > { %v6103_v6 = vpop.f32.mrb[49].mxu0 }
 0x366   : > { %3037 = vmax.xlane.f32.xlu0 %v3036_v22  ;;  %v6060_v22 = vpop.permute.xlu0 %1733 }
 0x367   : > { %6949 = vst [vmem:[#allocation67_spill] sm:$0xff] %v6060_v22  ;;  %3046 = vmax.xlane.f32.xlu1 %v3045_v33  ;;  %v6090_v33 = vpop.permute.xlu1 %1738  ;;  %v2825_v22 = vmax.f32 %v2569_v27, 0.0  ;;  %v6108_v27 = vpop.f32.mrb[50].mxu0 }
 0x368   : > { %6950 = vst [vmem:[#allocation68_spill] sm:$0xff] %v6090_v33  ;;  %v6112_v2 = vpop.f32.mrb[51].mxu0  ;;  %v2828_v33 = vmax.f32 %v2582_v13, 0.0 }
 0x369   : > { %v3252_v23 = vsel %vm2996_vm3, %v2825_v22, -inf  ;;  %v6954_v22 = vld [vmem:[#allocation8_spill] sm:$0xff] }
 0x36a   : > { %3241 = vmax.xlane.f32.xlu0 %v3240_v3  ;;  %v6078_v3 = vpop.f32.mrb[54].mxu1  ;;  %v2334_v56 = vadd.f32 %v5966_v11, %v6954_v22  ;;  %v3261_v29 = vsel %vm2996_vm3, %v2828_v33, -inf }
 0x36b   : > { %v6082_v43 = vpop.f32.mrb[55].mxu1  ;;  %3250 = vmax.xlane.f32.xlu1 %v3249_v49 }
 0x36c   : > { %v6096_v7 = vpop.f32.mrb[56].mxu1 }
 0x36d   : > { %v6105_v50 = vpop.f32.mrb[57].mxu1 }
 0x36e   : > { %3055 = vmax.xlane.f32.xlu0 %v3054_v45  ;;  %v6092_v45 = vpop.permute.xlu0 %1743  ;;  %v6110_v49 = vpop.f32.mrb[58].mxu1 }
 0x36f   : > { %6951 = vst [vmem:[#allocation69_spill] sm:$0xff] %v6092_v45  ;;  %3064 = vmax.xlane.f32.xlu1 %v3063_v54  ;;  %v6114_v16 = vpop.f32.mrb[59].mxu1  ;;  %v1749_v54 = vpop.permute.xlu1 %1748  ;;  %v2313_v45 = vadd.f32 %v5952_v17, %v5025_v9 }
 0x370   : > { %6952 = vst [vmem:[#allocation70_spill] sm:$0xff] %v6114_v16  ;;  %v6126_v16 = vpop.f32.mrb[52].mxu0  ;;  %v6128_v55 = vpop.f32.mrb[60].mxu1 }
 0x371   : > { %v6132_v24 = vpop.f32.mrb[53].mxu0  ;;  %v6134_v21 = vpop.f32.mrb[61].mxu1  ;;  %v2761_v11 = vmax.f32 %v2313_v45, 0.0 }
 0x372   : > { %3259 = vmax.xlane.f32.xlu0 %v3258_v15  ;;  %v3267_v15 = vsel %vm2996_vm3, %v2830_v62, -inf  ;;  %6955 = vst [vmem:[#allocation8_spill] sm:$0xff] %v6134_v21  ;;  %v3057_v62 = vsel %vm2996_vm3, %v2760_v25, -inf  ;;  %v6138_v13 = vpop.f32.mrb[54].mxu0  ;;  %v6959_v21 = vld [vmem:[#allocation52_spill] sm:$0xff] }
 0x373   : > { %3268 = vmax.xlane.f32.xlu1 %v3267_v15  ;;  %6956 = vst [vmem:[#allocation72_spill] sm:$0xff] %v6138_v13  ;;  %v6142_v17 = vpop.f32.mrb[55].mxu0  ;;  %v6958_v15 = vld [vmem:[#allocation49_spill] sm:$0xff]  ;;  %v2606_v25 = vadd.f32 %v5968_v34, %v6959_v21  ;;  %v3270_v13 = vsel %vm2996_vm3, %v2831_v37, -inf }
 0x374   : > { %v2585_v22 = vadd.f32 %v5954_v59, %v6958_v15  ;;  %v3060_v59 = vsel %vm2996_vm3, %v2761_v11, -inf  ;;  %v6961_v15 = vld [vmem:[#allocation7_spill] sm:$0xff] }
 0x375   : > { %v2337_v34 = vadd.f32 %v5980_v53, %v6961_v15 }
 0x376   : > { %3049 = vmax.xlane.f32.xlu0 %v3048_v0  ;;  %v6122_v0 = vpop.permute.xlu0 %1753 }
 0x377   : > { %6953 = vst [vmem:[#allocation71_spill] sm:$0xff] %v6122_v0  ;;  %3058 = vmax.xlane.f32.xlu1 %v3057_v62  ;;  %v2766_v0 = vmax.f32 %v2334_v56, 0.0  ;;  %v2829_v62 = vmax.f32 %v2585_v22, 0.0  ;;  %v2834_v56 = vmax.f32 %v2606_v25, 0.0  ;;  %v6965_v25 = vld [vmem:[#allocation50_spill] sm:$0xff] }
 0x378   : > { %v2598_v53 = vadd.f32 %v5977_v31, %v6965_v25  ;;  %v6967_v25 = vld [vmem:[#allocation11_spill] sm:$0xff] }
 0x379   : > { %v3279_v15 = vsel %vm2996_vm3, %v2834_v56, -inf }
 0x37a   : > { %3253 = vmax.xlane.f32.xlu0 %v3252_v23  ;;  %v4069_v23 = vpop.f32.mrb[62].mxu1 }
 0x37b   : > { %v6140_v9 = vadd.f32 %v4069_v23, %v1749_v54  ;;  %v6144_v46 = vpop.f32.mrb[63].mxu1  ;;  %3262 = vmax.xlane.f32.xlu1 %v3261_v29  ;;  %v1764_v54 = vpop.permute.xlu0 %1763 }
 0x37c   : > { %6957 = vst [vmem:[#allocation73_spill] sm:$0xff] %v6144_v46  ;;  %v6154_v46 = vpop.f32.mrb[56].mxu0  ;;  %v4072_v45 = vpop.f32.mrb[64].mxu1 }
 0x37d   : > { %v6159_v21 = vadd.f32 %v4072_v45, %v1764_v54  ;;  %v6161_v33 = vpop.f32.mrb[57].mxu0  ;;  %v6163_v37 = vpop.f32.mrb[65].mxu1  ;;  %v3264_v54 = vsel %vm2996_vm3, %v2829_v62, -inf  ;;  %v2767_v45 = vmax.f32 %v2337_v34, 0.0  ;;  %v2350_v62 = vadd.f32 %v6000_v39, %v6967_v25  ;;  %v6970_v39 = vld [vmem:[#allocation51_spill] sm:$0xff] }
 0x37e   : > { %3067 = vmax.xlane.f32.xlu0 %v3066_v14  ;;  %v6960_v14 = vld [vmem:[#allocation6_spill] sm:$0xff]  ;;  %v6166_v22 = vpop.f32.mrb[58].mxu0 }
 0x37f   : > { %v2326_v23 = vadd.f32 %v5975_v60, %v6960_v14  ;;  %v6168_v60 = vpop.f32.mrb[66].mxu1  ;;  %v6170_v29 = vpop.f32.mrb[59].mxu0 }
 0x380   : > { %6962 = vst [vmem:[#allocation49_spill] sm:$0xff] %v6168_v60  ;;  %6963 = vst [vmem:[#allocation52_spill] sm:$0xff] %v6170_v29  ;;  %v6172_v11 = vpop.f32.mrb[67].mxu1  ;;  %v6182_v60 = vpop.f32.mrb[60].mxu0 }
 0x381   : > { %6964 = vst [vmem:[#allocation6_spill] sm:$0xff] %v6172_v11  ;;  %v2764_v14 = vmax.f32 %v2326_v23, 0.0  ;;  %v6184_v11 = vpop.f32.mrb[68].mxu1  ;;  %v6188_v23 = vpop.f32.mrb[61].mxu0 }
 0x382   : > { %3271 = vmax.xlane.f32.xlu0 %v3270_v13  ;;  %v3075_v13 = vsel %vm2996_vm3, %v2766_v0, -inf  ;;  %v2609_v0 = vadd.f32 %v5982_v63, %v5420_v58  ;;  %v6190_v34 = vpop.f32.mrb[69].mxu1  ;;  %v3078_v63 = vsel %vm2996_vm3, %v2767_v45, -inf  ;;  %v6194_v56 = vpop.f32.mrb[62].mxu0 }
 0x383   : > { %3076 = vmax.xlane.f32.xlu1 %v3075_v13  ;;  %v2832_v13 = vmax.f32 %v2598_v53, 0.0  ;;  %v3069_v58 = vsel %vm2996_vm3, %v2764_v14, -inf  ;;  %v6196_v53 = vpop.f32.mrb[70].mxu1  ;;  %v2622_v14 = vadd.f32 %v6002_v12, %v5458_v5  ;;  %v6973_v5 = vld [vmem:[#allocation12_spill] sm:$0xff] }
 0x384   : > { %v2835_v31 = vmax.f32 %v2609_v0, 0.0  ;;  %v2353_v12 = vadd.f32 %v6012_v42, %v6973_v5 }
 0x385   : > { %v3273_v45 = vsel %vm2996_vm3, %v2832_v13, -inf }
 0x386   : > { %3061 = vmax.xlane.f32.xlu0 %v3060_v59  ;;  %v6966_v59 = vld [vmem:[#allocation5_spill] sm:$0xff]  ;;  %v3282_v25 = vsel %vm2996_vm3, %v2835_v31, -inf }
 0x387   : > { %3280 = vmax.xlane.f32.xlu1 %v3279_v15  ;;  %v2329_v29 = vadd.f32 %v5984_v28, %v6966_v59  ;;  %v6198_v28 = vpop.f32.mrb[63].mxu0  ;;  %v2601_v15 = vadd.f32 %v5986_v44, %v6970_v39  ;;  %v2770_v59 = vmax.f32 %v2350_v62, 0.0  ;;  %v2838_v44 = vmax.f32 %v2622_v14, 0.0  ;;  %v6972_v62 = vld [vmem:[#allocation10_spill] sm:$0xff] }
 0x388   : > { %6968 = vst [vmem:[#allocation7_spill] sm:$0xff] %v6198_v28  ;;  %v6210_v28 = vpop.f32.mrb[64].mxu0  ;;  %v2342_v39 = vadd.f32 %v6006_v57, %v6972_v62  ;;  %v6979_v57 = vld [vmem:[#allocation53_spill] sm:$0xff] }
 0x389   : > { %v2765_v0 = vmax.f32 %v2329_v29, 0.0  ;;  %v6219_v13 = vpop.f32.mrb[65].mxu0  ;;  %v2614_v62 = vadd.f32 %v6008_v48, %v6979_v57  ;;  %v6982_v57 = vld [vmem:[#allocation15_spill] sm:$0xff] }
 0x38a   : > { %3265 = vmax.xlane.f32.xlu0 %v3264_v54  ;;  %v6200_v54 = vpop.f32.mrb[71].mxu1  ;;  %6974 = vst [vmem:[#allocation11_spill] sm:$0xff] %v6219_v13  ;;  %v2768_v5 = vmax.f32 %v2342_v39, 0.0 }
 0x38b   : > { %3070 = vmax.xlane.f32.xlu1 %v3069_v58  ;;  %6969 = vst [vmem:[#allocation50_spill] sm:$0xff] %v6200_v54  ;;  %v6208_v58 = vpop.permute.xlu1 %1758  ;;  %v6212_v54 = vpop.f32.mrb[72].mxu1  ;;  %v3072_v29 = vsel %vm2996_vm3, %v2765_v0, -inf }
 0x38c   : > { %6971 = vst [vmem:[#allocation5_spill] sm:$0xff] %v6212_v54  ;;  %v6221_v31 = vpop.f32.mrb[73].mxu1  ;;  %v2771_v54 = vmax.f32 %v2353_v12, 0.0 }
 0x38d   : > { %6975 = vst [vmem:[#allocation51_spill] sm:$0xff] %v6221_v31  ;;  %v6980_v31 = vld [vmem:[#allocation55_spill] sm:$0xff] }
 0x38e   : > { %3079 = vmax.xlane.f32.xlu0 %v3078_v63  ;;  %v2833_v63 = vmax.f32 %v2601_v15, 0.0  ;;  %v6224_v15 = vpop.f32.mrb[66].mxu0 }
 0x38f   : > { %3274 = vmax.xlane.f32.xlu1 %v3273_v45  ;;  %v3087_v45 = vsel %vm2996_vm3, %v2770_v59, -inf  ;;  %6976 = vst [vmem:[#allocation10_spill] sm:$0xff] %v6224_v15  ;;  %v6228_v0 = vpop.f32.mrb[67].mxu0  ;;  %v2625_v59 = vadd.f32 %v6014_v26, %v6980_v31  ;;  %v3291_v15 = vsel %vm2996_vm3, %v2838_v44, -inf  ;;  %v6238_v13 = vpop.permute.xlu1 %1768  ;;  %v3081_v26 = vsel %vm2996_vm3, %v2768_v5, -inf }
 0x390   : > { %v3276_v42 = vsel %vm2996_vm3, %v2833_v63, -inf  ;;  %v2366_v63 = vadd.f32 %v6030_v10, %v6982_v57  ;;  %v3090_v44 = vsel %vm2996_vm3, %v2771_v54, -inf }
 0x391   : > { %v2839_v48 = vmax.f32 %v2625_v59, 0.0  ;;  %v6258_v59 = vpop.permute.xlu0 %1773 }
 0x392   : > { %3283 = vmax.xlane.f32.xlu0 %v3282_v25  ;;  %v6226_v25 = vpop.f32.mrb[74].mxu1  ;;  %v2774_v10 = vmax.f32 %v2366_v63, 0.0 }
 0x393   : > { %6977 = vst [vmem:[#allocation12_spill] sm:$0xff] %v6226_v25  ;;  %3088 = vmax.xlane.f32.xlu1 %v3087_v45  ;;  %v6230_v14 = vpop.f32.mrb[75].mxu1  ;;  %v6981_v45 = vld [vmem:[#allocation9_spill] sm:$0xff]  ;;  %v3294_v57 = vsel %vm2996_vm3, %v2839_v48, -inf }
 0x394   : > { %6978 = vst [vmem:[#allocation74_spill] sm:$0xff] %v6230_v14  ;;  %v2345_v25 = vadd.f32 %v6016_v41, %v6981_v45  ;;  %v6242_v14 = vpop.f32.mrb[68].mxu0  ;;  %v6987_v45 = vld [vmem:[#allocation58_spill] sm:$0xff] }
 0x395   : > { %v6246_v39 = vpop.f32.mrb[69].mxu0  ;;  %v2638_v5 = vadd.f32 %v6032_v38, %v6987_v45  ;;  %v3099_v38 = vsel %vm2996_vm3, %v2774_v10, -inf  ;;  %v6991_v45 = vld [vmem:[#allocation56_spill] sm:$0xff]  ;;  %v2641_v10 = vadd.f32 %v6046_v8, %v5931_v47 }
 0x396   : > { %3073 = vmax.xlane.f32.xlu0 %v3072_v29  ;;  %v2836_v29 = vmax.f32 %v2614_v62, 0.0  ;;  %6983 = vst [vmem:[#allocation53_spill] sm:$0xff] %v6246_v39  ;;  %v6250_v12 = vpop.f32.mrb[70].mxu0  ;;  %v2769_v41 = vmax.f32 %v2345_v25, 0.0  ;;  %v6986_v62 = vld [vmem:[#allocation54_spill] sm:$0xff] }
 0x397   : > { %3292 = vmax.xlane.f32.xlu1 %v3291_v15  ;;  %6984 = vst [vmem:[#allocation55_spill] sm:$0xff] %v6250_v12  ;;  %v6252_v31 = vpop.f32.mrb[71].mxu0  ;;  %v6254_v15 = vpop.permute.xlu1 %1778  ;;  %v6988_v12 = vld [vmem:[#allocation13_spill] sm:$0xff] }
 0x398   : > { %6985 = vst [vmem:[#allocation9_spill] sm:$0xff] %v6252_v31  ;;  %v3285_v54 = vsel %vm2996_vm3, %v2836_v29, -inf  ;;  %v3084_v25 = vsel %vm2996_vm3, %v2769_v41, -inf  ;;  %v2842_v31 = vmax.f32 %v2638_v5, 0.0 }
 0x39a   : > { %3277 = vmax.xlane.f32.xlu0 %v3276_v42  ;;  %v2617_v42 = vadd.f32 %v6018_v52, %v6986_v62  ;;  %v2358_v52 = vadd.f32 %v6039_v1, %v6988_v12  ;;  %v6989_v62 = vld [vmem:[#allocation16_spill] sm:$0xff]  ;;  %v2630_v1 = vadd.f32 %v6041_v40, %v6991_v45  ;;  %v2843_v40 = vmax.f32 %v2641_v10, 0.0  ;;  %v6993_v45 = vld [vmem:[#allocation19_spill] sm:$0xff] }
 0x39b   : > { %3082 = vmax.xlane.f32.xlu1 %v3081_v26  ;;  %v2369_v63 = vadd.f32 %v6044_v35, %v6989_v62  ;;  %v6274_v29 = vpop.permute.xlu1 %1788 }
 0x39c   : > { %v2837_v26 = vmax.f32 %v2617_v42, 0.0  ;;  %v6278_v42 = vpop.permute.xlu0 %1783  ;;  %v2772_v35 = vmax.f32 %v2358_v52, 0.0 }
 0x39d   : > { %v2775_v5 = vmax.f32 %v2369_v63, 0.0 }
 0x39e   : > { %3091 = vmax.xlane.f32.xlu0 %v3090_v44  ;;  %v6264_v44 = vpop.f32.mrb[72].mxu0  ;;  %v3288_v12 = vsel %vm2996_vm3, %v2837_v26, -inf  ;;  %v2382_v26 = vadd.f32 %v6064_v51, %v6993_v45  ;;  %v3093_v52 = vsel %vm2996_vm3, %v2772_v35, -inf  ;;  %v3306_v51 = vsel %vm2996_vm3, %v2843_v40, -inf  ;;  %v2938_v40 = vld [vmem:[%s5454_s27 + $0x230] sm:$0xff] }
 0x39f   : > { %3286 = vmax.xlane.f32.xlu1 %v3285_v54  ;;  %v6271_v39 = vpop.f32.mrb[73].mxu0  ;;  %v3303_v54 = vsel %vm2996_vm3, %v2842_v31, -inf  ;;  %v3102_v47 = vsel %vm2996_vm3, %v2775_v5, -inf  ;;  %v6994_v31 = vld [vmem:[#allocation57_spill] sm:$0xff] }
 0x3a0   : > { %v6276_v48 = vpop.f32.mrb[74].mxu0  ;;  %v2633_v63 = vadd.f32 %v6050_v4, %v6994_v31  ;;  %v6996_v4 = vld [vmem:[#allocation17_spill] sm:$0xff] }
 0x3a1   : > { %v6280_v41 = vpop.f32.mrb[75].mxu0  ;;  %v2374_v45 = vadd.f32 %v6070_v32, %v6996_v4 }
 0x3a2   : > { %3295 = vmax.xlane.f32.xlu0 %v3294_v57  ;;  %6990 = vst [vmem:[#allocation15_spill] sm:$0xff] %v6280_v41  ;;  %v2840_v57 = vmax.f32 %v2630_v1, 0.0  ;;  %v6292_v41 = vpop.permute.xlu0 %1793  ;;  %v6995_v1 = vld [vmem:[#allocation61_spill] sm:$0xff] }
 0x3a3   : > { %3100 = vmax.xlane.f32.xlu1 %v3099_v38  ;;  %v6290_v38 = vpop.permute.xlu1 %1798 }
 0x3a4   : > { %v3297_v10 = vsel %vm2996_vm3, %v2840_v57, -inf }
 0x3a6   : > { %3085 = vmax.xlane.f32.xlu0 %v3084_v25  ;;  %v6992_v25 = vld [vmem:[#allocation14_spill] sm:$0xff]  ;;  %v6306_v5 = vpop.permute.xlu0 %1803 }
 0x3a7   : > { %3304 = vmax.xlane.f32.xlu1 %v3303_v54  ;;  %v2361_v62 = vadd.f32 %v6048_v20, %v6992_v25  ;;  %v2778_v20 = vmax.f32 %v2382_v26, 0.0  ;;  %v6304_v35 = vpop.permute.xlu1 %1808  ;;  %v2841_v54 = vmax.f32 %v2633_v63, 0.0  ;;  %v6997_v26 = vld [vmem:[#allocation20_spill] sm:$0xff] }
 0x3a9   : > { %v2773_v8 = vmax.f32 %v2361_v62, 0.0  ;;  %v3111_v57 = vsel %vm2996_vm3, %v2778_v20, -inf }
 0x3aa   : > { %3289 = vmax.xlane.f32.xlu0 %v3288_v12  ;;  %v2654_v12 = vadd.f32 %v6066_v30, %v6995_v1  ;;  %v2385_v30 = vadd.f32 %v6076_v36, %v6997_v26  ;;  %v3005_v31 = vpop.xlane.xlu0 %3004  ;;  %v2776_v36 = vmax.f32 %v2374_v45, 0.0  ;;  %v2936_v26 = vld [vmem:[%s5454_s27 + $0x220] sm:$0xff]  ;;  %v7000_v45 = vld [vmem:[#allocation18_spill] sm:$0xff] }
 0x3ab   : > { %3094 = vmax.xlane.f32.xlu1 %v3093_v52  ;;  %v3096_v25 = vsel %vm2996_vm3, %v2773_v8, -inf  ;;  %v2870_v52 = vld [vmem:[%s5454_s27 + $0x10] sm:$0xff]  ;;  %v6998_v8 = vld [vmem:[#allocation59_spill] sm:$0xff] }
 0x3ac   : > { %v2846_v62 = vmax.f32 %v2654_v12, 0.0  ;;  %v2646_v63 = vadd.f32 %v6072_v19, %v6998_v8  ;;  %v3383_v32 = vmax.f32 %v2870_v52, %v3005_v31  ;;  %v3300_v12 = vsel %vm2996_vm3, %v2841_v54, -inf  ;;  %v7001_v52 = vld [vmem:[#allocation23_spill] sm:$0xff] }
 0x3ad   : > { %v3105_v31 = vsel %vm2996_vm3, %v2776_v36, -inf }
 0x3ae   : > { %3103 = vmax.xlane.f32.xlu0 %v3102_v47  ;;  %v3209_v47 = vpop.xlane.xlu1 %3208  ;;  %v3315_v4 = vsel %vm2996_vm3, %v2846_v62, -inf  ;;  %3512 = vst.msk [vmem:[%s5454_s27 + $0x10] sm:$0xff] %vm316_vm4, %v3383_v32  ;;  %v2999_v54 = vpop.xlane.xlu0 %2998  ;;  %v2871_v32 = vld [vmem:[%s5454_s27 + $0x18] sm:$0xff] }
 0x3af   : > { %3298 = vmax.xlane.f32.xlu1 %v3297_v10  ;;  %v3451_v1 = vmax.f32 %v2938_v40, %v3209_v47  ;;  %v2779_v10 = vmax.f32 %v2385_v30, 0.0  ;;  %v2398_v47 = vadd.f32 %v6094_v18, %v7001_v52  ;;  %v7002_v18 = vld [vmem:[#allocation60_spill] sm:$0xff]  ;;  %v7004_v52 = vld [vmem:[#allocation21_spill] sm:$0xff] }
 0x3b0   : > { %v2649_v36 = vadd.f32 %v6082_v43, %v7002_v18 }
 0x3b1   : > { %3580 = vst.msk [vmem:[%s5454_s27 + $0x230] sm:$0xff] %vm316_vm4, %v3451_v1  ;;  %v3114_v8 = vsel %vm2996_vm3, %v2779_v10, -inf  ;;  %v2869_v1 = vld [vmem:[%s5454_s27 + $0x8] sm:$0xff] }
 0x3b2   : > { %3307 = vmax.xlane.f32.xlu0 %v3306_v51  ;;  %v6999_v51 = vld [vmem:[#allocation62_spill] sm:$0xff]  ;;  %v3203_v19 = vpop.xlane.xlu1 %3202 }
 0x3b3   : > { %3112 = vmax.xlane.f32.xlu1 %v3111_v57  ;;  %v2657_v20 = vadd.f32 %v6078_v3, %v6999_v51  ;;  %v2868_v57 = vld [vmem:[%s5454_s27] sm:$0xff]  ;;  %v2377_v3 = vadd.f32 %v6080_v61, %v7000_v45  ;;  %v3449_v30 = vmax.f32 %v2936_v26, %v3203_v19  ;;  %v2939_v45 = vld [vmem:[%s5454_s27 + $0x238] sm:$0xff] }
 0x3b4   : > { %v3381_v62 = vmax.f32 %v2868_v57, %v2999_v54  ;;  %v2874_v54 = vld [vmem:[%s5454_s27 + $0x30] sm:$0xff] }
 0x3b5   : > { %v2847_v40 = vmax.f32 %v2657_v20, 0.0  ;;  %3578 = vst.msk [vmem:[%s5454_s27 + $0x220] sm:$0xff] %vm316_vm4, %v3449_v30  ;;  %v2782_v20 = vmax.f32 %v2398_v47, 0.0  ;;  %v2845_v30 = vmax.f32 %v2649_v36, 0.0  ;;  %v2390_v47 = vadd.f32 %v6103_v6, %v7004_v52  ;;  %v7006_v6 = vld [vmem:[#allocation63_spill] sm:$0xff] }
 0x3b6   : > { %3097 = vmax.xlane.f32.xlu0 %v3096_v25  ;;  %v2844_v25 = vmax.f32 %v2646_v63, 0.0  ;;  %3510 = vst.msk [vmem:[%s5454_s27] sm:$0xff] %vm316_vm4, %v3381_v62  ;;  %v3002_v61 = vpop.xlane.xlu1 %3001  ;;  %v3008_v63 = vpop.xlane.xlu0 %3007  ;;  %v2662_v18 = vadd.f32 %v6105_v50, %v7006_v6 }
 0x3b7   : > { %3316 = vmax.xlane.f32.xlu1 %v3315_v4  ;;  %v3382_v51 = vmax.f32 %v2869_v1, %v3002_v61  ;;  %v3384_v10 = vmax.f32 %v2871_v32, %v3008_v63  ;;  %v7003_v4 = vld [vmem:[#allocation65_spill] sm:$0xff]  ;;  %v3318_v19 = vsel %vm2996_vm3, %v2847_v40, -inf  ;;  %v3123_v1 = vsel %vm2996_vm3, %v2782_v20, -inf  ;;  %v2937_v61 = vld [vmem:[%s5454_s27 + $0x228] sm:$0xff] }
 0x3b8   : > { %v2670_v26 = vadd.f32 %v6096_v7, %v7003_v4  ;;  %v3309_v57 = vsel %vm2996_vm3, %v2844_v25, -inf  ;;  %v2942_v32 = vld [vmem:[%s5454_s27 + $0x250] sm:$0xff]  ;;  %v7007_v4 = vld [vmem:[#allocation66_spill] sm:$0xff] }
 0x3b9   : > { %3511 = vst.msk [vmem:[%s5454_s27 + $0x8] sm:$0xff] %vm316_vm4, %v3382_v51  ;;  %3513 = vst.msk [vmem:[%s5454_s27 + $0x18] sm:$0xff] %vm316_vm4, %v3384_v10  ;;  %v3312_v51 = vsel %vm2996_vm3, %v2845_v30, -inf  ;;  %v2780_v10 = vmax.f32 %v2390_v47, 0.0 }
 0x3ba   : > { %3301 = vmax.xlane.f32.xlu0 %v3300_v12  ;;  %v2777_v12 = vmax.f32 %v2377_v3, 0.0  ;;  %v3017_v43 = vpop.xlane.xlu1 %3016  ;;  %v3212_v3 = vpop.xlane.xlu0 %3211  ;;  %v2850_v40 = vmax.f32 %v2670_v26, 0.0  ;;  %v2673_v26 = vadd.f32 %v6110_v49, %v7007_v4  ;;  %v2873_v4 = vld [vmem:[%s5454_s27 + $0x28] sm:$0xff] }
 0x3bb   : > { %3106 = vmax.xlane.f32.xlu1 %v3105_v31  ;;  %v3387_v7 = vmax.f32 %v2874_v54, %v3017_v43  ;;  %v3452_v62 = vmax.f32 %v2939_v45, %v3212_v3  ;;  %v7005_v31 = vld [vmem:[#allocation24_spill] sm:$0xff]  ;;  %v2875_v54 = vld [vmem:[%s5454_s27 + $0x38] sm:$0xff]  ;;  %v2848_v43 = vmax.f32 %v2662_v18, 0.0  ;;  %v3117_v52 = vsel %vm2996_vm3, %v2780_v10, -inf }
 0x3bc   : > { %v3108_v25 = vsel %vm2996_vm3, %v2777_v12, -inf  ;;  %v7008_v3 = vld [vmem:[#allocation22_spill] sm:$0xff] }
 0x3bd   : > { %3516 = vst.msk [vmem:[%s5454_s27 + $0x30] sm:$0xff] %vm316_vm4, %v3387_v7  ;;  %3581 = vst.msk [vmem:[%s5454_s27 + $0x238] sm:$0xff] %vm316_vm4, %v3452_v62  ;;  %v2393_v49 = vadd.f32 %v6112_v2, %v7008_v3  ;;  %v2851_v62 = vmax.f32 %v2673_v26, 0.0 }
 0x3be   : > { %3115 = vmax.xlane.f32.xlu0 %v3114_v8  ;;  %v2401_v8 = vadd.f32 %v6108_v27, %v7005_v31  ;;  %v3221_v63 = vpop.xlane.xlu1 %3220  ;;  %v3206_v12 = vpop.xlane.xlu0 %3205  ;;  %v2940_v31 = vld [vmem:[%s5454_s27 + $0x240] sm:$0xff] }
 0x3bf   : > { %3310 = vmax.xlane.f32.xlu1 %v3309_v57  ;;  %v3455_v27 = vmax.f32 %v2942_v32, %v3221_v63  ;;  %v3450_v36 = vmax.f32 %v2937_v61, %v3206_v12  ;;  %v3327_v57 = vsel %vm2996_vm3, %v2850_v40, -inf  ;;  %v2781_v32 = vmax.f32 %v2393_v49, 0.0  ;;  %v7011_v61 = vld [vmem:[#allocation70_spill] sm:$0xff]  ;;  %v7014_v49 = vld [vmem:[#allocation28_spill] sm:$0xff] }
 0x3c0   : > { %v2783_v20 = vmax.f32 %v2401_v8, 0.0  ;;  %v2943_v8 = vld [vmem:[%s5454_s27 + $0x258] sm:$0xff]  ;;  %v3330_v10 = vsel %vm2996_vm3, %v2851_v62, -inf }
 0x3c1   : > { %3584 = vst.msk [vmem:[%s5454_s27 + $0x250] sm:$0xff] %vm316_vm4, %v3455_v27  ;;  %3579 = vst.msk [vmem:[%s5454_s27 + $0x228] sm:$0xff] %vm316_vm4, %v3450_v36  ;;  %v7012_v27 = vld [vmem:[#allocation69_spill] sm:$0xff] }
 0x3c2   : > { %3319 = vmax.xlane.f32.xlu0 %v3318_v19  ;;  %v2872_v19 = vld [vmem:[%s5454_s27 + $0x20] sm:$0xff]  ;;  %v3011_v50 = vpop.xlane.xlu1 %3010  ;;  %v3020_v45 = vpop.xlane.xlu0 %3019  ;;  %v3126_v47 = vsel %vm2996_vm3, %v2783_v20, -inf  ;;  %v2686_v36 = vadd.f32 %v6128_v55, %v7012_v27  ;;  %v2878_v20 = vld [vmem:[%s5454_s27 + $0x50] sm:$0xff] }
 0x3c3   : > { %3124 = vmax.xlane.f32.xlu1 %v3123_v1  ;;  %v3385_v30 = vmax.f32 %v2872_v19, %v3011_v50  ;;  %v3388_v7 = vmax.f32 %v2875_v54, %v3020_v45  ;;  %v3120_v50 = vsel %vm2996_vm3, %v2781_v32, -inf }
 0x3c4   : > { %v2854_v45 = vmax.f32 %v2686_v36, 0.0 }
 0x3c5   : > { %3514 = vst.msk [vmem:[%s5454_s27 + $0x20] sm:$0xff] %vm316_vm4, %v3385_v30  ;;  %3517 = vst.msk [vmem:[%s5454_s27 + $0x38] sm:$0xff] %vm316_vm4, %v3388_v7  ;;  %v7015_v30 = vld [vmem:[#allocation72_spill] sm:$0xff] }
 0x3c6   : > { %3109 = vmax.xlane.f32.xlu0 %v3108_v25  ;;  %v7009_v25 = vld [vmem:[#allocation27_spill] sm:$0xff]  ;;  %v3215_v2 = vpop.xlane.xlu1 %3214  ;;  %v3224_v1 = vpop.xlane.xlu0 %3223  ;;  %v2417_v7 = vadd.f32 %v7015_v30, %v7014_v49 }
 0x3c7   : > { %3328 = vmax.xlane.f32.xlu1 %v3327_v57  ;;  %v2414_v40 = vadd.f32 %v6126_v16, %v7009_v25  ;;  %v7010_v16 = vld [vmem:[#allocation64_spill] sm:$0xff]  ;;  %v3453_v12 = vmax.f32 %v2940_v31, %v3215_v2  ;;  %v3456_v6 = vmax.f32 %v2943_v8, %v3224_v1  ;;  %v2946_v25 = vld [vmem:[%s5454_s27 + $0x270] sm:$0xff] }
 0x3c8   : > { %v2665_v63 = vadd.f32 %v7011_v61, %v7010_v16  ;;  %v7017_v31 = vld [vmem:[#allocation8_spill] sm:$0xff]  ;;  %v2787_v16 = vmax.f32 %v2417_v7, 0.0  ;;  %v3339_v61 = vsel %vm2996_vm3, %v2854_v45, -inf  ;;  %v2947_v45 = vld [vmem:[%s5454_s27 + $0x278] sm:$0xff] }
 0x3c9   : > { %v2786_v18 = vmax.f32 %v2414_v40, 0.0  ;;  %3582 = vst.msk [vmem:[%s5454_s27 + $0x240] sm:$0xff] %vm316_vm4, %v3453_v12  ;;  %3585 = vst.msk [vmem:[%s5454_s27 + $0x258] sm:$0xff] %vm316_vm4, %v3456_v6  ;;  %v2941_v40 = vld [vmem:[%s5454_s27 + $0x248] sm:$0xff]  ;;  %v2876_v12 = vld [vmem:[%s5454_s27 + $0x40] sm:$0xff] }
 0x3ca   : > { %3313 = vmax.xlane.f32.xlu0 %v3312_v51  ;;  %v3321_v51 = vsel %vm2996_vm3, %v2848_v43, -inf  ;;  %v3029_v26 = vpop.xlane.xlu1 %3028  ;;  %v3014_v57 = vpop.xlane.xlu0 %3013  ;;  %v2849_v19 = vmax.f32 %v2665_v63, 0.0  ;;  %v7013_v43 = vld [vmem:[#allocation25_spill] sm:$0xff]  ;;  %v2879_v6 = vld [vmem:[%s5454_s27 + $0x58] sm:$0xff] }
 0x3cb   : > { %3118 = vmax.xlane.f32.xlu1 %v3117_v52  ;;  %v3391_v55 = vmax.f32 %v2878_v20, %v3029_v26  ;;  %v3386_v54 = vmax.f32 %v2873_v4, %v3014_v57  ;;  %v2406_v3 = vadd.f32 %v6132_v24, %v7013_v43  ;;  %v3135_v62 = vsel %vm2996_vm3, %v2786_v18, -inf  ;;  %v7016_v24 = vld [vmem:[#allocation67_spill] sm:$0xff] }
 0x3cc   : > { %v2678_v8 = vadd.f32 %v7017_v31, %v7016_v24  ;;  %v3324_v63 = vsel %vm2996_vm3, %v2849_v19, -inf  ;;  %v2855_v26 = vmax.f32 %v6140_v9, 0.0  ;;  %v7019_v57 = vld [vmem:[#allocation31_spill] sm:$0xff] }
 0x3cd   : > { %3520 = vst.msk [vmem:[%s5454_s27 + $0x50] sm:$0xff] %vm316_vm4, %v3391_v55  ;;  %3515 = vst.msk [vmem:[%s5454_s27 + $0x28] sm:$0xff] %vm316_vm4, %v3386_v54  ;;  %v2784_v32 = vmax.f32 %v2406_v3, 0.0  ;;  %v2430_v19 = vadd.f32 %v6154_v46, %v7019_v57  ;;  %v3138_v54 = vsel %vm2996_vm3, %v2787_v16, -inf  ;;  %v7020_v46 = vld [vmem:[#allocation68_spill] sm:$0xff]  ;;  %v7021_v3 = vld [vmem:[#allocation73_spill] sm:$0xff] }
 0x3ce   : > { %3127 = vmax.xlane.f32.xlu0 %v3126_v47  ;;  %v3233_v52 = vpop.xlane.xlu1 %3232  ;;  %v2852_v36 = vmax.f32 %v2678_v8, 0.0  ;;  %v2681_v49 = vadd.f32 %v7021_v3, %v7020_v46  ;;  %v2858_v16 = vmax.f32 %v6159_v21, 0.0  ;;  %v7027_v46 = vld [vmem:[#allocation52_spill] sm:$0xff] }
 0x3cf   : > { %3322 = vmax.xlane.f32.xlu1 %v3321_v51  ;;  %v3459_v2 = vmax.f32 %v2946_v25, %v3233_v52  ;;  %v7018_v51 = vld [vmem:[#allocation26_spill] sm:$0xff]  ;;  %v3129_v55 = vsel %vm2996_vm3, %v2784_v32, -inf  ;;  %v2882_v52 = vld [vmem:[%s5454_s27 + $0x70] sm:$0xff] }
 0x3d0   : > { %v3333_v25 = vsel %vm2996_vm3, %v2852_v36, -inf  ;;  %v2853_v8 = vmax.f32 %v2681_v49, 0.0  ;;  %v2945_v36 = vld [vmem:[%s5454_s27 + $0x268] sm:$0xff] }
 0x3d1   : > { %3588 = vst.msk [vmem:[%s5454_s27 + $0x270] sm:$0xff] %vm316_vm4, %v3459_v2 }
 0x3d2   : > { %3331 = vmax.xlane.f32.xlu0 %v3330_v10  ;;  %v3023_v18 = vpop.xlane.xlu1 %3022  ;;  %v2409_v10 = vadd.f32 %v6142_v17, %v7018_v51 }
 0x3d3   : > { %3136 = vmax.xlane.f32.xlu1 %v3135_v62  ;;  %v3389_v20 = vmax.f32 %v2876_v12, %v3023_v18  ;;  %v2790_v62 = vmax.f32 %v2430_v19, 0.0  ;;  %v7023_v12 = vld [vmem:[#allocation32_spill] sm:$0xff]  ;;  %v7025_v19 = vld [vmem:[#allocation49_spill] sm:$0xff] }
 0x3d4   : > { %v2785_v43 = vmax.f32 %v2409_v10, 0.0 }
 0x3d5   : > { %3518 = vst.msk [vmem:[%s5454_s27 + $0x40] sm:$0xff] %vm316_vm4, %v3389_v20  ;;  %v3147_v18 = vsel %vm2996_vm3, %v2790_v62, -inf }
 0x3d6   : > { %3121 = vmax.xlane.f32.xlu0 %v3120_v50  ;;  %v2944_v50 = vld [vmem:[%s5454_s27 + $0x260] sm:$0xff]  ;;  %v3227_v9 = vpop.xlane.xlu1 %3226  ;;  %v3132_v32 = vsel %vm2996_vm3, %v2785_v43, -inf  ;;  %v7026_v43 = vld [vmem:[#allocation30_spill] sm:$0xff] }
 0x3d7   : > { %v3218_v47 = vpop.xlane.xlu0 %3217  ;;  %3340 = vmax.xlane.f32.xlu1 %v3339_v61  ;;  %v3457_v30 = vmax.f32 %v2944_v50, %v3227_v9  ;;  %v7022_v61 = vld [vmem:[#allocation29_spill] sm:$0xff]  ;;  %v2880_v50 = vld [vmem:[%s5454_s27 + $0x60] sm:$0xff] }
 0x3d8   : > { %v3454_v1 = vmax.f32 %v2941_v40, %v3218_v47  ;;  %v3342_v40 = vsel %vm2996_vm3, %v2855_v26, -inf  ;;  %v2877_v47 = vld [vmem:[%s5454_s27 + $0x48] sm:$0xff] }
 0x3d9   : > { %3586 = vst.msk [vmem:[%s5454_s27 + $0x260] sm:$0xff] %vm316_vm4, %v3457_v30 }
 0x3da   : > { %3583 = vst.msk [vmem:[%s5454_s27 + $0x248] sm:$0xff] %vm316_vm4, %v3454_v1  ;;  %3325 = vmax.xlane.f32.xlu0 %v3324_v63  ;;  %v2422_v63 = vadd.f32 %v6161_v33, %v7022_v61  ;;  %v7024_v33 = vld [vmem:[#allocation71_spill] sm:$0xff]  ;;  %v2718_v61 = vadd.f32 %v6184_v11, %v6278_v42 }
 0x3db   : > { %v3032_v27 = vpop.xlane.xlu0 %3031  ;;  %3130 = vmax.xlane.f32.xlu1 %v3129_v55  ;;  %v3041_v24 = vpop.xlane.xlu1 %3040  ;;  %v2694_v10 = vadd.f32 %v6163_v37, %v7024_v33  ;;  %v2705_v55 = vadd.f32 %v7025_v19, %v6238_v13  ;;  %v2425_v13 = vadd.f32 %v7027_v46, %v7026_v43  ;;  %v7030_v33 = vld [vmem:[#allocation33_spill] sm:$0xff]  ;;  %v2884_v43 = vld [vmem:[%s5454_s27 + $0x80] sm:$0xff]  ;;  %v2887_v46 = vld [vmem:[%s5454_s27 + $0x98] sm:$0xff] }
 0x3dc   : > { %v3392_v4 = vmax.f32 %v2879_v6, %v3032_v27  ;;  %v3395_v2 = vmax.f32 %v2882_v52, %v3041_v24  ;;  %v2433_v6 = vadd.f32 %v6166_v22, %v7023_v12  ;;  %v2950_v27 = vld [vmem:[%s5454_s27 + $0x290] sm:$0xff]  ;;  %v2788_v26 = vmax.f32 %v2422_v63, 0.0  ;;  %v2948_v52 = vld [vmem:[%s5454_s27 + $0x280] sm:$0xff] }
 0x3dd   : > { %v2859_v30 = vmax.f32 %v2705_v55, 0.0 }
 0x3de   : > { %3521 = vst.msk [vmem:[%s5454_s27 + $0x58] sm:$0xff] %vm316_vm4, %v3392_v4  ;;  %3139 = vmax.xlane.f32.xlu0 %v3138_v54  ;;  %3524 = vst.msk [vmem:[%s5454_s27 + $0x70] sm:$0xff] %vm316_vm4, %v3395_v2  ;;  %v3336_v4 = vsel %vm2996_vm3, %v2853_v8, -inf  ;;  %v2791_v57 = vmax.f32 %v2433_v6, 0.0  ;;  %v3351_v54 = vsel %vm2996_vm3, %v2858_v16, -inf  ;;  %v2789_v8 = vmax.f32 %v2425_v13, 0.0 }
 0x3df   : > { %v3236_v17 = vpop.xlane.xlu0 %3235  ;;  %3334 = vmax.xlane.f32.xlu1 %v3333_v25  ;;  %v3141_v25 = vsel %vm2996_vm3, %v2788_v26, -inf  ;;  %v3354_v12 = vsel %vm2996_vm3, %v2859_v30, -inf  ;;  %v2886_v6 = vld [vmem:[%s5454_s27 + $0x90] sm:$0xff] }
 0x3e0   : > { %v3460_v7 = vmax.f32 %v2947_v45, %v3236_v17  ;;  %v3245_v21 = vpop.xlane.xlu1 %3244  ;;  %v2883_v45 = vld [vmem:[%s5454_s27 + $0x78] sm:$0xff]  ;;  %v2856_v17 = vmax.f32 %v2694_v10, 0.0  ;;  %v2438_v10 = vadd.f32 %v6188_v23, %v7030_v33  ;;  %v2954_v26 = vld [vmem:[%s5454_s27 + $0x2b0] sm:$0xff]  ;;  %v2710_v23 = vadd.f32 %v6190_v34, %v6258_v59 }
 0x3e1   : > { %v3463_v22 = vmax.f32 %v2950_v27, %v3245_v21  ;;  %v3144_v21 = vsel %vm2996_vm3, %v2789_v8, -inf }
 0x3e2   : > { %3589 = vst.msk [vmem:[%s5454_s27 + $0x278] sm:$0xff] %vm316_vm4, %v3460_v7  ;;  %3343 = vmax.xlane.f32.xlu0 %v3342_v40  ;;  %v7028_v7 = vld [vmem:[#allocation35_spill] sm:$0xff]  ;;  %v3150_v40 = vsel %vm2996_vm3, %v2791_v57, -inf  ;;  %v3345_v63 = vsel %vm2996_vm3, %v2856_v17, -inf  ;;  %v2949_v57 = vld [vmem:[%s5454_s27 + $0x288] sm:$0xff]  ;;  %v2860_v13 = vmax.f32 %v2710_v23, 0.0 }
 0x3e3   : > { %v3026_v31 = vpop.xlane.xlu0 %3025  ;;  %3148 = vmax.xlane.f32.xlu1 %v3147_v18  ;;  %3592 = vst.msk [vmem:[%s5454_s27 + $0x290] sm:$0xff] %vm316_vm4, %v3463_v22  ;;  %v2446_v62 = vadd.f32 %v6182_v60, %v7028_v7  ;;  %v7029_v60 = vld [vmem:[#allocation6_spill] sm:$0xff]  ;;  %v2881_v18 = vld [vmem:[%s5454_s27 + $0x68] sm:$0xff] }
 0x3e4   : > { %v3390_v1 = vmax.f32 %v2877_v47, %v3026_v31  ;;  %v3035_v37 = vpop.xlane.xlu1 %3034  ;;  %v2951_v47 = vld [vmem:[%s5454_s27 + $0x298] sm:$0xff]  ;;  %v2697_v2 = vadd.f32 %v7029_v60, %v6208_v58  ;;  %v7031_v22 = vld [vmem:[#allocation36_spill] sm:$0xff] }
 0x3e5   : > { %v3393_v3 = vmax.f32 %v2880_v50, %v3035_v37  ;;  %v2794_v16 = vmax.f32 %v2446_v62, 0.0  ;;  %v7034_v62 = vld [vmem:[#allocation39_spill] sm:$0xff] }
 0x3e6   : > { %3519 = vst.msk [vmem:[%s5454_s27 + $0x48] sm:$0xff] %vm316_vm4, %v3390_v1  ;;  %3133 = vmax.xlane.f32.xlu0 %v3132_v32 }
 0x3e7   : > { %v3230_v51 = vpop.xlane.xlu0 %3229  ;;  %3352 = vmax.xlane.f32.xlu1 %v3351_v54  ;;  %3522 = vst.msk [vmem:[%s5454_s27 + $0x60] sm:$0xff] %vm316_vm4, %v3393_v3  ;;  %v7032_v3 = vld [vmem:[#allocation34_spill] sm:$0xff] }
 0x3e8   : > { %v3458_v20 = vmax.f32 %v2945_v36, %v3230_v51  ;;  %v3239_v24 = vpop.xlane.xlu1 %3238  ;;  %v2857_v36 = vmax.f32 %v2697_v2, 0.0  ;;  %v2862_v51 = vmax.f32 %v2718_v61, 0.0  ;;  %v7036_v61 = vld [vmem:[#allocation37_spill] sm:$0xff] }
 0x3e9   : > { %v3461_v1 = vmax.f32 %v2948_v52, %v3239_v24  ;;  %v2955_v24 = vld [vmem:[%s5454_s27 + $0x2b8] sm:$0xff] }
 0x3ea   : > { %3587 = vst.msk [vmem:[%s5454_s27 + $0x268] sm:$0xff] %vm316_vm4, %v3458_v20  ;;  %3337 = vmax.xlane.f32.xlu0 %v3336_v4  ;;  %v2449_v20 = vadd.f32 %v6194_v56, %v7031_v22  ;;  %v3159_v4 = vsel %vm2996_vm3, %v2794_v16, -inf  ;;  %v3348_v50 = vsel %vm2996_vm3, %v2857_v36, -inf  ;;  %v3363_v17 = vsel %vm2996_vm3, %v2862_v51, -inf }
 0x3eb   : > { %v3044_v9 = vpop.xlane.xlu0 %3043  ;;  %3142 = vmax.xlane.f32.xlu1 %v3141_v25  ;;  %3590 = vst.msk [vmem:[%s5454_s27 + $0x280] sm:$0xff] %vm316_vm4, %v3461_v1  ;;  %v2462_v25 = vadd.f32 %v6210_v28, %v7034_v62  ;;  %v7035_v28 = vld [vmem:[#allocation50_spill] sm:$0xff]  ;;  %v7044_v62 = vld [vmem:[#allocation41_spill] sm:$0xff] }
 0x3ec   : > { %v3396_v49 = vmax.f32 %v2883_v45, %v3044_v9  ;;  %v3053_v58 = vpop.xlane.xlu1 %3052  ;;  %v2792_v45 = vmax.f32 %v2438_v10, 0.0  ;;  %v2795_v37 = vmax.f32 %v2449_v20, 0.0  ;;  %v2721_v9 = vadd.f32 %v6196_v53, %v6274_v29  ;;  %v7038_v10 = vld [vmem:[#allocation51_spill] sm:$0xff]  ;;  %v7039_v20 = vld [vmem:[#allocation40_spill] sm:$0xff] }
 0x3ed   : > { %v3399_v11 = vmax.f32 %v2886_v6, %v3053_v58  ;;  %v2713_v2 = vadd.f32 %v7035_v28, %v6254_v15  ;;  %v2798_v16 = vmax.f32 %v2462_v25, 0.0  ;;  %v3357_v6 = vsel %vm2996_vm3, %v2860_v13, -inf  ;;  %v2890_v58 = vld [vmem:[%s5454_s27 + $0xb0] sm:$0xff]  ;;  %v2891_v13 = vld [vmem:[%s5454_s27 + $0xb8] sm:$0xff] }
 0x3ee   : > { %3525 = vst.msk [vmem:[%s5454_s27 + $0x78] sm:$0xff] %vm316_vm4, %v3396_v49  ;;  %3151 = vmax.xlane.f32.xlu0 %v3150_v40  ;;  %v7033_v49 = vld [vmem:[#allocation7_spill] sm:$0xff]  ;;  %v2863_v7 = vmax.f32 %v2721_v9, 0.0  ;;  %v3153_v40 = vsel %vm2996_vm3, %v2792_v45, -inf  ;;  %v3162_v52 = vsel %vm2996_vm3, %v2795_v37, -inf  ;;  %v2726_v22 = vadd.f32 %v7038_v10, %v6292_v41  ;;  %v7041_v41 = vld [vmem:[#allocation38_spill] sm:$0xff] }
 0x3ef   : > { %v3248_v31 = vpop.xlane.xlu0 %3247  ;;  %3346 = vmax.xlane.f32.xlu1 %v3345_v63  ;;  %3528 = vst.msk [vmem:[%s5454_s27 + $0x90] sm:$0xff] %vm316_vm4, %v3399_v11  ;;  %v2441_v53 = vadd.f32 %v7033_v49, %v7032_v3  ;;  %v7037_v63 = vld [vmem:[#allocation11_spill] sm:$0xff]  ;;  %v2861_v11 = vmax.f32 %v2713_v2, 0.0  ;;  %v7045_v25 = vld [vmem:[#allocation53_spill] sm:$0xff] }
 0x3f0   : > { %v3464_v32 = vmax.f32 %v2951_v47, %v3248_v31  ;;  %v3257_v19 = vpop.xlane.xlu1 %3256  ;;  %v2952_v47 = vld [vmem:[%s5454_s27 + $0x2a0] sm:$0xff]  ;;  %v2864_v9 = vmax.f32 %v2726_v22, 0.0 }
 0x3f1   : > { %v3467_v56 = vmax.f32 %v2954_v26, %v3257_v19  ;;  %v2793_v60 = vmax.f32 %v2441_v53, 0.0  ;;  %v2958_v19 = vld [vmem:[%s5454_s27 + $0x2d0] sm:$0xff]  ;;  %v3360_v37 = vsel %vm2996_vm3, %v2861_v11, -inf  ;;  %v7043_v53 = vld [vmem:[#allocation74_spill] sm:$0xff] }
 0x3f2   : > { %3593 = vst.msk [vmem:[%s5454_s27 + $0x298] sm:$0xff] %vm316_vm4, %v3464_v32  ;;  %3355 = vmax.xlane.f32.xlu0 %v3354_v12  ;;  %v2454_v12 = vadd.f32 %v7037_v63, %v7036_v61  ;;  %v7047_v61 = vld [vmem:[#allocation55_spill] sm:$0xff]  ;;  %v7049_v11 = vld [vmem:[#allocation42_spill] sm:$0xff] }
 0x3f3   : > { %v3038_v27 = vpop.xlane.xlu0 %3037  ;;  %3160 = vmax.xlane.f32.xlu1 %v3159_v4  ;;  %3596 = vst.msk [vmem:[%s5454_s27 + $0x2b0] sm:$0xff] %vm316_vm4, %v3467_v56  ;;  %v3156_v51 = vsel %vm2996_vm3, %v2793_v60, -inf  ;;  %v7040_v4 = vld [vmem:[#allocation10_spill] sm:$0xff] }
 0x3f4   : > { %v3394_v42 = vmax.f32 %v2881_v18, %v3038_v27  ;;  %v3047_v34 = vpop.xlane.xlu1 %3046  ;;  %v3366_v18 = vsel %vm2996_vm3, %v2863_v7, -inf  ;;  %v2885_v27 = vld [vmem:[%s5454_s27 + $0x88] sm:$0xff]  ;;  %v2796_v33 = vmax.f32 %v2454_v12, 0.0  ;;  %v2465_v26 = vadd.f32 %v7040_v4, %v7039_v20  ;;  %v7048_v12 = vld [vmem:[#allocation47_spill] sm:$0xff]  ;;  %v7051_v20 = vld [vmem:[#allocation45_spill] sm:$0xff] }
 0x3f5   : > { %v3397_v29 = vmax.f32 %v2884_v43, %v3047_v34  ;;  %v7042_v43 = vld [vmem:[#allocation43_spill] sm:$0xff]  ;;  %v2486_v4 = vadd.f32 %v6271_v39, %v7051_v20 }
 0x3f6   : > { %3523 = vst.msk [vmem:[%s5454_s27 + $0x68] sm:$0xff] %vm316_vm4, %v3394_v42  ;;  %3145 = vmax.xlane.f32.xlu0 %v3144_v21  ;;  %v3165_v34 = vsel %vm2996_vm3, %v2796_v33, -inf }
 0x3f7   : > { %v3242_v55 = vpop.xlane.xlu0 %3241  ;;  %3364 = vmax.xlane.f32.xlu1 %v3363_v17  ;;  %3526 = vst.msk [vmem:[%s5454_s27 + $0x80] sm:$0xff] %vm316_vm4, %v3397_v29  ;;  %v2799_v17 = vmax.f32 %v2465_v26, 0.0 }
 0x3f8   : > { %v3462_v54 = vmax.f32 %v2949_v57, %v3242_v55  ;;  %v3251_v31 = vpop.xlane.xlu1 %3250  ;;  %v3171_v57 = vsel %vm2996_vm3, %v2798_v16, -inf  ;;  %v2953_v55 = vld [vmem:[%s5454_s27 + $0x2a8] sm:$0xff] }
 0x3f9   : > { %v3465_v1 = vmax.f32 %v2952_v47, %v3251_v31  ;;  %v3174_v47 = vsel %vm2996_vm3, %v2799_v17, -inf  ;;  %v2959_v31 = vld [vmem:[%s5454_s27 + $0x2d8] sm:$0xff]  ;;  %v7046_v16 = vld [vmem:[#allocation44_spill] sm:$0xff] }
 0x3fa   : > { %3591 = vst.msk [vmem:[%s5454_s27 + $0x288] sm:$0xff] %vm316_vm4, %v3462_v54  ;;  %3349 = vmax.xlane.f32.xlu0 %v3348_v50  ;;  %v2457_v54 = vadd.f32 %v6228_v0, %v7041_v41  ;;  %v2481_v63 = vadd.f32 %v7047_v61, %v7046_v16 }
 0x3fb   : > { %v3056_v59 = vpop.xlane.xlu0 %3055  ;;  %3154 = vmax.xlane.f32.xlu1 %v3153_v40  ;;  %3594 = vst.msk [vmem:[%s5454_s27 + $0x2a0] sm:$0xff] %vm316_vm4, %v3465_v1  ;;  %v2470_v40 = vadd.f32 %v7045_v25, %v7044_v62  ;;  %v2963_v62 = vld [vmem:[%s5454_s27 + $0x2f8] sm:$0xff] }
 0x3fc   : > { %v3400_v30 = vmax.f32 %v2887_v46, %v3056_v59  ;;  %v3065_v15 = vpop.xlane.xlu1 %3064  ;;  %v2478_v46 = vadd.f32 %v6242_v14, %v7042_v43  ;;  %v2888_v59 = vld [vmem:[%s5454_s27 + $0xa0] sm:$0xff]  ;;  %v2797_v49 = vmax.f32 %v2457_v54, 0.0  ;;  %v2729_v14 = vadd.f32 %v7043_v53, %v6290_v38 }
 0x3fd   : > { %v3403_v42 = vmax.f32 %v2890_v58, %v3065_v15  ;;  %v2894_v58 = vld [vmem:[%s5454_s27 + $0xd0] sm:$0xff]  ;;  %v2803_v10 = vmax.f32 %v2481_v63, 0.0  ;;  %v7055_v53 = vld [vmem:[#allocation15_spill] sm:$0xff] }
 0x3fe   : > { %3529 = vst.msk [vmem:[%s5454_s27 + $0x98] sm:$0xff] %vm316_vm4, %v3400_v30  ;;  %3163 = vmax.xlane.f32.xlu0 %v3162_v52  ;;  %v2802_v7 = vmax.f32 %v2478_v46, 0.0  ;;  %v3369_v52 = vsel %vm2996_vm3, %v2864_v9, -inf  ;;  %v2865_v60 = vmax.f32 %v2729_v14, 0.0  ;;  %v3168_v1 = vsel %vm2996_vm3, %v2797_v49, -inf  ;;  %v2892_v46 = vld [vmem:[%s5454_s27 + $0xc0] sm:$0xff] }
 0x3ff   : > { %v3260_v8 = vpop.xlane.xlu0 %3259  ;;  %3358 = vmax.xlane.f32.xlu1 %v3357_v6  ;;  %3532 = vst.msk [vmem:[%s5454_s27 + $0xb0] sm:$0xff] %vm316_vm4, %v3403_v42  ;;  %v2494_v6 = vadd.f32 %v6264_v44, %v7048_v12  ;;  %v7050_v42 = vld [vmem:[#allocation9_spill] sm:$0xff]  ;;  %v3186_v43 = vsel %vm2996_vm3, %v2803_v10, -inf  ;;  %v7054_v49 = vld [vmem:[#allocation46_spill] sm:$0xff]  ;;  %v2964_v10 = vld [vmem:[%s5454_s27 + $0x300] sm:$0xff] }
 0x400   : > { %v3468_v32 = vmax.f32 %v2955_v24, %v3260_v8  ;;  %v3269_v23 = vpop.xlane.xlu1 %3268  ;;  %v2956_v24 = vld [vmem:[%s5454_s27 + $0x2c0] sm:$0xff]  ;;  %v3372_v33 = vsel %vm2996_vm3, %v2865_v60, -inf  ;;  %v2489_v14 = vadd.f32 %v7055_v53, %v7054_v49  ;;  %v2966_v12 = vld [vmem:[%s5454_s27 + $0x310] sm:$0xff] }
 0x401   : > { %v3471_v50 = vmax.f32 %v2958_v19, %v3269_v23  ;;  %v2806_v22 = vmax.f32 %v2494_v6, 0.0  ;;  %v2957_v19 = vld [vmem:[%s5454_s27 + $0x2c8] sm:$0xff] }
 0x402   : > { %3597 = vst.msk [vmem:[%s5454_s27 + $0x2b8] sm:$0xff] %vm316_vm4, %v3468_v32  ;;  %3367 = vmax.xlane.f32.xlu0 %v3366_v18  ;;  %v2800_v32 = vmax.f32 %v2470_v40, 0.0  ;;  %v3183_v18 = vsel %vm2996_vm3, %v2802_v7, -inf  ;;  %v2960_v7 = vld [vmem:[%s5454_s27 + $0x2e0] sm:$0xff]  ;;  %v2961_v6 = vld [vmem:[%s5454_s27 + $0x2e8] sm:$0xff] }
 0x403   : > { %v3050_v36 = vpop.xlane.xlu0 %3049  ;;  %3172 = vmax.xlane.f32.xlu1 %v3171_v57  ;;  %3600 = vst.msk [vmem:[%s5454_s27 + $0x2d0] sm:$0xff] %vm316_vm4, %v3471_v50  ;;  %v2962_v57 = vld [vmem:[%s5454_s27 + $0x2f0] sm:$0xff]  ;;  %v3195_v17 = vsel %vm2996_vm3, %v2806_v22, -inf  ;;  %v2967_v22 = vld [vmem:[%s5454_s27 + $0x318] sm:$0xff] }
 0x404   : > { %v3398_v21 = vmax.f32 %v2885_v27, %v3050_v36  ;;  %v3059_v0 = vpop.xlane.xlu1 %3058  ;;  %v2889_v27 = vld [vmem:[%s5454_s27 + $0xa8] sm:$0xff]  ;;  %v3177_v26 = vsel %vm2996_vm3, %v2800_v32, -inf }
 0x405   : > { %v3401_v29 = vmax.f32 %v2888_v59, %v3059_v0 }
 0x406   : > { %3527 = vst.msk [vmem:[%s5454_s27 + $0x88] sm:$0xff] %vm316_vm4, %v3398_v21  ;;  %3157 = vmax.xlane.f32.xlu0 %v3156_v51  ;;  %v2473_v21 = vadd.f32 %v7050_v42, %v7049_v11  ;;  %v2896_v11 = vld [vmem:[%s5454_s27 + $0xe0] sm:$0xff]  ;;  %v2899_v42 = vld [vmem:[%s5454_s27 + $0xf8] sm:$0xff] }
 0x407   : > { %v3254_v56 = vpop.xlane.xlu0 %3253  ;;  %3166 = vmax.xlane.f32.xlu1 %v3165_v34  ;;  %3530 = vst.msk [vmem:[%s5454_s27 + $0xa0] sm:$0xff] %vm316_vm4, %v3401_v29  ;;  %v2895_v34 = vld [vmem:[%s5454_s27 + $0xd8] sm:$0xff] }
 0x408   : > { %v3466_v45 = vmax.f32 %v2953_v55, %v3254_v56  ;;  %v3263_v38 = vpop.xlane.xlu1 %3262  ;;  %v7052_v56 = vld [vmem:[#allocation5_spill] sm:$0xff]  ;;  %v2801_v39 = vmax.f32 %v2473_v21, 0.0 }
 0x409   : > { %v3469_v28 = vmax.f32 %v2956_v24, %v3263_v38  ;;  %v2734_v41 = vadd.f32 %v7052_v56, %v6306_v5  ;;  %v7056_v24 = vld [vmem:[#allocation12_spill] sm:$0xff]  ;;  %v2805_v38 = vmax.f32 %v2489_v14, 0.0 }
 0x40a   : > { %3595 = vst.msk [vmem:[%s5454_s27 + $0x2a8] sm:$0xff] %vm316_vm4, %v3466_v45  ;;  %3361 = vmax.xlane.f32.xlu0 %v3360_v37  ;;  %v2804_v45 = vmax.f32 %v2486_v4, 0.0  ;;  %v7053_v37 = vld [vmem:[#allocation48_spill] sm:$0xff] }
 0x40b   : > { %v3068_v3 = vpop.xlane.xlu0 %3067  ;;  %3370 = vmax.xlane.f32.xlu1 %v3369_v52  ;;  %3598 = vst.msk [vmem:[%s5454_s27 + $0x2c0] sm:$0xff] %vm316_vm4, %v3469_v28  ;;  %v2497_v9 = vadd.f32 %v6276_v48, %v7053_v37  ;;  %v2898_v28 = vld [vmem:[%s5454_s27 + $0xf0] sm:$0xff]  ;;  %v3192_v63 = vsel %vm2996_vm3, %v2805_v38, -inf }
 0x40c   : > { %v3404_v30 = vmax.f32 %v2891_v13, %v3068_v3  ;;  %v2866_v13 = vmax.f32 %v2734_v41, 0.0  ;;  %v3189_v29 = vsel %vm2996_vm3, %v2804_v45, -inf }
 0x40d   : > { %v2807_v3 = vmax.f32 %v2497_v9, 0.0 }
 0x40e   : > { %3533 = vst.msk [vmem:[%s5454_s27 + $0xb8] sm:$0xff] %vm316_vm4, %v3404_v30  ;;  %3175 = vmax.xlane.f32.xlu0 %v3174_v47  ;;  %v3180_v30 = vsel %vm2996_vm3, %v2801_v39, -inf }
 0x40f   : > { %v3272_v8 = vpop.xlane.xlu0 %3271  ;;  %3184 = vmax.xlane.f32.xlu1 %v3183_v18  ;;  %v3198_v60 = vsel %vm2996_vm3, %v2807_v3, -inf }
 0x410   : > { %v3472_v2 = vmax.f32 %v2959_v31, %v3272_v8  ;;  %v3077_v15 = vpop.xlane.xlu1 %3076  ;;  %v2737_v31 = vadd.f32 %v7056_v24, %v6304_v35  ;;  %v3375_v8 = vsel %vm2996_vm3, %v2866_v13, -inf }
 0x411   : > { %v3407_v44 = vmax.f32 %v2894_v58, %v3077_v15 }
 0x412   : > { %3601 = vst.msk [vmem:[%s5454_s27 + $0x2d8] sm:$0xff] %vm316_vm4, %v3472_v2  ;;  %3169 = vmax.xlane.f32.xlu0 %v3168_v1  ;;  %v2893_v2 = vld [vmem:[%s5454_s27 + $0xc8] sm:$0xff]  ;;  %v2867_v61 = vmax.f32 %v2737_v31, 0.0 }
 0x413   : > { %v3062_v36 = vpop.xlane.xlu0 %3061  ;;  %3536 = vst.msk [vmem:[%s5454_s27 + $0xd0] sm:$0xff] %vm316_vm4, %v3407_v44  ;;  %3178 = vmax.xlane.f32.xlu1 %v3177_v26 }
 0x414   : > { %v3402_v51 = vmax.f32 %v2889_v27, %v3062_v36  ;;  %v3281_v55 = vpop.xlane.xlu1 %3280  ;;  %v3378_v36 = vsel %vm2996_vm3, %v2867_v61, -inf  ;;  %v2975_v61 = vld [vmem:[%s5454_s27 + $0x358] sm:$0xff] }
 0x415   : > { %v3475_v54 = vmax.f32 %v2962_v57, %v3281_v55  ;;  %v2897_v55 = vld [vmem:[%s5454_s27 + $0xe8] sm:$0xff] }
 0x416   : > { %3531 = vst.msk [vmem:[%s5454_s27 + $0xa8] sm:$0xff] %vm316_vm4, %v3402_v51  ;;  %3373 = vmax.xlane.f32.xlu0 %v3372_v33 }
 0x417   : > { %v3266_v23 = vpop.xlane.xlu0 %3265  ;;  %3604 = vst.msk [vmem:[%s5454_s27 + $0x2f0] sm:$0xff] %vm316_vm4, %v3475_v54  ;;  %3196 = vmax.xlane.f32.xlu1 %v3195_v17  ;;  %v2970_v54 = vld [vmem:[%s5454_s27 + $0x330] sm:$0xff] }
 0x418   : > { %v3470_v50 = vmax.f32 %v2957_v19, %v3266_v23  ;;  %v3071_v5 = vpop.xlane.xlu1 %3070  ;;  %v2902_v19 = vld [vmem:[%s5454_s27 + $0x110] sm:$0xff] }
 0x419   : > { %v3405_v48 = vmax.f32 %v2892_v46, %v3071_v5  ;;  %v2903_v46 = vld [vmem:[%s5454_s27 + $0x118] sm:$0xff] }
 0x41a   : > { %3599 = vst.msk [vmem:[%s5454_s27 + $0x2c8] sm:$0xff] %vm316_vm4, %v3470_v50  ;;  %3187 = vmax.xlane.f32.xlu0 %v3186_v43  ;;  %v2965_v50 = vld [vmem:[%s5454_s27 + $0x308] sm:$0xff]  ;;  %v2900_v43 = vld [vmem:[%s5454_s27 + $0x100] sm:$0xff] }
 0x41b   : > { %v3080_v59 = vpop.xlane.xlu0 %3079  ;;  %3534 = vst.msk [vmem:[%s5454_s27 + $0xc0] sm:$0xff] %vm316_vm4, %v3405_v48  ;;  %3190 = vmax.xlane.f32.xlu1 %v3189_v29  ;;  %v2968_v48 = vld [vmem:[%s5454_s27 + $0x320] sm:$0xff]  ;;  %v2906_v29 = vld [vmem:[%s5454_s27 + $0x130] sm:$0xff] }
 0x41c   : > { %v3408_v0 = vmax.f32 %v2895_v34, %v3080_v59  ;;  %v3275_v25 = vpop.xlane.xlu1 %3274 }
 0x41d   : > { %v3473_v52 = vmax.f32 %v2960_v7, %v3275_v25 }
 0x41e   : > { %3537 = vst.msk [vmem:[%s5454_s27 + $0xd8] sm:$0xff] %vm316_vm4, %v3408_v0  ;;  %3181 = vmax.xlane.f32.xlu0 %v3180_v30  ;;  %v2971_v0 = vld [vmem:[%s5454_s27 + $0x338] sm:$0xff]  ;;  %v2901_v30 = vld [vmem:[%s5454_s27 + $0x108] sm:$0xff] }
 0x41f   : > { %v3284_v40 = vpop.xlane.xlu0 %3283  ;;  %3602 = vst.msk [vmem:[%s5454_s27 + $0x2e0] sm:$0xff] %vm316_vm4, %v3473_v52  ;;  %3376 = vmax.xlane.f32.xlu1 %v3375_v8  ;;  %v2974_v52 = vld [vmem:[%s5454_s27 + $0x350] sm:$0xff] }
 0x420   : > { %v3476_v47 = vmax.f32 %v2963_v62, %v3284_v40  ;;  %v3089_v1 = vpop.xlane.xlu1 %3088 }
 0x421   : > { %v3411_v32 = vmax.f32 %v2898_v28, %v3089_v1  ;;  %v2907_v28 = vld [vmem:[%s5454_s27 + $0x138] sm:$0xff] }
 0x422   : > { %3605 = vst.msk [vmem:[%s5454_s27 + $0x2f8] sm:$0xff] %vm316_vm4, %v3476_v47  ;;  %3199 = vmax.xlane.f32.xlu0 %v3198_v60  ;;  %v2969_v47 = vld [vmem:[%s5454_s27 + $0x328] sm:$0xff]  ;;  %v2904_v60 = vld [vmem:[%s5454_s27 + $0x120] sm:$0xff] }
 0x423   : > { %v3074_v35 = vpop.xlane.xlu0 %3073  ;;  %3540 = vst.msk [vmem:[%s5454_s27 + $0xf0] sm:$0xff] %vm316_vm4, %v3411_v32 }
 0x424   : > { %v3406_v16 = vmax.f32 %v2893_v2, %v3074_v35  ;;  %v3293_v18 = vpop.xlane.xlu1 %3292 }
 0x425   : > { %v3479_v27 = vmax.f32 %v2966_v12, %v3293_v18 }
 0x426   : > { %3535 = vst.msk [vmem:[%s5454_s27 + $0xc8] sm:$0xff] %vm316_vm4, %v3406_v16  ;;  %3193 = vmax.xlane.f32.xlu0 %v3192_v63  ;;  %v2972_v16 = vld [vmem:[%s5454_s27 + $0x340] sm:$0xff] }
 0x427   : > { %v3278_v58 = vpop.xlane.xlu0 %3277  ;;  %3608 = vst.msk [vmem:[%s5454_s27 + $0x310] sm:$0xff] %vm316_vm4, %v3479_v27  ;;  %v2905_v27 = vld [vmem:[%s5454_s27 + $0x128] sm:$0xff] }
 0x428   : > { %v3474_v15 = vmax.f32 %v2961_v6, %v3278_v58  ;;  %v3083_v21 = vpop.xlane.xlu1 %3082  ;;  %v2910_v58 = vld [vmem:[%s5454_s27 + $0x150] sm:$0xff] }
 0x429   : > { %v3409_v51 = vmax.f32 %v2896_v11, %v3083_v21  ;;  %v2978_v21 = vld [vmem:[%s5454_s27 + $0x370] sm:$0xff] }
 0x42a   : > { %3603 = vst.msk [vmem:[%s5454_s27 + $0x2e8] sm:$0xff] %vm316_vm4, %v3474_v15  ;;  %3379 = vmax.xlane.f32.xlu0 %v3378_v36 }
 0x42b   : > { %v3092_v44 = vpop.xlane.xlu0 %3091  ;;  %3538 = vst.msk [vmem:[%s5454_s27 + $0xe0] sm:$0xff] %vm316_vm4, %v3409_v51 }
 0x42c   : > { %v3412_v33 = vmax.f32 %v2899_v42, %v3092_v44  ;;  %v3287_v20 = vpop.xlane.xlu1 %3286  ;;  %v2973_v44 = vld [vmem:[%s5454_s27 + $0x348] sm:$0xff] }
 0x42d   : > { %v3477_v26 = vmax.f32 %v2964_v10, %v3287_v20  ;;  %v2908_v20 = vld [vmem:[%s5454_s27 + $0x140] sm:$0xff] }
 0x42e   : > { %3541 = vst.msk [vmem:[%s5454_s27 + $0xf8] sm:$0xff] %vm316_vm4, %v3412_v33 }
 0x42f   : > { %v3296_v4 = vpop.xlane.xlu0 %3295  ;;  %3606 = vst.msk [vmem:[%s5454_s27 + $0x300] sm:$0xff] %vm316_vm4, %v3477_v26 }
 0x430   : > { %v3480_v57 = vmax.f32 %v2967_v22, %v3296_v4  ;;  %v3101_v23 = vpop.xlane.xlu1 %3100  ;;  %v2911_v4 = vld [vmem:[%s5454_s27 + $0x158] sm:$0xff] }
 0x431   : > { %v3415_v41 = vmax.f32 %v2902_v19, %v3101_v23  ;;  %v2976_v23 = vld [vmem:[%s5454_s27 + $0x360] sm:$0xff] }
 0x432   : > { %3609 = vst.msk [vmem:[%s5454_s27 + $0x318] sm:$0xff] %vm316_vm4, %v3480_v57 }
 0x433   : > { %v3086_v56 = vpop.xlane.xlu0 %3085  ;;  %3544 = vst.msk [vmem:[%s5454_s27 + $0x110] sm:$0xff] %vm316_vm4, %v3415_v41 }
 0x434   : > { %v3410_v39 = vmax.f32 %v2897_v55, %v3086_v56  ;;  %v3305_v45 = vpop.xlane.xlu1 %3304  ;;  %v2979_v56 = vld [vmem:[%s5454_s27 + $0x378] sm:$0xff] }
 0x435   : > { %v3483_v9 = vmax.f32 %v2970_v54, %v3305_v45  ;;  %v2914_v45 = vld [vmem:[%s5454_s27 + $0x170] sm:$0xff] }
 0x436   : > { %3539 = vst.msk [vmem:[%s5454_s27 + $0xe8] sm:$0xff] %vm316_vm4, %v3410_v39 }
 0x437   : > { %v3290_v37 = vpop.xlane.xlu0 %3289  ;;  %3612 = vst.msk [vmem:[%s5454_s27 + $0x330] sm:$0xff] %vm316_vm4, %v3483_v9 }
 0x438   : > { %v3478_v17 = vmax.f32 %v2965_v50, %v3290_v37  ;;  %v3095_v34 = vpop.xlane.xlu1 %3094  ;;  %v2909_v37 = vld [vmem:[%s5454_s27 + $0x148] sm:$0xff] }
 0x439   : > { %v3413_v59 = vmax.f32 %v2900_v43, %v3095_v34  ;;  %v2982_v34 = vld [vmem:[%s5454_s27 + $0x390] sm:$0xff] }
 0x43a   : > { %3607 = vst.msk [vmem:[%s5454_s27 + $0x308] sm:$0xff] %vm316_vm4, %v3478_v17 }
 0x43b   : > { %v3104_v5 = vpop.xlane.xlu0 %3103  ;;  %3542 = vst.msk [vmem:[%s5454_s27 + $0x100] sm:$0xff] %vm316_vm4, %v3413_v59 }
 0x43c   : > { %v3416_v13 = vmax.f32 %v2903_v46, %v3104_v5  ;;  %v3299_v3 = vpop.xlane.xlu1 %3298  ;;  %v2977_v5 = vld [vmem:[%s5454_s27 + $0x368] sm:$0xff] }
 0x43d   : > { %v3481_v53 = vmax.f32 %v2968_v48, %v3299_v3  ;;  %v2912_v3 = vld [vmem:[%s5454_s27 + $0x160] sm:$0xff] }
 0x43e   : > { %3545 = vst.msk [vmem:[%s5454_s27 + $0x118] sm:$0xff] %vm316_vm4, %v3416_v13 }
 0x43f   : > { %v3308_v49 = vpop.xlane.xlu0 %3307  ;;  %3610 = vst.msk [vmem:[%s5454_s27 + $0x320] sm:$0xff] %vm316_vm4, %v3481_v53 }
 0x440   : > { %v3484_v14 = vmax.f32 %v2971_v0, %v3308_v49  ;;  %v3113_v7 = vpop.xlane.xlu1 %3112  ;;  %v2915_v49 = vld [vmem:[%s5454_s27 + $0x178] sm:$0xff] }
 0x441   : > { %v3419_v25 = vmax.f32 %v2906_v29, %v3113_v7  ;;  %v2980_v7 = vld [vmem:[%s5454_s27 + $0x380] sm:$0xff] }
 0x442   : > { %3613 = vst.msk [vmem:[%s5454_s27 + $0x338] sm:$0xff] %vm316_vm4, %v3484_v14 }
 0x443   : > { %v3098_v62 = vpop.xlane.xlu0 %3097  ;;  %3548 = vst.msk [vmem:[%s5454_s27 + $0x130] sm:$0xff] %vm316_vm4, %v3419_v25 }
 0x444   : > { %v3414_v40 = vmax.f32 %v2901_v30, %v3098_v62  ;;  %v3317_v24 = vpop.xlane.xlu1 %3316  ;;  %v2983_v62 = vld [vmem:[%s5454_s27 + $0x398] sm:$0xff] }
 0x445   : > { %v3487_v38 = vmax.f32 %v2974_v52, %v3317_v24  ;;  %v2918_v24 = vld [vmem:[%s5454_s27 + $0x190] sm:$0xff] }
 0x446   : > { %3543 = vst.msk [vmem:[%s5454_s27 + $0x108] sm:$0xff] %vm316_vm4, %v3414_v40 }
 0x447   : > { %v3302_v31 = vpop.xlane.xlu0 %3301  ;;  %3616 = vst.msk [vmem:[%s5454_s27 + $0x350] sm:$0xff] %vm316_vm4, %v3487_v38 }
 0x448   : > { %v3482_v8 = vmax.f32 %v2969_v47, %v3302_v31  ;;  %v3107_v2 = vpop.xlane.xlu1 %3106  ;;  %v2913_v31 = vld [vmem:[%s5454_s27 + $0x168] sm:$0xff] }
 0x449   : > { %v3417_v35 = vmax.f32 %v2904_v60, %v3107_v2  ;;  %v2986_v2 = vld [vmem:[%s5454_s27 + $0x3b0] sm:$0xff] }
 0x44a   : > { %3611 = vst.msk [vmem:[%s5454_s27 + $0x328] sm:$0xff] %vm316_vm4, %v3482_v8 }
 0x44b   : > { %v3116_v1 = vpop.xlane.xlu0 %3115  ;;  %3546 = vst.msk [vmem:[%s5454_s27 + $0x120] sm:$0xff] %vm316_vm4, %v3417_v35 }
 0x44c   : > { %v3420_v32 = vmax.f32 %v2907_v28, %v3116_v1  ;;  %v3311_v63 = vpop.xlane.xlu1 %3310  ;;  %v2981_v1 = vld [vmem:[%s5454_s27 + $0x388] sm:$0xff] }
 0x44d   : > { %v3485_v6 = vmax.f32 %v2972_v16, %v3311_v63  ;;  %v2916_v63 = vld [vmem:[%s5454_s27 + $0x180] sm:$0xff] }
 0x44e   : > { %3549 = vst.msk [vmem:[%s5454_s27 + $0x138] sm:$0xff] %vm316_vm4, %v3420_v32 }
 0x44f   : > { %v3320_v12 = vpop.xlane.xlu0 %3319  ;;  %3614 = vst.msk [vmem:[%s5454_s27 + $0x340] sm:$0xff] %vm316_vm4, %v3485_v6 }
 0x450   : > { %v3488_v18 = vmax.f32 %v2975_v61, %v3320_v12  ;;  %v3125_v15 = vpop.xlane.xlu1 %3124  ;;  %v2919_v12 = vld [vmem:[%s5454_s27 + $0x198] sm:$0xff] }
 0x451   : > { %v3423_v11 = vmax.f32 %v2910_v58, %v3125_v15  ;;  %v2984_v15 = vld [vmem:[%s5454_s27 + $0x3a0] sm:$0xff] }
 0x452   : > { %3617 = vst.msk [vmem:[%s5454_s27 + $0x358] sm:$0xff] %vm316_vm4, %v3488_v18 }
 0x453   : > { %v3110_v36 = vpop.xlane.xlu0 %3109  ;;  %3552 = vst.msk [vmem:[%s5454_s27 + $0x150] sm:$0xff] %vm316_vm4, %v3423_v11 }
 0x454   : > { %v3418_v42 = vmax.f32 %v2905_v27, %v3110_v36  ;;  %v3329_v51 = vpop.xlane.xlu1 %3328  ;;  %v2987_v36 = vld [vmem:[%s5454_s27 + $0x3b8] sm:$0xff] }
 0x455   : > { %v3491_v10 = vmax.f32 %v2978_v21, %v3329_v51  ;;  %v2922_v51 = vld [vmem:[%s5454_s27 + $0x1b0] sm:$0xff] }
 0x456   : > { %3547 = vst.msk [vmem:[%s5454_s27 + $0x128] sm:$0xff] %vm316_vm4, %v3418_v42 }
 0x457   : > { %v3314_v33 = vpop.xlane.xlu0 %3313  ;;  %3620 = vst.msk [vmem:[%s5454_s27 + $0x370] sm:$0xff] %vm316_vm4, %v3491_v10 }
 0x458   : > { %v3486_v22 = vmax.f32 %v2973_v44, %v3314_v33  ;;  %v3119_v26 = vpop.xlane.xlu1 %3118  ;;  %v2917_v33 = vld [vmem:[%s5454_s27 + $0x188] sm:$0xff] }
 0x459   : > { %v3421_v19 = vmax.f32 %v2908_v20, %v3119_v26  ;;  %v2990_v26 = vld [vmem:[%s5454_s27 + $0x3d0] sm:$0xff] }
 0x45a   : > { %3615 = vst.msk [vmem:[%s5454_s27 + $0x348] sm:$0xff] %vm316_vm4, %v3486_v22 }
 0x45b   : > { %v3128_v57 = vpop.xlane.xlu0 %3127  ;;  %3550 = vst.msk [vmem:[%s5454_s27 + $0x140] sm:$0xff] %vm316_vm4, %v3421_v19 }
 0x45c   : > { %v3424_v55 = vmax.f32 %v2911_v4, %v3128_v57  ;;  %v3323_v41 = vpop.xlane.xlu1 %3322  ;;  %v2985_v57 = vld [vmem:[%s5454_s27 + $0x3a8] sm:$0xff] }
 0x45d   : > { %v3489_v54 = vmax.f32 %v2976_v23, %v3323_v41  ;;  %v2920_v41 = vld [vmem:[%s5454_s27 + $0x1a0] sm:$0xff] }
 0x45e   : > { %3553 = vst.msk [vmem:[%s5454_s27 + $0x158] sm:$0xff] %vm316_vm4, %v3424_v55 }
 0x45f   : > { %v3332_v39 = vpop.xlane.xlu0 %3331  ;;  %3618 = vst.msk [vmem:[%s5454_s27 + $0x360] sm:$0xff] %vm316_vm4, %v3489_v54 }
 0x460   : > { %v3492_v50 = vmax.f32 %v2979_v56, %v3332_v39  ;;  %v3137_v9 = vpop.xlane.xlu1 %3136  ;;  %v2923_v39 = vld [vmem:[%s5454_s27 + $0x1b8] sm:$0xff] }
 0x461   : > { %v3427_v43 = vmax.f32 %v2914_v45, %v3137_v9  ;;  %v2988_v9 = vld [vmem:[%s5454_s27 + $0x3c0] sm:$0xff] }
 0x462   : > { %3621 = vst.msk [vmem:[%s5454_s27 + $0x378] sm:$0xff] %vm316_vm4, %v3492_v50 }
 0x463   : > { %v3122_v17 = vpop.xlane.xlu0 %3121  ;;  %3556 = vst.msk [vmem:[%s5454_s27 + $0x170] sm:$0xff] %vm316_vm4, %v3427_v43 }
 0x464   : > { %v3422_v46 = vmax.f32 %v2909_v37, %v3122_v17  ;;  %v3341_v59 = vpop.xlane.xlu1 %3340  ;;  %v2991_v17 = vld [vmem:[%s5454_s27 + $0x3d8] sm:$0xff] }
 0x465   : > { %v3495_v48 = vmax.f32 %v2982_v34, %v3341_v59  ;;  %v2926_v59 = vld [vmem:[%s5454_s27 + $0x1d0] sm:$0xff] }
 0x466   : > { %3551 = vst.msk [vmem:[%s5454_s27 + $0x148] sm:$0xff] %vm316_vm4, %v3422_v46 }
 0x467   : > { %v3326_v13 = vpop.xlane.xlu0 %3325  ;;  %3624 = vst.msk [vmem:[%s5454_s27 + $0x390] sm:$0xff] %vm316_vm4, %v3495_v48 }
 0x468   : > { %v3490_v0 = vmax.f32 %v2977_v5, %v3326_v13  ;;  %v3131_v53 = vpop.xlane.xlu1 %3130  ;;  %v2921_v13 = vld [vmem:[%s5454_s27 + $0x1a8] sm:$0xff] }
 0x469   : > { %v3425_v29 = vmax.f32 %v2912_v3, %v3131_v53  ;;  %v2924_v53 = vld [vmem:[%s5454_s27 + $0x1c0] sm:$0xff] }
 0x46a   : > { %3619 = vst.msk [vmem:[%s5454_s27 + $0x368] sm:$0xff] %vm316_vm4, %v3490_v0 }
 0x46b   : > { %v3140_v14 = vpop.xlane.xlu0 %3139  ;;  %3554 = vst.msk [vmem:[%s5454_s27 + $0x160] sm:$0xff] %vm316_vm4, %v3425_v29 }
 0x46c   : > { %v3428_v30 = vmax.f32 %v2915_v49, %v3140_v14  ;;  %v3335_v25 = vpop.xlane.xlu1 %3334  ;;  %v2989_v14 = vld [vmem:[%s5454_s27 + $0x3c8] sm:$0xff] }
 0x46d   : > { %v3493_v52 = vmax.f32 %v2980_v7, %v3335_v25  ;;  %v2992_v25 = vld [vmem:[%s5454_s27 + $0x3e0] sm:$0xff] }
 0x46e   : > { %3557 = vst.msk [vmem:[%s5454_s27 + $0x178] sm:$0xff] %vm316_vm4, %v3428_v30 }
 0x46f   : > { %v3344_v40 = vpop.xlane.xlu0 %3343  ;;  %3622 = vst.msk [vmem:[%s5454_s27 + $0x380] sm:$0xff] %vm316_vm4, %v3493_v52 }
 0x470   : > { %v3496_v47 = vmax.f32 %v2983_v62, %v3344_v40  ;;  %v3149_v38 = vpop.xlane.xlu1 %3148  ;;  %v2927_v40 = vld [vmem:[%s5454_s27 + $0x1d8] sm:$0xff] }
 0x471   : > { %v3431_v60 = vmax.f32 %v2918_v24, %v3149_v38  ;;  %v2930_v38 = vld [vmem:[%s5454_s27 + $0x1f0] sm:$0xff] }
 0x472   : > { %3625 = vst.msk [vmem:[%s5454_s27 + $0x398] sm:$0xff] %vm316_vm4, %v3496_v47 }
 0x473   : > { %v3134_v8 = vpop.xlane.xlu0 %3133  ;;  %3560 = vst.msk [vmem:[%s5454_s27 + $0x190] sm:$0xff] %vm316_vm4, %v3431_v60 }
 0x474   : > { %v3426_v28 = vmax.f32 %v2913_v31, %v3134_v8  ;;  %v3353_v35 = vpop.xlane.xlu1 %3352  ;;  %v2925_v8 = vld [vmem:[%s5454_s27 + $0x1c8] sm:$0xff] }
 0x475   : > { %v3499_v16 = vmax.f32 %v2986_v2, %v3353_v35  ;;  %v2928_v35 = vld [vmem:[%s5454_s27 + $0x1e0] sm:$0xff] }
 0x476   : > { %3555 = vst.msk [vmem:[%s5454_s27 + $0x168] sm:$0xff] %vm316_vm4, %v3426_v28 }
 0x477   : > { %v3338_v32 = vpop.xlane.xlu0 %3337  ;;  %3628 = vst.msk [vmem:[%s5454_s27 + $0x3b0] sm:$0xff] %vm316_vm4, %v3499_v16 }
 0x478   : > { %v3494_v61 = vmax.f32 %v2981_v1, %v3338_v32  ;;  %v3143_v6 = vpop.xlane.xlu1 %3142  ;;  %v2993_v32 = vld [vmem:[%s5454_s27 + $0x3e8] sm:$0xff] }
 0x479   : > { %v3429_v58 = vmax.f32 %v2916_v63, %v3143_v6  ;;  %v2934_v6 = vld [vmem:[%s5454_s27 + $0x210] sm:$0xff] }
 0x47a   : > { %3623 = vst.msk [vmem:[%s5454_s27 + $0x388] sm:$0xff] %vm316_vm4, %v3494_v61 }
 0x47b   : > { %v3152_v18 = vpop.xlane.xlu0 %3151  ;;  %3558 = vst.msk [vmem:[%s5454_s27 + $0x180] sm:$0xff] %vm316_vm4, %v3429_v58 }
 0x47c   : > { %v3432_v27 = vmax.f32 %v2919_v12, %v3152_v18  ;;  %v3347_v11 = vpop.xlane.xlu1 %3346  ;;  %v2931_v18 = vld [vmem:[%s5454_s27 + $0x1f8] sm:$0xff] }
 0x47d   : > { %v3497_v21 = vmax.f32 %v2984_v15, %v3347_v11  ;;  %v2932_v11 = vld [vmem:[%s5454_s27 + $0x200] sm:$0xff] }
 0x47e   : > { %3561 = vst.msk [vmem:[%s5454_s27 + $0x198] sm:$0xff] %vm316_vm4, %v3432_v27 }
 0x47f   : > { %v3356_v42 = vpop.xlane.xlu0 %3355  ;;  %3626 = vst.msk [vmem:[%s5454_s27 + $0x3a0] sm:$0xff] %vm316_vm4, %v3497_v21 }
 0x480   : > { %v3500_v44 = vmax.f32 %v2987_v36, %v3356_v42  ;;  %v3161_v10 = vpop.xlane.xlu1 %3160  ;;  %v2929_v42 = vld [vmem:[%s5454_s27 + $0x1e8] sm:$0xff] }
 0x481   : > { %v3435_v20 = vmax.f32 %v2922_v51, %v3161_v10  ;;  %v2994_v10 = vld [vmem:[%s5454_s27 + $0x3f0] sm:$0xff] }
 0x482   : > { %3629 = vst.msk [vmem:[%s5454_s27 + $0x3b8] sm:$0xff] %vm316_vm4, %v3500_v44 }
 0x483   : > { %v3146_v22 = vpop.xlane.xlu0 %3145  ;;  %3564 = vst.msk [vmem:[%s5454_s27 + $0x1b0] sm:$0xff] %vm316_vm4, %v3435_v20 }
 0x484   : > { %v3430_v4 = vmax.f32 %v2917_v33, %v3146_v22  ;;  %v3365_v19 = vpop.xlane.xlu1 %3364  ;;  %v2935_v22 = vld [vmem:[%s5454_s27 + $0x218] sm:$0xff] }
 0x485   : > { %v3503_v23 = vmax.f32 %v2990_v26, %v3365_v19  ;;  %v2933_v19 = vld [vmem:[%s5454_s27 + $0x208] sm:$0xff] }
 0x486   : > { %3559 = vst.msk [vmem:[%s5454_s27 + $0x188] sm:$0xff] %vm316_vm4, %v3430_v4 }
 0x487   : > { %v3350_v55 = vpop.xlane.xlu0 %3349  ;;  %3632 = vst.msk [vmem:[%s5454_s27 + $0x3d0] sm:$0xff] %vm316_vm4, %v3503_v23 }
 0x488   : > { %v3498_v56 = vmax.f32 %v2985_v57, %v3350_v55  ;;  %v3155_v54 = vpop.xlane.xlu1 %3154 }
 0x489   : > { %v3433_v45 = vmax.f32 %v2920_v41, %v3155_v54 }
 0x48a   : > { %3627 = vst.msk [vmem:[%s5454_s27 + $0x3a8] sm:$0xff] %vm316_vm4, %v3498_v56  ;;  %v2995_v56 = vld [vmem:[%s5454_s27 + $0x3f8] sm:$0xff] }
 0x48b   : > { %v3164_v50 = vpop.xlane.xlu0 %3163  ;;  %3562 = vst.msk [vmem:[%s5454_s27 + $0x1a0] sm:$0xff] %vm316_vm4, %v3433_v45 }
 0x48c   : > { %v3436_v37 = vmax.f32 %v2923_v39, %v3164_v50  ;;  %v3359_v43 = vpop.xlane.xlu1 %3358 }
 0x48d   : > { %v3501_v34 = vmax.f32 %v2988_v9, %v3359_v43 }
 0x48e   : > { %3565 = vst.msk [vmem:[%s5454_s27 + $0x1b8] sm:$0xff] %vm316_vm4, %v3436_v37 }
 0x48f   : > { %v3368_v46 = vpop.xlane.xlu0 %3367  ;;  %3630 = vst.msk [vmem:[%s5454_s27 + $0x3c0] sm:$0xff] %vm316_vm4, %v3501_v34 }
 0x490   : > { %v3504_v5 = vmax.f32 %v2991_v17, %v3368_v46  ;;  %v3173_v48 = vpop.xlane.xlu1 %3172 }
 0x491   : > { %v3439_v3 = vmax.f32 %v2926_v59, %v3173_v48 }
 0x492   : > { %3633 = vst.msk [vmem:[%s5454_s27 + $0x3d8] sm:$0xff] %vm316_vm4, %v3504_v5 }
 0x493   : > { %v3158_v0 = vpop.xlane.xlu0 %3157  ;;  %3568 = vst.msk [vmem:[%s5454_s27 + $0x1d0] sm:$0xff] %vm316_vm4, %v3439_v3 }
 0x494   : > { %v3434_v49 = vmax.f32 %v2921_v13, %v3158_v0  ;;  %v3167_v29 = vpop.xlane.xlu1 %3166 }
 0x495   : > { %v3437_v7 = vmax.f32 %v2924_v53, %v3167_v29 }
 0x496   : > { %3563 = vst.msk [vmem:[%s5454_s27 + $0x1a8] sm:$0xff] %vm316_vm4, %v3434_v49 }
 0x497   : > { %v3362_v30 = vpop.xlane.xlu0 %3361  ;;  %3566 = vst.msk [vmem:[%s5454_s27 + $0x1c0] sm:$0xff] %vm316_vm4, %v3437_v7 }
 0x498   : > { %v3502_v62 = vmax.f32 %v2989_v14, %v3362_v30  ;;  %v3371_v52 = vpop.xlane.xlu1 %3370 }
 0x499   : > { %v3505_v24 = vmax.f32 %v2992_v25, %v3371_v52 }
 0x49a   : > { %3631 = vst.msk [vmem:[%s5454_s27 + $0x3c8] sm:$0xff] %vm316_vm4, %v3502_v62 }
 0x49b   : > { %v3176_v47 = vpop.xlane.xlu0 %3175  ;;  %3634 = vst.msk [vmem:[%s5454_s27 + $0x3e0] sm:$0xff] %vm316_vm4, %v3505_v24 }
 0x49c   : > { %v3440_v31 = vmax.f32 %v2927_v40, %v3176_v47  ;;  %v3185_v60 = vpop.xlane.xlu1 %3184 }
 0x49d   : > { %v3443_v2 = vmax.f32 %v2930_v38, %v3185_v60 }
 0x49e   : > { %3569 = vst.msk [vmem:[%s5454_s27 + $0x1d8] sm:$0xff] %vm316_vm4, %v3440_v31 }
 0x49f   : > { %v3170_v28 = vpop.xlane.xlu0 %3169  ;;  %3572 = vst.msk [vmem:[%s5454_s27 + $0x1f0] sm:$0xff] %vm316_vm4, %v3443_v2 }
 0x4a0   : > { %v3438_v1 = vmax.f32 %v2925_v8, %v3170_v28  ;;  %v3179_v16 = vpop.xlane.xlu1 %3178 }
 0x4a1   : > { %v3441_v63 = vmax.f32 %v2928_v35, %v3179_v16 }
 0x4a2   : > { %3567 = vst.msk [vmem:[%s5454_s27 + $0x1c8] sm:$0xff] %vm316_vm4, %v3438_v1 }
 0x4a3   : > { %v3374_v61 = vpop.xlane.xlu0 %3373  ;;  %3570 = vst.msk [vmem:[%s5454_s27 + $0x1e0] sm:$0xff] %vm316_vm4, %v3441_v63 }
 0x4a4   : > { %v3506_v12 = vmax.f32 %v2993_v32, %v3374_v61  ;;  %v3197_v58 = vpop.xlane.xlu1 %3196 }
 0x4a5   : > { %v3447_v15 = vmax.f32 %v2934_v6, %v3197_v58 }
 0x4a6   : > { %3635 = vst.msk [vmem:[%s5454_s27 + $0x3e8] sm:$0xff] %vm316_vm4, %v3506_v12 }
 0x4a7   : > { %v3188_v27 = vpop.xlane.xlu0 %3187  ;;  %3576 = vst.msk [vmem:[%s5454_s27 + $0x210] sm:$0xff] %vm316_vm4, %v3447_v15 }
 0x4a8   : > { %v3444_v36 = vmax.f32 %v2931_v18, %v3188_v27  ;;  %v3191_v21 = vpop.xlane.xlu1 %3190 }
 0x4a9   : > { %v3445_v51 = vmax.f32 %v2932_v11, %v3191_v21 }
 0x4aa   : > { %3573 = vst.msk [vmem:[%s5454_s27 + $0x1f8] sm:$0xff] %vm316_vm4, %v3444_v36 }
 0x4ab   : > { %v3182_v44 = vpop.xlane.xlu0 %3181  ;;  %3574 = vst.msk [vmem:[%s5454_s27 + $0x200] sm:$0xff] %vm316_vm4, %v3445_v51 }
 0x4ac   : > { %v3442_v33 = vmax.f32 %v2929_v42, %v3182_v44  ;;  %v3377_v20 = vpop.xlane.xlu1 %3376 }
 0x4ad   : > { %v3507_v26 = vmax.f32 %v2994_v10, %v3377_v20 }
 0x4ae   : > { %3571 = vst.msk [vmem:[%s5454_s27 + $0x1e8] sm:$0xff] %vm316_vm4, %v3442_v33 }
 0x4af   : > { %v3200_v4 = vpop.xlane.xlu0 %3199  ;;  %3636 = vst.msk [vmem:[%s5454_s27 + $0x3f0] sm:$0xff] %vm316_vm4, %v3507_v26 }
 0x4b0   : > { %v3448_v57 = vmax.f32 %v2935_v22, %v3200_v4 }
 0x4b2   : > { %3577 = vst.msk [vmem:[%s5454_s27 + $0x218] sm:$0xff] %vm316_vm4, %v3448_v57 }
 0x4b3   : > { %v3194_v55 = vpop.xlane.xlu0 %3193 }
 0x4b4   : > { %v3446_v23 = vmax.f32 %v2933_v19, %v3194_v55 }
 0x4b6   : > { %3575 = vst.msk [vmem:[%s5454_s27 + $0x208] sm:$0xff] %vm316_vm4, %v3446_v23 }
 0x4b7   : > { %v3380_v41 = vpop.xlane.xlu0 %3379 }
 0x4b8   : > { %v3508_v39 = vmax.f32 %v2995_v56, %v3380_v41 }
 0x4ba   : > { %3637 = vst.msk [vmem:[%s5454_s27 + $0x3f8] sm:$0xff] %vm316_vm4, %v3508_v39 }
 0x4bb PF: > { %s20_s29 = sadd.s32 1, %s4314_s29   ;;  %s7057_s24 = smov %s4298_s25 }
 0x4bc   : > { %p17_p9 = scmp.ge.s32.totalorder %s20_s29, 4   ;;  %s7058_s25 = smov %s4302_s26 }
 0x4bd   : > { %s7059_s26 = smov %s4408_s13  ;;  %s7060_s27 = smov %s4310_s28 }
 0x4be   : > { %s7061_s28 = smov %s7063_s8  ;;  %19 = sbr.rel (!%p17_p9) target bundleno = 4 (0x4), region = 92 }
 0x4c5   :  { %3659 = vsyncpa [#allocation3], 1 }
 0x4c6   :  { %3661 = vsyncpa [#allocation3 + $0x1], 1 }

// kernel: stnkd_forward.3
= control target key start
LH: loop header
LB: loop body
LE: loop exit
PB: predicated region body
PF: predicated region fallthrough
CT: control target
= control target key end

     0   :  { %v3528_v36 = vmov 1983009808   ;;  %v35_v38 = vlaneseq  ;;  %vm2632_vm0 = vcmask 517120   ;;  %s4667_s1 = inlined_call_operand.vmem [shape: bf16[1024,512], index: 1, kind: input, shape index: {}]   ;;  %s4668_s0 = inlined_call_operand.vmem [shape: f32[2,1024], index: 0, kind: input, shape index: {}]   ;;  %s4669_s3 = inlined_call_operand.vmem [shape: bf16[512,256], index: 3, kind: input, shape index: {}]   ;;  %s4670_s2 = inlined_call_operand.vmem [shape: f32[1,512], index: 2, kind: input, shape index: {}]   ;;  %s4671_s5 = inlined_call_operand.vmem [shape: bf16[256,64], index: 5, kind: input, shape index: {}]   ;;  %s4672_s4 = inlined_call_operand.vmem [shape: f32[1,256], index: 4, kind: input, shape index: {}]   ;;  %s4673_s6 = inlined_call_operand.vmem [shape: f32[1,64], index: 6, kind: input, shape index: {}]   ;;  %s4674_s7 = inlined_call_operand.vmem [shape: f32[2,64], index: 7, kind: output, shape index: {}]  }
   0x1   :  { %v3030_v0 = vld [vmem:[%s4667_s1 + $0x4] ss:$16 sps:$4 sm:$0xff]   ;;  %v3034_v2 = vld [vmem:[%s4667_s1] ss:$16 sps:$4 sm:$0xff]   ;;  %v33_v37 = vunpack.c.l.s4 %v3528_v36 }
   0x2   :  { %v3032_v1 = vld [vmem:[%s4667_s1 + $0x204] ss:$16 sps:$4 sm:$0xff]   ;;  %1639 = vmatprep.subr.bf16.mxu1 %v3030_v0  ;;  %v3035_v3 = vld [vmem:[%s4667_s1 + $0x200] ss:$16 sps:$4 sm:$0xff]   ;;  %v3686_v43 = vshrl.u32 %v35_v38, 7 }
   0x3   :  { %1680 = vmatprep.subr.bf16.mxu0 %v3032_v1  ;;  %v3036_v4 = vld [vmem:[%s4667_s1 + $0x24] ss:$16 sps:$4 sm:$0xff]   ;;  %1640 = vmatpush1.bf16.msra.mxu1 %v3034_v2  ;;  %v3040_v6 = vld [vmem:[%s4667_s1 + $0x20] ss:$16 sps:$4 sm:$0xff]   ;;  %v34_v42 = vunpack.c.0.s8 %v33_v37  ;;  %v3157_v37 = vld [vmem:[%s4667_s1 + $0x8c] ss:$16 sps:$4 sm:$0xff]  }
   0x4   :  { %1681 = vmatpush1.bf16.msra.mxu0 %v3035_v3  ;;  %v3038_v5 = vld [vmem:[%s4667_s1 + $0x224] ss:$16 sps:$4 sm:$0xff]   ;;  %1641 = vmatprep.subr.bf16.mxu1 %v3036_v4  ;;  %v3041_v7 = vld [vmem:[%s4667_s1 + $0x220] ss:$16 sps:$4 sm:$0xff]  }
   0x5   :  { %1682 = vmatprep.subr.bf16.mxu0 %v3038_v5  ;;  %v3042_v8 = vld [vmem:[%s4667_s1 + $0x44] ss:$16 sps:$4 sm:$0xff]   ;;  %v3046_v10 = vld [vmem:[%s4667_s1 + $0x40] ss:$16 sps:$4 sm:$0xff]   ;;  %v3704_v49 = vsub.s32 %v34_v42, %v3686_v43 }
   0x6   :  { %v3044_v9 = vld [vmem:[%s4667_s1 + $0x244] ss:$16 sps:$4 sm:$0xff]   ;;  %v3047_v11 = vld [vmem:[%s4667_s1 + $0x240] ss:$16 sps:$4 sm:$0xff]  }
   0x7   :  { %1642 = vmatpush1.bf16.msra.mxu1 %v3040_v6  ;;  %v3048_v12 = vld [vmem:[%s4667_s1 + $0x64] ss:$16 sps:$4 sm:$0xff]   ;;  %v3052_v14 = vld [vmem:[%s4667_s1 + $0x60] ss:$16 sps:$4 sm:$0xff]  }
   0x8   :  { %1683 = vmatpush1.bf16.msra.mxu0 %v3041_v7  ;;  %1643 = vmatprep.subr.bf16.mxu1 %v3042_v8  ;;  %v3050_v13 = vld [vmem:[%s4667_s1 + $0x264] ss:$16 sps:$4 sm:$0xff]   ;;  %v3053_v15 = vld [vmem:[%s4667_s1 + $0x260] ss:$16 sps:$4 sm:$0xff]   ;;  %v3759_v8 = vld [vmem:[%s4668_s0 + $0x8] sm:$0xff] }
   0x9   :  { %1684 = vmatprep.subr.bf16.mxu0 %v3044_v9  ;;  %v3054_v16 = vld [vmem:[%s4667_s1 + $0x84] ss:$16 sps:$4 sm:$0xff]   ;;  %v3058_v18 = vld [vmem:[%s4667_s1 + $0x80] ss:$16 sps:$4 sm:$0xff]  }
   0xa   :  { %v3056_v17 = vld [vmem:[%s4667_s1 + $0x284] ss:$16 sps:$4 sm:$0xff]   ;;  %v3059_v19 = vld [vmem:[%s4667_s1 + $0x280] ss:$16 sps:$4 sm:$0xff]  }
   0xb   :  { %1644 = vmatpush1.bf16.msra.mxu1 %v3046_v10  ;;  %v3060_v20 = vld [vmem:[%s4667_s1 + $0xa4] ss:$16 sps:$4 sm:$0xff]   ;;  %v3064_v22 = vld [vmem:[%s4667_s1 + $0xa0] ss:$16 sps:$4 sm:$0xff]  }
   0xc   :  { %1685 = vmatpush1.bf16.msra.mxu0 %v3047_v11  ;;  %1645 = vmatprep.subr.bf16.mxu1 %v3048_v12  ;;  %v3062_v21 = vld [vmem:[%s4667_s1 + $0x2a4] ss:$16 sps:$4 sm:$0xff]   ;;  %v3065_v23 = vld [vmem:[%s4667_s1 + $0x2a0] ss:$16 sps:$4 sm:$0xff]  }
   0xd   :  { %1686 = vmatprep.subr.bf16.mxu0 %v3050_v13  ;;  %v3066_v24 = vld [vmem:[%s4667_s1 + $0xc4] ss:$16 sps:$4 sm:$0xff]   ;;  %v3070_v26 = vld [vmem:[%s4667_s1 + $0xc0] ss:$16 sps:$4 sm:$0xff]   ;;  %v3775_v13 = vrot.slane %v3759_v8, %v3704_v49 }
   0xe   :  { %v3068_v25 = vld [vmem:[%s4667_s1 + $0x2c4] ss:$16 sps:$4 sm:$0xff]   ;;  %v3071_v27 = vld [vmem:[%s4667_s1 + $0x2c0] ss:$16 sps:$4 sm:$0xff]  }
   0xf   :  { %1646 = vmatpush1.bf16.msra.mxu1 %v3052_v14  ;;  %v3072_v28 = vld [vmem:[%s4667_s1 + $0xe4] ss:$16 sps:$4 sm:$0xff]   ;;  %v3076_v30 = vld [vmem:[%s4667_s1 + $0xe0] ss:$16 sps:$4 sm:$0xff]  }
  0x10   :  { %1687 = vmatpush1.bf16.msra.mxu0 %v3053_v15  ;;  %1647 = vmatprep.subr.bf16.mxu1 %v3054_v16  ;;  %v3074_v29 = vld [vmem:[%s4667_s1 + $0x2e4] ss:$16 sps:$4 sm:$0xff]   ;;  %v3077_v31 = vld [vmem:[%s4667_s1 + $0x2e0] ss:$16 sps:$4 sm:$0xff]  }
  0x11   :  { %1688 = vmatprep.subr.bf16.mxu0 %v3056_v17  ;;  %v3078_v32 = vld [vmem:[%s4667_s1 + $0x104] ss:$16 sps:$4 sm:$0xff]   ;;  %v3082_v34 = vld [vmem:[%s4667_s1 + $0x100] ss:$16 sps:$4 sm:$0xff]   ;;  %v3133_v17 = vld [vmem:[%s4667_s1 + $0xc] ss:$16 sps:$4 sm:$0xff]  }
  0x12   :  { %v3080_v33 = vld [vmem:[%s4667_s1 + $0x304] ss:$16 sps:$4 sm:$0xff]   ;;  %v3083_v35 = vld [vmem:[%s4667_s1 + $0x300] ss:$16 sps:$4 sm:$0xff]  }
  0x13   :  { %1648 = vmatpush1.bf16.msra.mxu1 %v3058_v18  ;;  %v3084_v39 = vld [vmem:[%s4667_s1 + $0x124] ss:$16 sps:$4 sm:$0xff]   ;;  %v3088_v41 = vld [vmem:[%s4667_s1 + $0x120] ss:$16 sps:$4 sm:$0xff]   ;;  %v63_v18 = vcombine.high %v3775_v13, %v3775_v13 }
  0x14   :  { %1689 = vmatpush1.bf16.msra.mxu0 %v3059_v19  ;;  %1649 = vmatprep.subr.bf16.mxu1 %v3060_v20  ;;  %v3086_v40 = vld [vmem:[%s4667_s1 + $0x324] ss:$16 sps:$4 sm:$0xff]   ;;  %v3089_v44 = vld [vmem:[%s4667_s1 + $0x320] ss:$16 sps:$4 sm:$0xff]  }
  0x15   :  { %1690 = vmatprep.subr.bf16.mxu0 %v3062_v21  ;;  %v3090_v45 = vld [vmem:[%s4667_s1 + $0x144] ss:$16 sps:$4 sm:$0xff]   ;;  %v3094_v47 = vld [vmem:[%s4667_s1 + $0x140] ss:$16 sps:$4 sm:$0xff]  }
  0x16   :  { %v3092_v46 = vld [vmem:[%s4667_s1 + $0x344] ss:$16 sps:$4 sm:$0xff]   ;;  %v3095_v48 = vld [vmem:[%s4667_s1 + $0x340] ss:$16 sps:$4 sm:$0xff]  }
  0x17   :  { %1650 = vmatpush1.bf16.msra.mxu1 %v3064_v22  ;;  %v3096_v50 = vld [vmem:[%s4667_s1 + $0x164] ss:$16 sps:$4 sm:$0xff]   ;;  %v3100_v55 = vld [vmem:[%s4667_s1 + $0x160] ss:$16 sps:$4 sm:$0xff]   ;;  %v3131_v22 = vld [vmem:[%s4667_s1 + $0x8] ss:$16 sps:$4 sm:$0xff]  }
  0x18   :  { %1691 = vmatpush1.bf16.msra.mxu0 %v3065_v23  ;;  %1651 = vmatprep.subr.bf16.mxu1 %v3066_v24  ;;  %v3098_v51 = vld [vmem:[%s4667_s1 + $0x364] ss:$16 sps:$4 sm:$0xff]   ;;  %v3101_v56 = vld [vmem:[%s4667_s1 + $0x360] ss:$16 sps:$4 sm:$0xff]   ;;  %v3139_v24 = vld [vmem:[%s4667_s1 + $0x2c] ss:$16 sps:$4 sm:$0xff]  }
  0x19   :  { %1692 = vmatprep.subr.bf16.mxu0 %v3068_v25  ;;  %v27_v52 = vld [vmem:[%s4668_s0] sm:$0xff]  ;;  %v3807_v25 = vpack.c.bf16 %v63_v18, %v63_v18  ;;  %v3217_v18 = vld [vmem:[%s4667_s1 + $0x1cc] ss:$16 sps:$4 sm:$0xff]  }
  0x1a   :  { %v38_v53 = vrot.slane %v27_v52, %v3704_v49  ;;  %v31_v54 = vcombine.high %v27_v52, %v27_v52  ;;  %v3102_v57 = vld [vmem:[%s4667_s1 + $0x184] ss:$16 sps:$4 sm:$0xff]   ;;  %v3106_v63 = vld [vmem:[%s4667_s1 + $0x180] ss:$16 sps:$4 sm:$0xff]  }
  0x1b   :  { %1652 = vmatpush1.bf16.msra.mxu1 %v3070_v26  ;;  %v3104_v58 = vld [vmem:[%s4667_s1 + $0x384] ss:$16 sps:$4 sm:$0xff]   ;;  %v3107_v0 = vld [vmem:[%s4667_s1 + $0x380] ss:$16 sps:$4 sm:$0xff]  }
  0x1c   :  { %1693 = vmatpush1.bf16.msra.mxu0 %v3071_v27  ;;  %1653 = vmatprep.subr.bf16.mxu1 %v3072_v28  ;;  %v46_v59 = vcombine.high %v38_v53, %v38_v53  ;;  %v45_v60 = vrot.slane %v31_v54, %v3704_v49  ;;  %v3108_v1 = vld [vmem:[%s4667_s1 + $0x1a4] ss:$16 sps:$4 sm:$0xff]   ;;  %v3112_v4 = vld [vmem:[%s4667_s1 + $0x1a0] ss:$16 sps:$4 sm:$0xff]   ;;  %v3791_v19 = vpack.c.bf16 %v38_v53, %v38_v53  ;;  %v3137_v27 = vld [vmem:[%s4667_s1 + $0x28] ss:$16 sps:$4 sm:$0xff]  }
  0x1d   :  { %1694 = vmatprep.subr.bf16.mxu0 %v3074_v29  ;;  %v3110_v2 = vld [vmem:[%s4667_s1 + $0x3a4] ss:$16 sps:$4 sm:$0xff]   ;;  %v3113_v5 = vld [vmem:[%s4667_s1 + $0x3a0] ss:$16 sps:$4 sm:$0xff]   ;;  %v3145_v29 = vld [vmem:[%s4667_s1 + $0x4c] ss:$16 sps:$4 sm:$0xff]  }
  0x1e   :  { %v74_v61 = vpack.c.bf16 %v46_v59, %v46_v59  ;;  %v47_v62 = vcombine.high %v45_v60, %v45_v60  ;;  %v3114_v6 = vld [vmem:[%s4667_s1 + $0x1c4] ss:$16 sps:$4 sm:$0xff]   ;;  %v3118_v9 = vld [vmem:[%s4667_s1 + $0x1c0] ss:$16 sps:$4 sm:$0xff]   ;;  %v3793_v20 = vpack.c.bf16 %v45_v60, %v45_v60  ;;  %v3173_v53 = vld [vmem:[%s4667_s1 + $0xe8] ss:$16 sps:$4 sm:$0xff]  }
  0x1f   :  { %1654 = vmatpush1.bf16.msra.mxu1 %v3076_v30  ;;  %v3116_v7 = vld [vmem:[%s4667_s1 + $0x3c4] ss:$16 sps:$4 sm:$0xff]   ;;  %v3119_v10 = vld [vmem:[%s4667_s1 + $0x3c0] ss:$16 sps:$4 sm:$0xff]   ;;  %v3187_v59 = vld [vmem:[%s4667_s1 + $0x12c] ss:$16 sps:$4 sm:$0xff]  }
  0x20   :  { %1695 = vmatpush1.bf16.msra.mxu0 %v3077_v31  ;;  %1655 = vmatprep.subr.bf16.mxu1 %v3078_v32  ;;  %v3741_v3 = vpack.c.bf16 %v47_v62, %v47_v62  ;;  %v3120_v11 = vld [vmem:[%s4667_s1 + $0x1e4] ss:$16 sps:$4 sm:$0xff]   ;;  %v3124_v14 = vld [vmem:[%s4667_s1 + $0x1e0] ss:$16 sps:$4 sm:$0xff]   ;;  %v3143_v31 = vld [vmem:[%s4667_s1 + $0x48] ss:$16 sps:$4 sm:$0xff]  }
  0x21   :  { %1696 = vmatprep.subr.bf16.mxu0 %v3080_v33  ;;  %1671 = vmatprep.mubr.bf16.mxu1 %v74_v61  ;;  %v3122_v12 = vld [vmem:[%s4667_s1 + $0x3e4] ss:$16 sps:$4 sm:$0xff]   ;;  %v3125_v15 = vld [vmem:[%s4667_s1 + $0x3e0] ss:$16 sps:$4 sm:$0xff]   ;;  %v3151_v33 = vld [vmem:[%s4667_s1 + $0x6c] ss:$16 sps:$4 sm:$0xff]  }
  0x22   :  { %1712 = vmatprep.mubr.bf16.mxu0 %v3741_v3  ;;  %v3130_v16 = vld [vmem:[%s4667_s1 + $0x404] ss:$16 sps:$4 sm:$0xff]   ;;  %v3128_v21 = vld [vmem:[%s4667_s1 + $0x400] ss:$16 sps:$4 sm:$0xff]  }
  0x23   :  { %1656 = vmatpush1.bf16.msra.mxu1 %v3082_v34  ;;  %v3136_v23 = vld [vmem:[%s4667_s1 + $0x424] ss:$16 sps:$4 sm:$0xff]   ;;  %v3134_v26 = vld [vmem:[%s4667_s1 + $0x420] ss:$16 sps:$4 sm:$0xff]  }
  0x24   :  { %1697 = vmatpush1.bf16.msra.mxu0 %v3083_v35  ;;  %1657 = vmatprep.subr.bf16.mxu1 %v3084_v39  ;;  %v3142_v28 = vld [vmem:[%s4667_s1 + $0x444] ss:$16 sps:$4 sm:$0xff]   ;;  %v3140_v30 = vld [vmem:[%s4667_s1 + $0x440] ss:$16 sps:$4 sm:$0xff]   ;;  %v3149_v35 = vld [vmem:[%s4667_s1 + $0x68] ss:$16 sps:$4 sm:$0xff]  }
  0x25   :  { %1698 = vmatprep.subr.bf16.mxu0 %v3086_v40  ;;  %v3148_v32 = vld [vmem:[%s4667_s1 + $0x464] ss:$16 sps:$4 sm:$0xff]   ;;  %v3146_v34 = vld [vmem:[%s4667_s1 + $0x460] ss:$16 sps:$4 sm:$0xff]   ;;  %v3155_v39 = vld [vmem:[%s4667_s1 + $0x88] ss:$16 sps:$4 sm:$0xff]  }
  0x26   :  { %v3154_v36 = vld [vmem:[%s4667_s1 + $0x484] ss:$16 sps:$4 sm:$0xff]   ;;  %v3152_v38 = vld [vmem:[%s4667_s1 + $0x480] ss:$16 sps:$4 sm:$0xff]  }
  0x27   :  { %1658 = vmatpush1.bf16.msra.mxu1 %v3088_v41  ;;  %v3160_v40 = vld [vmem:[%s4667_s1 + $0x4a4] ss:$16 sps:$4 sm:$0xff]   ;;  %v3163_v41 = vld [vmem:[%s4667_s1 + $0xac] ss:$16 sps:$4 sm:$0xff]   ;;  %v3158_v42 = vld [vmem:[%s4667_s1 + $0x4a0] ss:$16 sps:$4 sm:$0xff]  }
  0x28   :  { %1699 = vmatpush1.bf16.msra.mxu0 %v3089_v44  ;;  %1659 = vmatprep.subr.bf16.mxu1 %v3090_v45  ;;  %v3161_v44 = vld [vmem:[%s4667_s1 + $0xa8] ss:$16 sps:$4 sm:$0xff]   ;;  %v3166_v45 = vld [vmem:[%s4667_s1 + $0x4c4] ss:$16 sps:$4 sm:$0xff]   ;;  %v3170_v52 = vld [vmem:[%s4667_s1 + $0x4e0] ss:$16 sps:$4 sm:$0xff]  }
  0x29   :  { %1700 = vmatprep.subr.bf16.mxu0 %v3092_v46  ;;  %v3169_v46 = vld [vmem:[%s4667_s1 + $0xcc] ss:$16 sps:$4 sm:$0xff]   ;;  %v3178_v54 = vld [vmem:[%s4667_s1 + $0x504] ss:$16 sps:$4 sm:$0xff]   ;;  %v3182_v60 = vld [vmem:[%s4667_s1 + $0x520] ss:$16 sps:$4 sm:$0xff]  }
  0x2a   :  { %v3190_v62 = vld [vmem:[%s4667_s1 + $0x544] ss:$16 sps:$4 sm:$0xff]  }
  0x2b   :  { %1660 = vmatpush1.bf16.msra.mxu1 %v3094_v47  ;;  %v3164_v47 = vld [vmem:[%s4667_s1 + $0x4c0] ss:$16 sps:$4 sm:$0xff]  }
  0x2c   :  { %1701 = vmatpush1.bf16.msra.mxu0 %v3095_v48  ;;  %1661 = vmatprep.subr.bf16.mxu1 %v3096_v50  ;;  %v3167_v48 = vld [vmem:[%s4667_s1 + $0xc8] ss:$16 sps:$4 sm:$0xff]   ;;  %v3172_v50 = vld [vmem:[%s4667_s1 + $0x4e4] ss:$16 sps:$4 sm:$0xff]  }
  0x2d   :  { %1702 = vmatprep.subr.bf16.mxu0 %v3098_v51  ;;  %v3175_v51 = vld [vmem:[%s4667_s1 + $0xec] ss:$16 sps:$4 sm:$0xff]  }
  0x2f   :  { %1662 = vmatpush1.bf16.msra.mxu1 %v3100_v55  ;;  %v3181_v55 = vld [vmem:[%s4667_s1 + $0x10c] ss:$16 sps:$4 sm:$0xff]  }
  0x30   :  { %1703 = vmatpush1.bf16.msra.mxu0 %v3101_v56  ;;  %1663 = vmatprep.subr.bf16.mxu1 %v3102_v57  ;;  %v3176_v56 = vld [vmem:[%s4667_s1 + $0x500] ss:$16 sps:$4 sm:$0xff]   ;;  %v3179_v57 = vld [vmem:[%s4667_s1 + $0x108] ss:$16 sps:$4 sm:$0xff]  }
  0x31   :  { %1704 = vmatprep.subr.bf16.mxu0 %v3104_v58  ;;  %v3184_v58 = vld [vmem:[%s4667_s1 + $0x524] ss:$16 sps:$4 sm:$0xff]  }
  0x33   :  { %1664 = vmatpush1.bf16.msra.mxu1 %v3106_v63  ;;  %v3193_v63 = vld [vmem:[%s4667_s1 + $0x14c] ss:$16 sps:$4 sm:$0xff]  }
  0x34   :  { %1705 = vmatpush1.bf16.msra.mxu0 %v3107_v0  ;;  %1665 = vmatprep.subr.bf16.mxu1 %v3108_v1  ;;  %v3188_v0 = vld [vmem:[%s4667_s1 + $0x540] ss:$16 sps:$4 sm:$0xff]   ;;  %v3191_v1 = vld [vmem:[%s4667_s1 + $0x148] ss:$16 sps:$4 sm:$0xff]  }
  0x35   :  { %1706 = vmatprep.subr.bf16.mxu0 %v3110_v2  ;;  %v3196_v2 = vld [vmem:[%s4667_s1 + $0x564] ss:$16 sps:$4 sm:$0xff]  }
  0x37   :  { %1666 = vmatpush1.bf16.msra.mxu1 %v3112_v4  ;;  %v3199_v4 = vld [vmem:[%s4667_s1 + $0x16c] ss:$16 sps:$4 sm:$0xff]  }
  0x38   :  { %1707 = vmatpush1.bf16.msra.mxu0 %v3113_v5  ;;  %1667 = vmatprep.subr.bf16.mxu1 %v3114_v6  ;;  %v3194_v5 = vld [vmem:[%s4667_s1 + $0x560] ss:$16 sps:$4 sm:$0xff]   ;;  %v3197_v6 = vld [vmem:[%s4667_s1 + $0x168] ss:$16 sps:$4 sm:$0xff]  }
  0x39   :  { %1708 = vmatprep.subr.bf16.mxu0 %v3116_v7  ;;  %v3202_v7 = vld [vmem:[%s4667_s1 + $0x584] ss:$16 sps:$4 sm:$0xff]  }
  0x3b   :  { %1668 = vmatpush1.bf16.msra.mxu1 %v3118_v9  ;;  %v3205_v9 = vld [vmem:[%s4667_s1 + $0x18c] ss:$16 sps:$4 sm:$0xff]  }
  0x3c   :  { %1709 = vmatpush1.bf16.msra.mxu0 %v3119_v10  ;;  %1669 = vmatprep.subr.bf16.mxu1 %v3120_v11  ;;  %v3200_v10 = vld [vmem:[%s4667_s1 + $0x580] ss:$16 sps:$4 sm:$0xff]   ;;  %v3203_v11 = vld [vmem:[%s4667_s1 + $0x188] ss:$16 sps:$4 sm:$0xff]  }
  0x3d   :  { %1710 = vmatprep.subr.bf16.mxu0 %v3122_v12  ;;  %v3208_v12 = vld [vmem:[%s4667_s1 + $0x5a4] ss:$16 sps:$4 sm:$0xff]  }
  0x3f   :  { %1670 = vmatpush1.bf16.msra.mxu1 %v3124_v14  ;;  %v3211_v14 = vld [vmem:[%s4667_s1 + $0x1ac] ss:$16 sps:$4 sm:$0xff]  }
  0x40   :  { %1711 = vmatpush1.bf16.msra.mxu0 %v3125_v15  ;;  %1803 = vmatprep.subr.bf16.mxu1 %v3133_v17  ;;  %v3206_v15 = vld [vmem:[%s4667_s1 + $0x5a0] ss:$16 sps:$4 sm:$0xff]   ;;  %v3214_v17 = vld [vmem:[%s4667_s1 + $0x5c4] ss:$16 sps:$4 sm:$0xff]  }
  0x41   :  { %1721 = vmatprep.subr.bf16.mxu0 %v3130_v16  ;;  %v3209_v16 = vld [vmem:[%s4667_s1 + $0x1a8] ss:$16 sps:$4 sm:$0xff]  }
  0x42   :  { %1672 = vmatmul.mubr.bf16.vlgmr.msra.gmra.mrb[0].mxu1 %v3791_v19 }
  0x43   :  { %1713 = vmatmul.mubr.bf16.vlgmr.msra.gmra.mrb[0].mxu0 %v3793_v20  ;;  %1804 = vmatpush1.bf16.msra.mxu1 %v3131_v22  ;;  %v3212_v22 = vld [vmem:[%s4667_s1 + $0x5c0] ss:$16 sps:$4 sm:$0xff]  }
  0x44   :  { %1722 = vmatpush1.bf16.msra.mxu0 %v3128_v21  ;;  %1805 = vmatprep.subr.bf16.mxu1 %v3139_v24  ;;  %v48_v21 = vcombine.high %v3759_v8, %v3759_v8  ;;  %v3220_v24 = vld [vmem:[%s4667_s1 + $0x5e4] ss:$16 sps:$4 sm:$0xff]   ;;  %v3223_v8 = vld [vmem:[%s4667_s1 + $0x1ec] ss:$16 sps:$4 sm:$0xff]  }
  0x45   :  { %1723 = vmatprep.subr.bf16.mxu0 %v3136_v23  ;;  %1753 = vmatprep.mubr.bf16.mxu0 %v3807_v25  ;;  %v3215_v23 = vld [vmem:[%s4667_s1 + $0x1c8] ss:$16 sps:$4 sm:$0xff]  }
  0x46   :  { %1835 = vmatprep.mubr.bf16.mxu1 %v74_v61  ;;  %v3185_v61 = vld [vmem:[%s4667_s1 + $0x128] ss:$16 sps:$4 sm:$0xff]  }
  0x47   :  { %1806 = vmatpush1.bf16.msra.mxu1 %v3137_v27  ;;  %v3218_v27 = vld [vmem:[%s4667_s1 + $0x5e0] ss:$16 sps:$4 sm:$0xff]  }
  0x48   :  { %1724 = vmatpush1.bf16.msra.mxu0 %v3134_v26  ;;  %1807 = vmatprep.subr.bf16.mxu1 %v3145_v29  ;;  %v3983_v26 = vrot.slane %v48_v21, %v3704_v49  ;;  %v3226_v29 = vld [vmem:[%s4667_s1 + $0x604] ss:$16 sps:$4 sm:$0xff]   ;;  %v3229_v49 = vld [vmem:[%s4667_s1 + $0x20c] ss:$16 sps:$4 sm:$0xff]   ;;  %v3296_v21 = vld [vmem:[%s4667_s1 + $0x780] ss:$16 sps:$4 sm:$0xff]  }
  0x49   :  { %1725 = vmatprep.subr.bf16.mxu0 %v3142_v28  ;;  %v3221_v28 = vld [vmem:[%s4667_s1 + $0x1e8] ss:$16 sps:$4 sm:$0xff]  }
  0x4b   :  { %1808 = vmatpush1.bf16.msra.mxu1 %v3143_v31  ;;  %v4001_v31 = vpack.c.bf16 %v3775_v13, %v3775_v13  ;;  %v3235_v13 = vld [vmem:[%s4667_s1 + $0x22c] ss:$16 sps:$4 sm:$0xff]  }
  0x4c   :  { %1726 = vmatpush1.bf16.msra.mxu0 %v3140_v30  ;;  %1809 = vmatprep.subr.bf16.mxu1 %v3151_v33  ;;  %v64_v30 = vcombine.high %v3983_v26, %v3983_v26  ;;  %v3227_v33 = vld [vmem:[%s4667_s1 + $0x208] ss:$16 sps:$4 sm:$0xff]  }
  0x4d   :  { %1727 = vmatprep.subr.bf16.mxu0 %v3148_v32  ;;  %v3224_v32 = vld [vmem:[%s4667_s1 + $0x600] ss:$16 sps:$4 sm:$0xff]  }
  0x4f   :  { %1810 = vmatpush1.bf16.msra.mxu1 %v3149_v35  ;;  %v4015_v35 = vpack.c.bf16 %v64_v30, %v64_v30  ;;  %v3311_v30 = vld [vmem:[%s4667_s1 + $0x3c8] ss:$16 sps:$4 sm:$0xff]  }
  0x50   :  { %1728 = vmatpush1.bf16.msra.mxu0 %v3146_v34  ;;  %1811 = vmatprep.subr.bf16.mxu1 %v3157_v37  ;;  %v3232_v34 = vld [vmem:[%s4667_s1 + $0x624] ss:$16 sps:$4 sm:$0xff]   ;;  %v3233_v37 = vld [vmem:[%s4667_s1 + $0x228] ss:$16 sps:$4 sm:$0xff]  }
  0x51   :  { %1729 = vmatprep.subr.bf16.mxu0 %v3154_v36  ;;  %v3230_v36 = vld [vmem:[%s4667_s1 + $0x620] ss:$16 sps:$4 sm:$0xff]  }
  0x53   :  { %1812 = vmatpush1.bf16.msra.mxu1 %v3155_v39  ;;  %v3236_v39 = vld [vmem:[%s4667_s1 + $0x640] ss:$16 sps:$4 sm:$0xff]  }
  0x54   :  { %1730 = vmatpush1.bf16.msra.mxu0 %v3152_v38  ;;  %1813 = vmatprep.subr.bf16.mxu1 %v3163_v41  ;;  %v3238_v38 = vld [vmem:[%s4667_s1 + $0x644] ss:$16 sps:$4 sm:$0xff]  }
  0x55   :  { %1731 = vmatprep.subr.bf16.mxu0 %v3160_v40  ;;  %v3239_v40 = vld [vmem:[%s4667_s1 + $0x248] ss:$16 sps:$4 sm:$0xff]   ;;  %v3244_v41 = vld [vmem:[%s4667_s1 + $0x664] ss:$16 sps:$4 sm:$0xff]  }
  0x57   :  { %1814 = vmatpush1.bf16.msra.mxu1 %v3161_v44  ;;  %v3245_v44 = vld [vmem:[%s4667_s1 + $0x268] ss:$16 sps:$4 sm:$0xff]  }
  0x58   :  { %1732 = vmatpush1.bf16.msra.mxu0 %v3158_v42  ;;  %1815 = vmatprep.subr.bf16.mxu1 %v3169_v46  ;;  %v3242_v42 = vld [vmem:[%s4667_s1 + $0x660] ss:$16 sps:$4 sm:$0xff]   ;;  %v3253_v46 = vld [vmem:[%s4667_s1 + $0x28c] ss:$16 sps:$4 sm:$0xff]  }
  0x59   :  { %1733 = vmatprep.subr.bf16.mxu0 %v3166_v45  ;;  %v3250_v45 = vld [vmem:[%s4667_s1 + $0x684] ss:$16 sps:$4 sm:$0xff]  }
  0x5b   :  { %1816 = vmatpush1.bf16.msra.mxu1 %v3167_v48  ;;  %v3251_v48 = vld [vmem:[%s4667_s1 + $0x288] ss:$16 sps:$4 sm:$0xff]  }
  0x5c   :  { %1734 = vmatpush1.bf16.msra.mxu0 %v3164_v47  ;;  %1817 = vmatprep.subr.bf16.mxu1 %v3175_v51  ;;  %v3248_v47 = vld [vmem:[%s4667_s1 + $0x680] ss:$16 sps:$4 sm:$0xff]   ;;  %v3259_v51 = vld [vmem:[%s4667_s1 + $0x2ac] ss:$16 sps:$4 sm:$0xff]  }
  0x5d   :  { %1735 = vmatprep.subr.bf16.mxu0 %v3172_v50  ;;  %v3256_v50 = vld [vmem:[%s4667_s1 + $0x6a4] ss:$16 sps:$4 sm:$0xff]  }
  0x5f   :  { %1818 = vmatpush1.bf16.msra.mxu1 %v3173_v53  ;;  %v3257_v53 = vld [vmem:[%s4667_s1 + $0x2a8] ss:$16 sps:$4 sm:$0xff]  }
  0x60   :  { %1736 = vmatpush1.bf16.msra.mxu0 %v3170_v52  ;;  %1819 = vmatprep.subr.bf16.mxu1 %v3181_v55  ;;  %v3254_v52 = vld [vmem:[%s4667_s1 + $0x6a0] ss:$16 sps:$4 sm:$0xff]   ;;  %v3265_v55 = vld [vmem:[%s4667_s1 + $0x2cc] ss:$16 sps:$4 sm:$0xff]  }
  0x61   :  { %1737 = vmatprep.subr.bf16.mxu0 %v3178_v54  ;;  %v3262_v54 = vld [vmem:[%s4667_s1 + $0x6c4] ss:$16 sps:$4 sm:$0xff]  }
  0x63   :  { %1820 = vmatpush1.bf16.msra.mxu1 %v3179_v57  ;;  %v3263_v57 = vld [vmem:[%s4667_s1 + $0x2c8] ss:$16 sps:$4 sm:$0xff]  }
  0x64   :  { %1738 = vmatpush1.bf16.msra.mxu0 %v3176_v56  ;;  %1821 = vmatprep.subr.bf16.mxu1 %v3187_v59  ;;  %v3260_v56 = vld [vmem:[%s4667_s1 + $0x6c0] ss:$16 sps:$4 sm:$0xff]   ;;  %v3271_v59 = vld [vmem:[%s4667_s1 + $0x2ec] ss:$16 sps:$4 sm:$0xff]  }
  0x65   :  { %1739 = vmatprep.subr.bf16.mxu0 %v3184_v58  ;;  %v3268_v58 = vld [vmem:[%s4667_s1 + $0x6e4] ss:$16 sps:$4 sm:$0xff]  }
  0x67   :  { %1822 = vmatpush1.bf16.msra.mxu1 %v3185_v61  ;;  %v3269_v61 = vld [vmem:[%s4667_s1 + $0x2e8] ss:$16 sps:$4 sm:$0xff]  }
  0x68   :  { %1740 = vmatpush1.bf16.msra.mxu0 %v3182_v60  ;;  %1823 = vmatprep.subr.bf16.mxu1 %v3193_v63  ;;  %v3266_v60 = vld [vmem:[%s4667_s1 + $0x6e0] ss:$16 sps:$4 sm:$0xff]   ;;  %v3277_v63 = vld [vmem:[%s4667_s1 + $0x30c] ss:$16 sps:$4 sm:$0xff]  }
  0x69   :  { %1741 = vmatprep.subr.bf16.mxu0 %v3190_v62  ;;  %v3274_v62 = vld [vmem:[%s4667_s1 + $0x704] ss:$16 sps:$4 sm:$0xff]  }
  0x6b   :  { %1824 = vmatpush1.bf16.msra.mxu1 %v3191_v1  ;;  %v3275_v1 = vld [vmem:[%s4667_s1 + $0x308] ss:$16 sps:$4 sm:$0xff]  }
  0x6c   :  { %1742 = vmatpush1.bf16.msra.mxu0 %v3188_v0  ;;  %1825 = vmatprep.subr.bf16.mxu1 %v3199_v4  ;;  %v3272_v0 = vld [vmem:[%s4667_s1 + $0x700] ss:$16 sps:$4 sm:$0xff]   ;;  %v3283_v4 = vld [vmem:[%s4667_s1 + $0x32c] ss:$16 sps:$4 sm:$0xff]  }
  0x6d   :  { %1743 = vmatprep.subr.bf16.mxu0 %v3196_v2  ;;  %v3280_v2 = vld [vmem:[%s4667_s1 + $0x724] ss:$16 sps:$4 sm:$0xff]  }
  0x6f   :  { %1826 = vmatpush1.bf16.msra.mxu1 %v3197_v6  ;;  %v3281_v6 = vld [vmem:[%s4667_s1 + $0x328] ss:$16 sps:$4 sm:$0xff]  }
  0x70   :  { %1744 = vmatpush1.bf16.msra.mxu0 %v3194_v5  ;;  %1827 = vmatprep.subr.bf16.mxu1 %v3205_v9  ;;  %v3278_v5 = vld [vmem:[%s4667_s1 + $0x720] ss:$16 sps:$4 sm:$0xff]   ;;  %v3289_v9 = vld [vmem:[%s4667_s1 + $0x34c] ss:$16 sps:$4 sm:$0xff]  }
  0x71   :  { %1745 = vmatprep.subr.bf16.mxu0 %v3202_v7  ;;  %v3286_v7 = vld [vmem:[%s4667_s1 + $0x744] ss:$16 sps:$4 sm:$0xff]  }
  0x73   :  { %1828 = vmatpush1.bf16.msra.mxu1 %v3203_v11  ;;  %v3287_v11 = vld [vmem:[%s4667_s1 + $0x348] ss:$16 sps:$4 sm:$0xff]  }
  0x74   :  { %1746 = vmatpush1.bf16.msra.mxu0 %v3200_v10  ;;  %1829 = vmatprep.subr.bf16.mxu1 %v3211_v14  ;;  %v3284_v10 = vld [vmem:[%s4667_s1 + $0x740] ss:$16 sps:$4 sm:$0xff]   ;;  %v3295_v14 = vld [vmem:[%s4667_s1 + $0x36c] ss:$16 sps:$4 sm:$0xff]  }
  0x75   :  { %1747 = vmatprep.subr.bf16.mxu0 %v3208_v12  ;;  %v3292_v12 = vld [vmem:[%s4667_s1 + $0x764] ss:$16 sps:$4 sm:$0xff]  }
  0x77   :  { %1830 = vmatpush1.bf16.msra.mxu1 %v3209_v16  ;;  %v3293_v16 = vld [vmem:[%s4667_s1 + $0x368] ss:$16 sps:$4 sm:$0xff]  }
  0x78   :  { %1748 = vmatpush1.bf16.msra.mxu0 %v3206_v15  ;;  %1831 = vmatprep.subr.bf16.mxu1 %v3217_v18  ;;  %v3290_v15 = vld [vmem:[%s4667_s1 + $0x760] ss:$16 sps:$4 sm:$0xff]   ;;  %v3301_v18 = vld [vmem:[%s4667_s1 + $0x38c] ss:$16 sps:$4 sm:$0xff]  }
  0x79   :  { %1749 = vmatprep.subr.bf16.mxu0 %v3214_v17  ;;  %v3298_v17 = vld [vmem:[%s4667_s1 + $0x784] ss:$16 sps:$4 sm:$0xff]  }
  0x7b   :  { %1832 = vmatpush1.bf16.msra.mxu1 %v3215_v23  ;;  %v3304_v23 = vld [vmem:[%s4667_s1 + $0x7a4] ss:$16 sps:$4 sm:$0xff]  }
  0x7c   :  { %1750 = vmatpush1.bf16.msra.mxu0 %v3212_v22  ;;  %1833 = vmatprep.subr.bf16.mxu1 %v3223_v8  ;;  %v3299_v22 = vld [vmem:[%s4667_s1 + $0x388] ss:$16 sps:$4 sm:$0xff]   ;;  %v3302_v8 = vld [vmem:[%s4667_s1 + $0x7a0] ss:$16 sps:$4 sm:$0xff]  }
  0x7d   :  { %1751 = vmatprep.subr.bf16.mxu0 %v3220_v24  ;;  %v3307_v24 = vld [vmem:[%s4667_s1 + $0x3ac] ss:$16 sps:$4 sm:$0xff]  }
  0x7f   :  { %1834 = vmatpush1.bf16.msra.mxu1 %v3221_v28  ;;  %v3310_v28 = vld [vmem:[%s4667_s1 + $0x7c4] ss:$16 sps:$4 sm:$0xff]  }
  0x80   :  { %1752 = vmatpush1.bf16.msra.mxu0 %v3218_v27  ;;  %1844 = vmatprep.subr.bf16.mxu1 %v3229_v49  ;;  %v3305_v27 = vld [vmem:[%s4667_s1 + $0x3a8] ss:$16 sps:$4 sm:$0xff]   ;;  %v3308_v49 = vld [vmem:[%s4667_s1 + $0x7c0] ss:$16 sps:$4 sm:$0xff]  }
  0x81   :  { %1762 = vmatprep.subr.bf16.mxu0 %v3226_v29  ;;  %v3313_v29 = vld [vmem:[%s4667_s1 + $0x3cc] ss:$16 sps:$4 sm:$0xff]  }
  0x82   :  { %1836 = vmatmul.mubr.bf16.vlgmr.msra.gmra.mrb[4].mxu1 %v3791_v19  ;;  %v3241_v19 = vld [vmem:[%s4667_s1 + $0x24c] ss:$16 sps:$4 sm:$0xff]  }
  0x83   :  { %1754 = vmatmul.mubr.bf16.vlgmr.msra.gmra.mrb[0].mxu0 %v4001_v31  ;;  %1845 = vmatpush1.bf16.msra.mxu1 %v3227_v33  ;;  %v3319_v33 = vld [vmem:[%s4667_s1 + $0x3ec] ss:$16 sps:$4 sm:$0xff]  }
  0x84   :  { %1763 = vmatpush1.bf16.msra.mxu0 %v3224_v32  ;;  %1846 = vmatprep.subr.bf16.mxu1 %v3235_v13  ;;  %v3316_v32 = vld [vmem:[%s4667_s1 + $0x7e4] ss:$16 sps:$4 sm:$0xff]   ;;  %v3317_v13 = vld [vmem:[%s4667_s1 + $0x3e8] ss:$16 sps:$4 sm:$0xff]  }
  0x85   :  { %1764 = vmatprep.subr.bf16.mxu0 %v3232_v34  ;;  %1794 = vmatprep.mubr.bf16.mxu0 %v4015_v35  ;;  %v3314_v34 = vld [vmem:[%s4667_s1 + $0x7e0] ss:$16 sps:$4 sm:$0xff]  }
  0x86   :  { %1876 = vmatprep.mubr.bf16.mxu1 %v3741_v3  ;;  %v3247_v3 = vld [vmem:[%s4667_s1 + $0x26c] ss:$16 sps:$4 sm:$0xff]  }
  0x87   :  { %1847 = vmatpush1.bf16.msra.mxu1 %v3233_v37  ;;  %v4200_v37 = vpack.c.bf16 %v3983_v26, %v3983_v26  ;;  %v3323_v26 = vld [vmem:[%s4667_s1 + $0x428] ss:$16 sps:$4 sm:$0xff]  }
  0x88   :  { %1765 = vmatpush1.bf16.msra.mxu0 %v3230_v36  ;;  %1848 = vmatprep.subr.bf16.mxu1 %v3241_v19  ;;  %v3322_v36 = vld [vmem:[%s4667_s1 + $0x40c] ss:$16 sps:$4 sm:$0xff]  }
  0x89   :  { %1766 = vmatprep.subr.bf16.mxu0 %v3238_v38  ;;  %v3320_v38 = vld [vmem:[%s4667_s1 + $0x408] ss:$16 sps:$4 sm:$0xff]   ;;  %v3325_v19 = vld [vmem:[%s4667_s1 + $0x42c] ss:$16 sps:$4 sm:$0xff]  }
  0x8b   :  { %1849 = vmatpush1.bf16.msra.mxu1 %v3239_v40  ;;  %v3416_v40 = vld [vmem:[%s4669_s3] ss:$8 sps:$4 sm:$0xff]  }
  0x8c   :  { %1767 = vmatpush1.bf16.msra.mxu0 %v3236_v39  ;;  %1850 = vmatprep.subr.bf16.mxu1 %v3247_v3  ;;  %v3328_v39 = vld [vmem:[%s4667_s1 + $0x44c] ss:$16 sps:$4 sm:$0xff]   ;;  %v3326_v3 = vld [vmem:[%s4667_s1 + $0x448] ss:$16 sps:$4 sm:$0xff]  }
  0x8d   :  { %1768 = vmatprep.subr.bf16.mxu0 %v3244_v41  ;;  %v3421_v41 = vld [vmem:[%s4669_s3 + $0x14] ss:$8 sps:$4 sm:$0xff]  }
  0x8f   :  { %1851 = vmatpush1.bf16.msra.mxu1 %v3245_v44  ;;  %v3424_v44 = vld [vmem:[%s4669_s3 + $0x24] ss:$8 sps:$4 sm:$0xff]  }
  0x90   :  { %1769 = vmatpush1.bf16.msra.mxu0 %v3242_v42  ;;  %1852 = vmatprep.subr.bf16.mxu1 %v3253_v46  ;;  %v3419_v42 = vld [vmem:[%s4669_s3 + $0x10] ss:$8 sps:$4 sm:$0xff]   ;;  %v3334_v46 = vld [vmem:[%s4667_s1 + $0x48c] ss:$16 sps:$4 sm:$0xff]  }
  0x91   :  { %1770 = vmatprep.subr.bf16.mxu0 %v3250_v45  ;;  %v3329_v45 = vld [vmem:[%s4667_s1 + $0x468] ss:$16 sps:$4 sm:$0xff]  }
  0x93   :  { %1853 = vmatpush1.bf16.msra.mxu1 %v3251_v48  ;;  %v3427_v48 = vld [vmem:[%s4669_s3 + $0x34] ss:$8 sps:$4 sm:$0xff]  }
  0x94   :  { %1771 = vmatpush1.bf16.msra.mxu0 %v3248_v47  ;;  %1854 = vmatprep.subr.bf16.mxu1 %v3259_v51  ;;  %v3422_v47 = vld [vmem:[%s4669_s3 + $0x20] ss:$8 sps:$4 sm:$0xff]   ;;  %v3337_v51 = vld [vmem:[%s4667_s1 + $0x4ac] ss:$16 sps:$4 sm:$0xff]  }
  0x95   :  { %1772 = vmatprep.subr.bf16.mxu0 %v3256_v50  ;;  %v3332_v50 = vld [vmem:[%s4667_s1 + $0x488] ss:$16 sps:$4 sm:$0xff]  }
  0x97   :  { %1855 = vmatpush1.bf16.msra.mxu1 %v3257_v53  ;;  %v3430_v53 = vld [vmem:[%s4669_s3 + $0x44] ss:$8 sps:$4 sm:$0xff]  }
  0x98   :  { %1773 = vmatpush1.bf16.msra.mxu0 %v3254_v52  ;;  %1856 = vmatprep.subr.bf16.mxu1 %v3265_v55  ;;  %v3425_v52 = vld [vmem:[%s4669_s3 + $0x30] ss:$8 sps:$4 sm:$0xff]   ;;  %v3340_v55 = vld [vmem:[%s4667_s1 + $0x4cc] ss:$16 sps:$4 sm:$0xff]  }
  0x99   :  { %1774 = vmatprep.subr.bf16.mxu0 %v3262_v54  ;;  %v3335_v54 = vld [vmem:[%s4667_s1 + $0x4a8] ss:$16 sps:$4 sm:$0xff]  }
  0x9b   :  { %1857 = vmatpush1.bf16.msra.mxu1 %v3263_v57  ;;  %v3433_v57 = vld [vmem:[%s4669_s3 + $0x54] ss:$8 sps:$4 sm:$0xff]  }
  0x9c   :  { %1775 = vmatpush1.bf16.msra.mxu0 %v3260_v56  ;;  %1858 = vmatprep.subr.bf16.mxu1 %v3271_v59  ;;  %v3428_v56 = vld [vmem:[%s4669_s3 + $0x40] ss:$8 sps:$4 sm:$0xff]   ;;  %v3431_v59 = vld [vmem:[%s4669_s3 + $0x50] ss:$8 sps:$4 sm:$0xff]  }
  0x9d   :  { %1776 = vmatprep.subr.bf16.mxu0 %v3268_v58  ;;  %v3338_v58 = vld [vmem:[%s4667_s1 + $0x4c8] ss:$16 sps:$4 sm:$0xff]  }
  0x9f   :  { %1859 = vmatpush1.bf16.msra.mxu1 %v3269_v61  ;;  %v3436_v61 = vld [vmem:[%s4669_s3 + $0x64] ss:$8 sps:$4 sm:$0xff]  }
  0xa0   :  { %1777 = vmatpush1.bf16.msra.mxu0 %v3266_v60  ;;  %1860 = vmatprep.subr.bf16.mxu1 %v3277_v63  ;;  %v3343_v60 = vld [vmem:[%s4667_s1 + $0x4ec] ss:$16 sps:$4 sm:$0xff]   ;;  %v3434_v63 = vld [vmem:[%s4669_s3 + $0x60] ss:$8 sps:$4 sm:$0xff]  }
  0xa1   :  { %1778 = vmatprep.subr.bf16.mxu0 %v3274_v62  ;;  %v3341_v62 = vld [vmem:[%s4667_s1 + $0x4e8] ss:$16 sps:$4 sm:$0xff]  }
  0xa3   :  { %1861 = vmatpush1.bf16.msra.mxu1 %v3275_v1  ;;  %v3439_v1 = vld [vmem:[%s4669_s3 + $0x74] ss:$8 sps:$4 sm:$0xff]  }
  0xa4   :  { %1779 = vmatpush1.bf16.msra.mxu0 %v3272_v0  ;;  %1862 = vmatprep.subr.bf16.mxu1 %v3283_v4  ;;  %v3346_v0 = vld [vmem:[%s4667_s1 + $0x50c] ss:$16 sps:$4 sm:$0xff]   ;;  %v3437_v4 = vld [vmem:[%s4669_s3 + $0x70] ss:$8 sps:$4 sm:$0xff]  }
  0xa5   :  { %1780 = vmatprep.subr.bf16.mxu0 %v3280_v2  ;;  %v3344_v2 = vld [vmem:[%s4667_s1 + $0x508] ss:$16 sps:$4 sm:$0xff]  }
  0xa7   :  { %1863 = vmatpush1.bf16.msra.mxu1 %v3281_v6  ;;  %v3442_v6 = vld [vmem:[%s4669_s3 + $0x84] ss:$8 sps:$4 sm:$0xff]  }
  0xa8   :  { %1781 = vmatpush1.bf16.msra.mxu0 %v3278_v5  ;;  %1864 = vmatprep.subr.bf16.mxu1 %v3289_v9  ;;  %v3349_v5 = vld [vmem:[%s4667_s1 + $0x52c] ss:$16 sps:$4 sm:$0xff]   ;;  %v3440_v9 = vld [vmem:[%s4669_s3 + $0x80] ss:$8 sps:$4 sm:$0xff]  }
  0xa9   :  { %1782 = vmatprep.subr.bf16.mxu0 %v3286_v7  ;;  %v3347_v7 = vld [vmem:[%s4667_s1 + $0x528] ss:$16 sps:$4 sm:$0xff]  }
  0xab   :  { %1865 = vmatpush1.bf16.msra.mxu1 %v3287_v11  ;;  %v3445_v11 = vld [vmem:[%s4669_s3 + $0x94] ss:$8 sps:$4 sm:$0xff]  }
  0xac   :  { %1783 = vmatpush1.bf16.msra.mxu0 %v3284_v10  ;;  %1866 = vmatprep.subr.bf16.mxu1 %v3295_v14  ;;  %v3352_v10 = vld [vmem:[%s4667_s1 + $0x54c] ss:$16 sps:$4 sm:$0xff]   ;;  %v3443_v14 = vld [vmem:[%s4669_s3 + $0x90] ss:$8 sps:$4 sm:$0xff]  }
  0xad   :  { %1784 = vmatprep.subr.bf16.mxu0 %v3292_v12  ;;  %v3350_v12 = vld [vmem:[%s4667_s1 + $0x548] ss:$16 sps:$4 sm:$0xff]  }
  0xaf   :  { %1867 = vmatpush1.bf16.msra.mxu1 %v3293_v16  ;;  %v3448_v16 = vld [vmem:[%s4669_s3 + $0xa4] ss:$8 sps:$4 sm:$0xff]  }
  0xb0   :  { %1785 = vmatpush1.bf16.msra.mxu0 %v3290_v15  ;;  %1868 = vmatprep.subr.bf16.mxu1 %v3301_v18  ;;  %v3355_v15 = vld [vmem:[%s4667_s1 + $0x56c] ss:$16 sps:$4 sm:$0xff]   ;;  %v3446_v18 = vld [vmem:[%s4669_s3 + $0xa0] ss:$8 sps:$4 sm:$0xff]  }
  0xb1   :  { %1786 = vmatprep.subr.bf16.mxu0 %v3298_v17  ;;  %v3353_v17 = vld [vmem:[%s4667_s1 + $0x568] ss:$16 sps:$4 sm:$0xff]  }
  0xb3   :  { %1869 = vmatpush1.bf16.msra.mxu1 %v3299_v22  ;;  %v3451_v22 = vld [vmem:[%s4669_s3 + $0xb4] ss:$8 sps:$4 sm:$0xff]  }
  0xb4   :  { %1787 = vmatpush1.bf16.msra.mxu0 %v3296_v21  ;;  %1870 = vmatprep.subr.bf16.mxu1 %v3307_v24  ;;  %v3358_v21 = vld [vmem:[%s4667_s1 + $0x58c] ss:$16 sps:$4 sm:$0xff]   ;;  %v3449_v24 = vld [vmem:[%s4669_s3 + $0xb0] ss:$8 sps:$4 sm:$0xff]  }
  0xb5   :  { %1788 = vmatprep.subr.bf16.mxu0 %v3304_v23  ;;  %v3356_v23 = vld [vmem:[%s4667_s1 + $0x588] ss:$16 sps:$4 sm:$0xff]  }
  0xb7   :  { %1871 = vmatpush1.bf16.msra.mxu1 %v3305_v27  ;;  %v3454_v27 = vld [vmem:[%s4669_s3 + $0xc4] ss:$8 sps:$4 sm:$0xff]  }
  0xb8   :  { %1789 = vmatpush1.bf16.msra.mxu0 %v3302_v8  ;;  %1872 = vmatprep.subr.bf16.mxu1 %v3313_v29  ;;  %v3361_v8 = vld [vmem:[%s4667_s1 + $0x5ac] ss:$16 sps:$4 sm:$0xff]   ;;  %v3452_v29 = vld [vmem:[%s4669_s3 + $0xc0] ss:$8 sps:$4 sm:$0xff]  }
  0xb9   :  { %1790 = vmatprep.subr.bf16.mxu0 %v3310_v28  ;;  %v3359_v28 = vld [vmem:[%s4667_s1 + $0x5a8] ss:$16 sps:$4 sm:$0xff]  }
  0xbb   :  { %1873 = vmatpush1.bf16.msra.mxu1 %v3311_v30  ;;  %v3457_v30 = vld [vmem:[%s4669_s3 + $0xd4] ss:$8 sps:$4 sm:$0xff]  }
  0xbc   :  { %1791 = vmatpush1.bf16.msra.mxu0 %v3308_v49  ;;  %1874 = vmatprep.subr.bf16.mxu1 %v3319_v33  ;;  %v3364_v49 = vld [vmem:[%s4667_s1 + $0x5cc] ss:$16 sps:$4 sm:$0xff]   ;;  %v3455_v33 = vld [vmem:[%s4669_s3 + $0xd0] ss:$8 sps:$4 sm:$0xff]  }
  0xbd   :  { %1792 = vmatprep.subr.bf16.mxu0 %v3316_v32  ;;  %v3362_v32 = vld [vmem:[%s4667_s1 + $0x5c8] ss:$16 sps:$4 sm:$0xff]  }
  0xbf   :  { %1875 = vmatpush1.bf16.msra.mxu1 %v3317_v13  ;;  %v3365_v13 = vld [vmem:[%s4667_s1 + $0x5e8] ss:$16 sps:$4 sm:$0xff]  }
  0xc0   :  { %1793 = vmatpush1.bf16.msra.mxu0 %v3314_v34  ;;  %1885 = vmatprep.subr.bf16.mxu1 %v3322_v36  ;;  %v3367_v34 = vld [vmem:[%s4667_s1 + $0x5ec] ss:$16 sps:$4 sm:$0xff]  }
  0xc1   :  { %v3370_v36 = vld [vmem:[%s4667_s1 + $0x60c] ss:$16 sps:$4 sm:$0xff]  }
  0xc2   :  { %1877 = vmatmul.mubr.bf16.vlgmr.msra.gmra.mrb[4].mxu1 %v3793_v20  ;;  %v3418_v20 = vld [vmem:[%s4669_s3 + $0x4] ss:$8 sps:$4 sm:$0xff]  }
  0xc3   :  { %1795 = vmatmul.mubr.bf16.vlgmr.msra.gmra.mrb[0].mxu0 %v4200_v37  ;;  %1886 = vmatpush1.bf16.msra.mxu1 %v3320_v38  ;;  %v3368_v38 = vld [vmem:[%s4667_s1 + $0x608] ss:$16 sps:$4 sm:$0xff]  }
  0xc4   :  { %1917 = vmatprep.mubr.bf16.mxu1 %v3807_v25  ;;  %1887 = vmatprep.subr.bf16.mxu1 %v3325_v19  ;;  %v3331_v25 = vld [vmem:[%s4667_s1 + $0x46c] ss:$16 sps:$4 sm:$0xff]  }
  0xc5   :  { %2371 = vmatprep.subr.bf16.mxu0 %v3418_v20  ;;  %v3373_v19 = vld [vmem:[%s4667_s1 + $0x62c] ss:$16 sps:$4 sm:$0xff]  }
  0xc6   :  { %2372 = vmatpush1.bf16.msra.mxu0 %v3416_v40  ;;  %v3374_v40 = vld [vmem:[%s4667_s1 + $0x648] ss:$16 sps:$4 sm:$0xff]   ;;  %v3382_v20 = vld [vmem:[%s4667_s1 + $0x68c] ss:$16 sps:$4 sm:$0xff]  }
  0xc7   :  { %1888 = vmatpush1.bf16.msra.mxu1 %v3323_v26  ;;  %2373 = vmatprep.subr.bf16.mxu0 %v3421_v41  ;;  %v3371_v26 = vld [vmem:[%s4667_s1 + $0x628] ss:$16 sps:$4 sm:$0xff]  }
  0xc8   :  { %1889 = vmatprep.subr.bf16.mxu1 %v3328_v39  ;;  %v3376_v39 = vld [vmem:[%s4667_s1 + $0x64c] ss:$16 sps:$4 sm:$0xff]   ;;  %v3380_v41 = vld [vmem:[%s4667_s1 + $0x688] ss:$16 sps:$4 sm:$0xff]  }
  0xca   :  { %2374 = vmatpush1.bf16.msra.mxu0 %v3419_v42  ;;  %v3388_v42 = vld [vmem:[%s4667_s1 + $0x6cc] ss:$16 sps:$4 sm:$0xff]  }
  0xcb   :  { %1890 = vmatpush1.bf16.msra.mxu1 %v3326_v3  ;;  %2375 = vmatprep.subr.bf16.mxu0 %v3424_v44  ;;  %v3385_v3 = vld [vmem:[%s4667_s1 + $0x6ac] ss:$16 sps:$4 sm:$0xff]  }
  0xcc   :  { %1891 = vmatprep.subr.bf16.mxu1 %v3331_v25  ;;  %v3383_v25 = vld [vmem:[%s4667_s1 + $0x6a8] ss:$16 sps:$4 sm:$0xff]   ;;  %v3460_v44 = vld [vmem:[%s4669_s3 + $0xe4] ss:$8 sps:$4 sm:$0xff]  }
  0xce   :  { %2376 = vmatpush1.bf16.msra.mxu0 %v3422_v47 }
  0xcf   :  { %1892 = vmatpush1.bf16.msra.mxu1 %v3329_v45  ;;  %2377 = vmatprep.subr.bf16.mxu0 %v3427_v48 }
  0xd0   :  { %1893 = vmatprep.subr.bf16.mxu1 %v3334_v46  ;;  %v3458_v46 = vld [vmem:[%s4669_s3 + $0xe0] ss:$8 sps:$4 sm:$0xff]  }
  0xd2   :  { %2378 = vmatpush1.bf16.msra.mxu0 %v3425_v52  ;;  %v3391_v52 = vld [vmem:[%s4667_s1 + $0x6ec] ss:$16 sps:$4 sm:$0xff]  }
  0xd3   :  { %1894 = vmatpush1.bf16.msra.mxu1 %v3332_v50  ;;  %2379 = vmatprep.subr.bf16.mxu0 %v3430_v53  ;;  %v3386_v50 = vld [vmem:[%s4667_s1 + $0x6c8] ss:$16 sps:$4 sm:$0xff]   ;;  %v3463_v53 = vld [vmem:[%s4669_s3 + $0xf4] ss:$8 sps:$4 sm:$0xff]  }
  0xd4   :  { %1895 = vmatprep.subr.bf16.mxu1 %v3337_v51 }
  0xd6   :  { %2380 = vmatpush1.bf16.msra.mxu0 %v3428_v56  ;;  %v3394_v56 = vld [vmem:[%s4667_s1 + $0x70c] ss:$16 sps:$4 sm:$0xff]  }
  0xd7   :  { %1896 = vmatpush1.bf16.msra.mxu1 %v3335_v54  ;;  %2381 = vmatprep.subr.bf16.mxu0 %v3433_v57  ;;  %v3461_v54 = vld [vmem:[%s4669_s3 + $0xf0] ss:$8 sps:$4 sm:$0xff]   ;;  %v3466_v57 = vld [vmem:[%s4669_s3 + $0x104] ss:$8 sps:$4 sm:$0xff]  }
  0xd8   :  { %1897 = vmatprep.subr.bf16.mxu1 %v3340_v55  ;;  %v3389_v55 = vld [vmem:[%s4667_s1 + $0x6e8] ss:$16 sps:$4 sm:$0xff]  }
  0xda   :  { %2382 = vmatpush1.bf16.msra.mxu0 %v3431_v59  ;;  %v3397_v59 = vld [vmem:[%s4667_s1 + $0x72c] ss:$16 sps:$4 sm:$0xff]  }
  0xdb   :  { %1898 = vmatpush1.bf16.msra.mxu1 %v3338_v58  ;;  %2383 = vmatprep.subr.bf16.mxu0 %v3436_v61  ;;  %v3392_v58 = vld [vmem:[%s4667_s1 + $0x708] ss:$16 sps:$4 sm:$0xff]   ;;  %v3400_v61 = vld [vmem:[%s4667_s1 + $0x74c] ss:$16 sps:$4 sm:$0xff]  }
  0xdc   :  { %1899 = vmatprep.subr.bf16.mxu1 %v3343_v60  ;;  %v3395_v60 = vld [vmem:[%s4667_s1 + $0x728] ss:$16 sps:$4 sm:$0xff]  }
  0xde   :  { %2384 = vmatpush1.bf16.msra.mxu0 %v3434_v63  ;;  %v3403_v63 = vld [vmem:[%s4667_s1 + $0x76c] ss:$16 sps:$4 sm:$0xff]  }
  0xdf   :  { %1900 = vmatpush1.bf16.msra.mxu1 %v3341_v62  ;;  %2385 = vmatprep.subr.bf16.mxu0 %v3439_v1  ;;  %v3398_v62 = vld [vmem:[%s4667_s1 + $0x748] ss:$16 sps:$4 sm:$0xff]   ;;  %v3406_v1 = vld [vmem:[%s4667_s1 + $0x78c] ss:$16 sps:$4 sm:$0xff]  }
  0xe0   :  { %1901 = vmatprep.subr.bf16.mxu1 %v3346_v0  ;;  %v3401_v0 = vld [vmem:[%s4667_s1 + $0x768] ss:$16 sps:$4 sm:$0xff]  }
  0xe2   :  { %2386 = vmatpush1.bf16.msra.mxu0 %v3437_v4  ;;  %v3409_v4 = vld [vmem:[%s4667_s1 + $0x7ac] ss:$16 sps:$4 sm:$0xff]  }
  0xe3   :  { %1902 = vmatpush1.bf16.msra.mxu1 %v3344_v2  ;;  %2387 = vmatprep.subr.bf16.mxu0 %v3442_v6  ;;  %v3404_v2 = vld [vmem:[%s4667_s1 + $0x788] ss:$16 sps:$4 sm:$0xff]   ;;  %v3412_v6 = vld [vmem:[%s4667_s1 + $0x7cc] ss:$16 sps:$4 sm:$0xff]  }
  0xe4   :  { %1903 = vmatprep.subr.bf16.mxu1 %v3349_v5  ;;  %v3407_v5 = vld [vmem:[%s4667_s1 + $0x7a8] ss:$16 sps:$4 sm:$0xff]  }
  0xe6   :  { %2388 = vmatpush1.bf16.msra.mxu0 %v3440_v9  ;;  %v3415_v9 = vld [vmem:[%s4667_s1 + $0x7ec] ss:$16 sps:$4 sm:$0xff]  }
  0xe7   :  { %1904 = vmatpush1.bf16.msra.mxu1 %v3347_v7  ;;  %2389 = vmatprep.subr.bf16.mxu0 %v3445_v11  ;;  %v3410_v7 = vld [vmem:[%s4667_s1 + $0x7c8] ss:$16 sps:$4 sm:$0xff]   ;;  %v341_v11 = vsub.s32 0, %v3686_v43 }
  0xe8   :  { %1905 = vmatprep.subr.bf16.mxu1 %v3352_v10  ;;  %v3413_v10 = vld [vmem:[%s4667_s1 + $0x7e8] ss:$16 sps:$4 sm:$0xff]  }
  0xea   :  { %2390 = vmatpush1.bf16.msra.mxu0 %v3443_v14  ;;  %v345_v14 = vsub.s32 1, %v3686_v43 }
  0xeb   :  { %1906 = vmatpush1.bf16.msra.mxu1 %v3350_v12  ;;  %2391 = vmatprep.subr.bf16.mxu0 %v3448_v16  ;;  %v4500_v12 = vld [vmem:[%s4670_s2] sm:$0xf] }
  0xec   :  { %1907 = vmatprep.subr.bf16.mxu1 %v3355_v15  ;;  %v342_v15 = vrot.slane %v4500_v12, %v341_v11  ;;  %v346_v16 = vrot.slane %v4500_v12, %v345_v14 }
  0xee   :  { %2392 = vmatpush1.bf16.msra.mxu0 %v3446_v18 }
  0xef   :  { %1908 = vmatpush1.bf16.msra.mxu1 %v3353_v17  ;;  %2393 = vmatprep.subr.bf16.mxu0 %v3451_v22 }
  0xf0   :  { %1909 = vmatprep.subr.bf16.mxu1 %v3358_v21 }
  0xf2   :  { %2394 = vmatpush1.bf16.msra.mxu0 %v3449_v24 }
  0xf3   :  { %1910 = vmatpush1.bf16.msra.mxu1 %v3356_v23  ;;  %2395 = vmatprep.subr.bf16.mxu0 %v3454_v27 }
  0xf4   :  { %1911 = vmatprep.subr.bf16.mxu1 %v3361_v8 }
  0xf6   :  { %2396 = vmatpush1.bf16.msra.mxu0 %v3452_v29 }
  0xf7   :  { %1912 = vmatpush1.bf16.msra.mxu1 %v3359_v28  ;;  %2397 = vmatprep.subr.bf16.mxu0 %v3457_v30 }
  0xf8   :  { %1913 = vmatprep.subr.bf16.mxu1 %v3364_v49  ;;  %v3464_v49 = vld [vmem:[%s4669_s3 + $0x100] ss:$8 sps:$4 sm:$0xff]  }
  0xfa   :  { %2398 = vmatpush1.bf16.msra.mxu0 %v3455_v33  ;;  %v3467_v33 = vld [vmem:[%s4669_s3 + $0x110] ss:$8 sps:$4 sm:$0xff]  }
  0xfb   :  { %1914 = vmatpush1.bf16.msra.mxu1 %v3362_v32  ;;  %2399 = vmatprep.subr.bf16.mxu0 %v3460_v44  ;;  %v3469_v32 = vld [vmem:[%s4669_s3 + $0x114] ss:$8 sps:$4 sm:$0xff]   ;;  %v3520_v44 = vld [vmem:[%s4671_s5 + $0x60] sm:$0xff]  }
  0xfc   :  { %1915 = vmatprep.subr.bf16.mxu1 %v3367_v34  ;;  %v3472_v34 = vld [vmem:[%s4669_s3 + $0x124] ss:$8 sps:$4 sm:$0xff]  }
  0xfe   :  { %2400 = vmatpush1.bf16.msra.mxu0 %v3458_v46  ;;  %v3479_v46 = vld [vmem:[%s4669_s3 + $0x150] ss:$8 sps:$4 sm:$0xff]  }
  0xff   :  { %1916 = vmatpush1.bf16.msra.mxu1 %v3365_v13  ;;  %2401 = vmatprep.subr.bf16.mxu0 %v3463_v53  ;;  %v3512_v13 = vld [vmem:[%s4671_s5 + $0x40] sm:$0xff]   ;;  %v3485_v53 = vld [vmem:[%s4669_s3 + $0x170] ss:$8 sps:$4 sm:$0xff]  }
 0x100   :  { %1926 = vmatprep.subr.bf16.mxu1 %v3370_v36  ;;  %v3513_v36 = vld [vmem:[%s4671_s5] sm:$0xff]  }
 0x102   :  { %1918 = vmatmul.mubr.bf16.vlgmr.msra.gmra.mrb[4].mxu1 %v4001_v31  ;;  %v3379_v31 = vld [vmem:[%s4667_s1 + $0x66c] ss:$16 sps:$4 sm:$0xff]   ;;  %2402 = vmatpush1.bf16.msra.mxu0 %v3461_v54 }
 0x103   :  { %1927 = vmatpush1.bf16.msra.mxu1 %v3368_v38  ;;  %1958 = vmatprep.mubr.bf16.mxu1 %v4015_v35  ;;  %v3377_v35 = vld [vmem:[%s4667_s1 + $0x668] ss:$16 sps:$4 sm:$0xff]   ;;  %v3490_v54 = vld [vmem:[%s4669_s3 + $0x184] ss:$8 sps:$4 sm:$0xff]  }
 0x104   :  { %1928 = vmatprep.subr.bf16.mxu1 %v3373_v19  ;;  %2412 = vmatprep.subr.bf16.mxu0 %v3466_v57  ;;  %v3470_v38 = vld [vmem:[%s4669_s3 + $0x120] ss:$8 sps:$4 sm:$0xff]   ;;  %v3491_v57 = vld [vmem:[%s4669_s3 + $0x190] ss:$8 sps:$4 sm:$0xff]  }
 0x105   :  { %v3514_v19 = vld [vmem:[%s4671_s5 + $0x48] sm:$0xff]  }
 0x107   :  { %1929 = vmatpush1.bf16.msra.mxu1 %v3371_v26  ;;  %v3515_v26 = vld [vmem:[%s4671_s5 + $0x8] sm:$0xff]  }
 0x108   :  { %1930 = vmatprep.subr.bf16.mxu1 %v3376_v39  ;;  %v3516_v39 = vld [vmem:[%s4671_s5 + $0x50] sm:$0xff]  }
 0x10b   :  { %1931 = vmatpush1.bf16.msra.mxu1 %v3374_v40  ;;  %v3475_v40 = vld [vmem:[%s4669_s3 + $0x134] ss:$8 sps:$4 sm:$0xff]  }
 0x10c   :  { %1932 = vmatprep.subr.bf16.mxu1 %v3379_v31  ;;  %v3473_v31 = vld [vmem:[%s4669_s3 + $0x130] ss:$8 sps:$4 sm:$0xff]  }
 0x10f   :  { %1933 = vmatpush1.bf16.msra.mxu1 %v3377_v35  ;;  %v3517_v35 = vld [vmem:[%s4671_s5 + $0x10] sm:$0xff]  }
 0x110   :  { %1934 = vmatprep.subr.bf16.mxu1 %v3382_v20  ;;  %v3518_v20 = vld [vmem:[%s4671_s5 + $0x58] sm:$0xff]  }
 0x113   :  { %1935 = vmatpush1.bf16.msra.mxu1 %v3380_v41  ;;  %v3478_v41 = vld [vmem:[%s4669_s3 + $0x144] ss:$8 sps:$4 sm:$0xff]  }
 0x114   :  { %1936 = vmatprep.subr.bf16.mxu1 %v3385_v3  ;;  %v3476_v3 = vld [vmem:[%s4669_s3 + $0x140] ss:$8 sps:$4 sm:$0xff]  }
 0x115   :  { %v1673_v45 = vpop.f32.mrb[0].mxu1 }
 0x116   :  { %v1675_v47 = vpop.f32.mrb[1].mxu1  ;;  %v1674_v17 = vadd.f32 %v1673_v45, %v342_v15  ;;  %v3521_v45 = vld [vmem:[%s4671_s5 + $0x20] sm:$0xff]  }
 0x117   :  { %v1677_v48 = vpop.f32.mrb[2].mxu1  ;;  %1937 = vmatpush1.bf16.msra.mxu1 %v3383_v25  ;;  %v1676_v18 = vadd.f32 %v1675_v47, %v346_v16  ;;  %v3481_v25 = vld [vmem:[%s4669_s3 + $0x154] ss:$8 sps:$4 sm:$0xff]   ;;  %v3522_v47 = vld [vmem:[%s4671_s5 + $0x68] sm:$0xff]  }
 0x118   :  { %v1678_v51 = vpop.f32.mrb[3].mxu1  ;;  %1938 = vmatprep.subr.bf16.mxu1 %v3388_v42  ;;  %v3519_v42 = vld [vmem:[%s4671_s5 + $0x18] sm:$0xff]   ;;  %v3484_v48 = vld [vmem:[%s4669_s3 + $0x164] ss:$8 sps:$4 sm:$0xff]  }
 0x119   :  { %v3482_v51 = vld [vmem:[%s4669_s3 + $0x160] ss:$8 sps:$4 sm:$0xff]  }
 0x11b   :  { %1939 = vmatpush1.bf16.msra.mxu1 %v3386_v50  ;;  %v3523_v50 = vld [vmem:[%s4671_s5 + $0x28] sm:$0xff]  }
 0x11c   :  { %1940 = vmatprep.subr.bf16.mxu1 %v3391_v52  ;;  %v3487_v52 = vld [vmem:[%s4669_s3 + $0x174] ss:$8 sps:$4 sm:$0xff]  }
 0x11f   :  { %1941 = vmatpush1.bf16.msra.mxu1 %v3389_v55  ;;  %v3488_v55 = vld [vmem:[%s4669_s3 + $0x180] ss:$8 sps:$4 sm:$0xff]  }
 0x120   :  { %1942 = vmatprep.subr.bf16.mxu1 %v3394_v56  ;;  %v3493_v56 = vld [vmem:[%s4669_s3 + $0x194] ss:$8 sps:$4 sm:$0xff]  }
 0x123   :  { %1943 = vmatpush1.bf16.msra.mxu1 %v3392_v58  ;;  %v3496_v58 = vld [vmem:[%s4669_s3 + $0x1a4] ss:$8 sps:$4 sm:$0xff]  }
 0x124   :  { %1944 = vmatprep.subr.bf16.mxu1 %v3397_v59  ;;  %v3494_v59 = vld [vmem:[%s4669_s3 + $0x1a0] ss:$8 sps:$4 sm:$0xff]  }
 0x127   :  { %1945 = vmatpush1.bf16.msra.mxu1 %v3395_v60  ;;  %v3499_v60 = vld [vmem:[%s4669_s3 + $0x1b4] ss:$8 sps:$4 sm:$0xff]  }
 0x128   :  { %1946 = vmatprep.subr.bf16.mxu1 %v3400_v61  ;;  %v3497_v61 = vld [vmem:[%s4669_s3 + $0x1b0] ss:$8 sps:$4 sm:$0xff]  }
 0x12b   :  { %1947 = vmatpush1.bf16.msra.mxu1 %v3398_v62  ;;  %v3502_v62 = vld [vmem:[%s4669_s3 + $0x1c4] ss:$8 sps:$4 sm:$0xff]  }
 0x12c   :  { %1948 = vmatprep.subr.bf16.mxu1 %v3403_v63  ;;  %v3500_v63 = vld [vmem:[%s4669_s3 + $0x1c0] ss:$8 sps:$4 sm:$0xff]  }
 0x12f   :  { %1949 = vmatpush1.bf16.msra.mxu1 %v3401_v0  ;;  %v3505_v0 = vld [vmem:[%s4669_s3 + $0x1d4] ss:$8 sps:$4 sm:$0xff]  }
 0x130   :  { %1950 = vmatprep.subr.bf16.mxu1 %v3406_v1  ;;  %v3503_v1 = vld [vmem:[%s4669_s3 + $0x1d0] ss:$8 sps:$4 sm:$0xff]  }
 0x133   :  { %1951 = vmatpush1.bf16.msra.mxu1 %v3404_v2  ;;  %v3508_v2 = vld [vmem:[%s4669_s3 + $0x1e4] ss:$8 sps:$4 sm:$0xff]  }
 0x134   :  { %1952 = vmatprep.subr.bf16.mxu1 %v3409_v4  ;;  %v3506_v4 = vld [vmem:[%s4669_s3 + $0x1e0] ss:$8 sps:$4 sm:$0xff]  }
 0x137   :  { %1953 = vmatpush1.bf16.msra.mxu1 %v3407_v5  ;;  %v3511_v5 = vld [vmem:[%s4669_s3 + $0x1f4] ss:$8 sps:$4 sm:$0xff]  }
 0x138   :  { %1954 = vmatprep.subr.bf16.mxu1 %v3412_v6  ;;  %v3509_v6 = vld [vmem:[%s4669_s3 + $0x1f0] ss:$8 sps:$4 sm:$0xff]  }
 0x13b   :  { %1955 = vmatpush1.bf16.msra.mxu1 %v3410_v7  ;;  %v349_v7 = vsub.s32 2, %v3686_v43 }
 0x13c   :  { %1956 = vmatprep.subr.bf16.mxu1 %v3415_v9  ;;  %v353_v9 = vsub.s32 3, %v3686_v43 }
 0x13e   :  { %v354_v15 = vrot.slane %v4500_v12, %v353_v9 }
 0x13f   :  { %1957 = vmatpush1.bf16.msra.mxu1 %v3413_v10  ;;  %v350_v10 = vrot.slane %v4500_v12, %v349_v7  ;;  %v3525_v12 = vld [vmem:[%s4671_s5 + $0x30] sm:$0xff]  }
 0x140   :  { %2975 = vmatprep.subr.bf16.mxu1 %v3512_v13 }
 0x142   :  { %1959 = vmatmul.mubr.bf16.vlgmr.msra.gmra.mrb[4].mxu1 %v4200_v37 }
 0x143   :  { %2976 = vmatpush3.bf16.msra.mxu1 %v3513_v36 }
 0x144   :  { %2977 = vmatprep.subr.bf16.mxu1 %v3514_v19 }
 0x147   :  { %2978 = vmatpush3.bf16.msra.mxu1 %v3515_v26 }
 0x148   :  { %2979 = vmatprep.subr.bf16.mxu1 %v3516_v39 }
 0x14b   :  { %2980 = vmatpush3.bf16.msra.mxu1 %v3517_v35 }
 0x14c   :  { %2981 = vmatprep.subr.bf16.mxu1 %v3518_v20 }
 0x14f   :  { %2982 = vmatpush3.bf16.msra.mxu1 %v3519_v42 }
 0x150   :  { %2983 = vmatprep.subr.bf16.mxu1 %v3520_v44 }
 0x153   :  { %2984 = vmatpush3.bf16.msra.mxu1 %v3521_v45 }
 0x154   :  { %2985 = vmatprep.subr.bf16.mxu1 %v3522_v47 }
 0x157   :  { %2986 = vmatpush3.bf16.msra.mxu1 %v3523_v50 }
 0x196   :  { %v1796_v37 = vpop.f32.mrb[0].mxu0 }
 0x197   :  { %v2998_v21 = vadd.f32 %v1796_v37, %v1674_v17  ;;  %v1798_v22 = vpop.f32.mrb[1].mxu0 }
 0x198   :  { %v3000_v23 = vadd.f32 %v1798_v22, %v1676_v18  ;;  %v1800_v24 = vpop.f32.mrb[2].mxu0 }
 0x199   :  { %v1967_v8 = vmax.f32 %v2998_v21, 0.0  ;;  %v1801_v27 = vpop.f32.mrb[3].mxu0 }
 0x19a   :  { %v1968_v28 = vmax.f32 %v3000_v23, 0.0 }
 0x19b   :  { %v1971_v30 = vpack.c.bf16 %v1967_v8, %v1967_v8 }
 0x19c   :  { %v1972_v29 = vpack.c.bf16 %v1968_v28, %v1968_v28  ;;  %v3524_v28 = vld [vmem:[%s4671_s5 + $0x70] sm:$0xff]  }
 0x19d   :  { %2987 = vmatprep.subr.bf16.mxu1 %v3524_v28 }
 0x19e   :  { %2403 = vmatprep.mubr.bf16.mxu0 %v1972_v29  ;;  %2988 = vmatpush3.bf16.msra.mxu1 %v3525_v12  ;;  %v3526_v29 = vld [vmem:[%s4671_s5 + $0x78] sm:$0xff]  }
 0x19f   :  { %2404 = vmatmul.mubr.bf16.vlgmr.msra.gmra.mrb[4].mxu0 %v1971_v30  ;;  %2989 = vmatprep.subr.bf16.mxu1 %v3526_v29  ;;  %v2039_v30 = vld [vmem:[%s4672_s4] sm:$0x3] }
 0x1a0   :  { %2413 = vmatpush1.bf16.msra.mxu0 %v3464_v49  ;;  %v3527_v49 = vld [vmem:[%s4671_s5 + $0x38] sm:$0xff]  }
 0x1a1   :  { %2414 = vmatprep.subr.bf16.mxu0 %v3469_v32  ;;  %v2044_v32 = vrot.slane %v2039_v30, %v341_v11  ;;  %v2958_v11 = vld [vmem:[%s4673_s6] ss:$0 sm:$0xff] }
 0x1a2   :  { %2990 = vmatpush3.bf16.msra.mxu1 %v3527_v49 }
 0x1a4   :  { %2415 = vmatpush1.bf16.msra.mxu0 %v3467_v33  ;;  %v2048_v33 = vrot.slane %v2039_v30, %v345_v14 }
 0x1a5   :  { %2416 = vmatprep.subr.bf16.mxu0 %v3472_v34 }
 0x1a8   :  { %2417 = vmatpush1.bf16.msra.mxu0 %v3470_v38 }
 0x1a9   :  { %2418 = vmatprep.subr.bf16.mxu0 %v3475_v40 }
 0x1ac   :  { %2419 = vmatpush1.bf16.msra.mxu0 %v3473_v31 }
 0x1ad   :  { %2420 = vmatprep.subr.bf16.mxu0 %v3478_v41 }
 0x1b0   :  { %2421 = vmatpush1.bf16.msra.mxu0 %v3476_v3 }
 0x1b1   :  { %2422 = vmatprep.subr.bf16.mxu0 %v3481_v25 }
 0x1b4   :  { %2423 = vmatpush1.bf16.msra.mxu0 %v3479_v46 }
 0x1b5   :  { %2424 = vmatprep.subr.bf16.mxu0 %v3484_v48 }
 0x1b8   :  { %2425 = vmatpush1.bf16.msra.mxu0 %v3482_v51 }
 0x1b9   :  { %2426 = vmatprep.subr.bf16.mxu0 %v3487_v52 }
 0x1bc   :  { %2427 = vmatpush1.bf16.msra.mxu0 %v3485_v53 }
 0x1bd   :  { %2428 = vmatprep.subr.bf16.mxu0 %v3490_v54 }
 0x1c0   :  { %2429 = vmatpush1.bf16.msra.mxu0 %v3488_v55 }
 0x1c1   :  { %2430 = vmatprep.subr.bf16.mxu0 %v3493_v56 }
 0x1c4   :  { %2431 = vmatpush1.bf16.msra.mxu0 %v3491_v57 }
 0x1c5   :  { %2432 = vmatprep.subr.bf16.mxu0 %v3496_v58 }
 0x1c8   :  { %2433 = vmatpush1.bf16.msra.mxu0 %v3494_v59 }
 0x1c9   :  { %2434 = vmatprep.subr.bf16.mxu0 %v3499_v60 }
 0x1cc   :  { %2435 = vmatpush1.bf16.msra.mxu0 %v3497_v61 }
 0x1cd   :  { %2436 = vmatprep.subr.bf16.mxu0 %v3502_v62 }
 0x1d0   :  { %2437 = vmatpush1.bf16.msra.mxu0 %v3500_v63 }
 0x1d1   :  { %2438 = vmatprep.subr.bf16.mxu0 %v3505_v0 }
 0x1d4   :  { %2439 = vmatpush1.bf16.msra.mxu0 %v3503_v1 }
 0x1d5   :  { %2440 = vmatprep.subr.bf16.mxu0 %v3508_v2 }
 0x1d8   :  { %2441 = vmatpush1.bf16.msra.mxu0 %v3506_v4 }
 0x1d9   :  { %2442 = vmatprep.subr.bf16.mxu0 %v3511_v5 }
 0x1dc   :  { %2443 = vmatpush1.bf16.msra.mxu0 %v3509_v6 }
 0x215   :  { %v1960_v16 = vpop.f32.mrb[4].mxu1 }
 0x216   :  { %v3001_v17 = vadd.f32 %v1960_v16, %v350_v10  ;;  %v1962_v18 = vpop.f32.mrb[5].mxu1 }
 0x217   :  { %v3002_v37 = vadd.f32 %v1962_v18, %v354_v15  ;;  %v1964_v21 = vpop.f32.mrb[6].mxu1 }
 0x218   :  { %v1969_v22 = vmax.f32 %v3001_v17, 0.0  ;;  %v1965_v23 = vpop.f32.mrb[7].mxu1 }
 0x219   :  { %v1970_v24 = vmax.f32 %v3002_v37, 0.0 }
 0x21a   :  { %v1973_v27 = vpack.c.bf16 %v1969_v22, %v1969_v22 }
 0x21b   :  { %v1974_v8 = vpack.c.bf16 %v1970_v24, %v1970_v24 }
 0x21d   :  { %2444 = vmatprep.mubr.bf16.mxu0 %v1974_v8 }
 0x21e   :  { %2445 = vmatmul.mubr.bf16.vlgmr.msra.gmra.mrb[4].mxu0 %v1973_v27 }
 0x2f1   :  { %v2446_v34 = vpop.f32.mrb[4].mxu0 }
 0x2f2   :  { %v3003_v13 = vadd.f32 %v2446_v34, %v2044_v32  ;;  %v2448_v36 = vpop.f32.mrb[5].mxu0 }
 0x2f3   :  { %v3004_v38 = vadd.f32 %v2448_v36, %v2048_v33  ;;  %v2450_v19 = vpop.f32.mrb[6].mxu0 }
 0x2f4   :  { %v2453_v26 = vmax.f32 %v3003_v13, 0.0  ;;  %v2451_v39 = vpop.f32.mrb[7].mxu0 }
 0x2f5   :  { %v2454_v40 = vmax.f32 %v3004_v38, 0.0 }
 0x2f6   :  { %v2455_v35 = vpack.c.bf16 %v2453_v26, %v2453_v26 }
 0x2f7   :  { %v2456_v31 = vpack.c.bf16 %v2454_v40, %v2454_v40 }
 0x2f9   :  { %2624 = vmatprep.mubr.bf16.mxu1 %v2456_v31 }
 0x2fa   :  { %2625 = vmatmul.mubr.bf16.vlgmr.msra.gmra.mrb[8].mxu1 %v2455_v35 }
 0x3cd   :  { %v2991_v20 = vpop.f32.mrb[8].mxu1 }
 0x3ce   :  { %v2992_v41 = vpop.f32.mrb[9].mxu1 }
 0x3cf   :  { %v2993_v43 = vadd.f32 %v2992_v41, %v2991_v20  ;;  %v2994_v14 = vpop.f32.mrb[10].mxu1 }
 0x3d0   :  { %v2995_v3 = vpop.f32.mrb[11].mxu1 }
 0x3d1   :  { %v2627_v25 = vadd.f32 %v2993_v43, %v2958_v11 }
 0x3d3   :  { %2633 = vst.msk [vmem:[%s4674_s7] sm:$0x3] %vm2632_vm0, %v2627_v25 }

</bundles_post_ra>
